<compile_context>
chip_gen: v5e
topology: v5e:2x2
jax: 0.10.0
libtpu: 0.0.40
codegen_flags: <defaults>
</compile_context>

<pallas_src>
import functools

import jax
import jax.numpy as jnp
from jax.experimental import pallas as pl
from jax.experimental.pallas import tpu as pltpu


# ----------------------------------------------------------------------------
# Model-size constants (scaled-down but structurally faithful)
# ----------------------------------------------------------------------------
FPN_CH = 32          # torchvision uses 256
NUM_ANCHORS = 3      # 3 aspect ratios per location
REP = 128            # torchvision TwoMLPHead uses 1024
NUM_CLASSES = 3      # params.output_channels
ROI_SIZE = 7


def _round_up(x, m):
    return (x + m - 1) // m * m


def _apply_act(x, act):
    if act == "relu":
        return jnp.maximum(x, 0.0)
    if act == "hardswish":
        return x * jnp.clip(x + 3.0, 0.0, 6.0) * (1.0 / 6.0)
    return x


# ----------------------------------------------------------------------------
# Pallas kernels: matmul + fused bias + activation
# ----------------------------------------------------------------------------
def _mm_single_k_kernel(a_ref, b_ref, bias_ref, o_ref, *, act):
    # Whole K in one block: no k-loop, no scratch accumulator.
    out = jnp.dot(a_ref[...], b_ref[...], preferred_element_type=jnp.float32)
    out = out + bias_ref[...]
    o_ref[...] = _apply_act(out, act).astype(o_ref.dtype)


def _mm_multi_k_kernel(a_ref, b_ref, bias_ref, o_ref, acc_ref, *, act):
    # Fallback for very large K (not exercised at these model sizes).
    k = pl.program_id(2)

    @pl.when(k == 0)
    def _():
        acc_ref[...] = jnp.broadcast_to(bias_ref[...], acc_ref.shape).astype(jnp.float32)

    acc_ref[...] += jnp.dot(a_ref[...], b_ref[...],
                            preferred_element_type=jnp.float32)

    @pl.when(k == pl.num_programs(2) - 1)
    def _():
        o_ref[...] = _apply_act(acc_ref[...], act).astype(o_ref.dtype)


def pallas_matmul(a, b, bias=None, act="none", out_dtype=jnp.float32):
    """out = act(a @ b + bias).  a:(M,K), b:(K,N).  bf16 MXU operands, f32 acc."""
    M, K = a.shape
    K2, N = b.shape
    assert K == K2
    if bias is None:
        bias = jnp.zeros((N,), jnp.float32)

    # cast BEFORE padding so the pad copies move bf16, not f32
    a = a.astype(jnp.bfloat16)
    b = b.astype(jnp.bfloat16)

    # adaptive tiling: single M/K block for the small problems here; split M
    # into 2 parallel blocks for the biggest GEMMs (dual TensorCore on v7x).
    if M >= 512:
        Mp = _round_up(M, 32)
        tm = Mp // 2
    else:
        Mp = _round_up(M, 16)        # bf16 packs 16 rows per sublane tile
        tm = Mp
    Np = _round_up(N, 128)
    tn = 128                         # real N <= 48 everywhere at these sizes
    Kp = _round_up(K, 128)
    single_k = Kp <= 2048
    tk = Kp if single_k else 512
    if not single_k:
        Kp = _round_up(K, tk)

    a_p = a if (Mp == M and Kp == K) else jnp.pad(a, ((0, Mp - M), (0, Kp - K)))
    b_p = b if (Kp == K and Np == N) else jnp.pad(b, ((0, Kp - K), (0, Np - N)))
    bias_p = bias.astype(jnp.float32)
    if Np != N:
        bias_p = jnp.pad(bias_p, (0, Np - N))
    bias_p = bias_p.reshape(1, Np)

    out_bytes = 2 if out_dtype == jnp.bfloat16 else 4
    cost = pl.CostEstimate(
        flops=2 * Mp * Np * Kp,
        transcendentals=0,
        bytes_accessed=2 * (Mp * Kp + Kp * Np) + 4 * Np + out_bytes * Mp * Np)

    if single_k:
        out = pl.pallas_call(
            functools.partial(_mm_single_k_kernel, act=act),
            out_shape=jax.ShapeDtypeStruct((Mp, Np), out_dtype),
            grid=(Mp // tm, Np // tn),
            in_specs=[
                pl.BlockSpec((tm, Kp), lambda i, j: (i, 0)),
                pl.BlockSpec((Kp, tn), lambda i, j: (0, j)),
                pl.BlockSpec((1, tn), lambda i, j: (0, j)),
            ],
            out_specs=pl.BlockSpec((tm, tn), lambda i, j: (i, j)),
            compiler_params=pltpu.CompilerParams(
                dimension_semantics=("parallel", "parallel")),
            cost_estimate=cost,
        )(a_p, b_p, bias_p)
    else:
        out = pl.pallas_call(
            functools.partial(_mm_multi_k_kernel, act=act),
            out_shape=jax.ShapeDtypeStruct((Mp, Np), out_dtype),
            grid=(Mp // tm, Np // tn, Kp // tk),
            in_specs=[
                pl.BlockSpec((tm, tk), lambda i, j, k: (i, k)),
                pl.BlockSpec((tk, tn), lambda i, j, k: (k, j)),
                pl.BlockSpec((1, tn), lambda i, j, k: (0, j)),
            ],
            out_specs=pl.BlockSpec((tm, tn), lambda i, j, k: (i, j)),
            scratch_shapes=[pltpu.VMEM((tm, tn), jnp.float32)],
            compiler_params=pltpu.CompilerParams(
                dimension_semantics=("parallel", "parallel", "arbitrary")),
            cost_estimate=cost,
        )(a_p, b_p, bias_p)

    if Mp != M or Np != N:
        out = out[:M, :N]
    return out


# ----------------------------------------------------------------------------
# Pallas kernel: generic fused MLP chain (all intermediates stay in VMEM).
# Used for BOTH the RPN head (conv3x3+relu -> cls||reg 1x1) and the ROI box
# head (fc6 -> relu -> fc7 -> relu -> cls||reg).
# ----------------------------------------------------------------------------
def _fused_mlp_kernel(*refs, acts):
    n = len(acts)
    o_ref = refs[-1]
    h = refs[0][...]                                   # bf16
    for i in range(n):
        w = refs[1 + 2 * i][...]                       # bf16 (Kp, Np)
        b = refs[2 + 2 * i][...]                       # f32  (1, Np)
        h = jnp.dot(h, w, preferred_element_type=jnp.float32) + b
        h = _apply_act(h, acts[i])
        if i + 1 < n:
            h = h.astype(jnp.bfloat16)                 # next MXU operand
    o_ref[...] = h.astype(o_ref.dtype)


def fused_mlp(x, layers, acts, out_dtype=jnp.float32):
    """act_n(... act_1(x @ W1 + b1) ... @ Wn + bn) in ONE pallas_call.
    x:(M,K0) f32/bf16; layers: list of (W:(Ki,Ni), b:(Ni,)).  Returns (M, Nn_pad)."""
    assert len(layers) == len(acts)
    M, K0 = x.shape
    Mp = _round_up(M, 16)
    K0p = _round_up(K0, 128)
    x_p = x.astype(jnp.bfloat16)
    if (Mp, K0p) != (M, K0):
        x_p = jnp.pad(x_p, ((0, Mp - M), (0, K0p - K0)))

    args = [x_p]
    prev = K0p
    flops = 0
    bytes_acc = 2 * Mp * K0p
    for (w, b) in layers:
        k, n = w.shape
        assert k <= prev
        np_ = _round_up(n, 128)
        # zero padding on weight rows/cols + bias keeps padded lanes exactly 0
        w_p = jnp.pad(w.astype(jnp.bfloat16), ((0, prev - k), (0, np_ - n)))
        b_p = jnp.pad(b.astype(jnp.float32), (0, np_ - n)).reshape(1, np_)
        args += [w_p, b_p]
        flops += 2 * Mp * prev * np_
        bytes_acc += 2 * prev * np_ + 4 * np_
        prev = np_
    bytes_acc += Mp * prev * (2 if out_dtype == jnp.bfloat16 else 4)

    out = pl.pallas_call(
        functools.partial(_fused_mlp_kernel, acts=tuple(acts)),
        out_shape=jax.ShapeDtypeStruct((Mp, prev), out_dtype),
        cost_estimate=pl.CostEstimate(flops=flops, transcendentals=0,
                                      bytes_accessed=bytes_acc),
    )(*args)
    return out[:M]          # callers slice the (padded) N dimension as needed


# ----------------------------------------------------------------------------
# Conv via im2col (bf16) + Pallas matmul (NHWC)
# ----------------------------------------------------------------------------
def im2col(x, kh, kw, stride=1, padding=0):
    N, H, W, Cin = x.shape
    if padding:
        x = jnp.pad(x, ((0, 0), (padding, padding), (padding, padding), (0, 0)))
    Ho = (H + 2 * padding - kh) // stride + 1
    Wo = (W + 2 * padding - kw) // stride + 1
    patches = []
    for i in range(kh):
        for j in range(kw):
            patches.append(x[:, i:i + stride * Ho:stride, j:j + stride * Wo:stride, :])
    cols = jnp.concatenate(patches, axis=-1).reshape(N * Ho * Wo, kh * kw * Cin)
    return cols, (N, Ho, Wo)


def conv2d(x, w, b, stride=1, padding=1, act="none", out_dtype=jnp.bfloat16):
    # TODO(synk): im2col still materializes the patch tensor in HBM (in bf16);
    #             a halo-window fused conv chain would remove it entirely.
    kh, kw, cin, cout = w.shape
    cols, (N, Ho, Wo) = im2col(x.astype(jnp.bfloat16), kh, kw,
                               stride=stride, padding=padding)
    y = pallas_matmul(cols, w.reshape(kh * kw * cin, cout), b, act=act,
                      out_dtype=out_dtype)
    return y.reshape(N, Ho, Wo, cout)


# ----------------------------------------------------------------------------
# Deterministic synthetic parameters (scaled-down faster-rcnn mobilenet fpn)
# ----------------------------------------------------------------------------
def _init(key, shape, scale=0.05):
    return scale * jax.random.normal(key, shape, jnp.float32)


def init_params():
    keys = iter(jax.random.split(jax.random.PRNGKey(42), 32))
    p = {}
    # backbone (mobilenet-v3-large-ish stem + 2 downsampling blocks)
    # TODO(synk): BatchNorm (eval-mode affine) folded away; depthwise/SE blocks
    #             replaced by dense 3x3 convs for the synthetic backbone.
    p["stem_w"] = _init(next(keys), (3, 3, 3, 16)); p["stem_b"] = jnp.zeros((16,))
    p["b1_w"] = _init(next(keys), (3, 3, 16, 24)); p["b1_b"] = jnp.zeros((24,))
    p["b2_w"] = _init(next(keys), (3, 3, 24, 48)); p["b2_b"] = jnp.zeros((48,))
    # FPN (lateral 1x1 + output 3x3, LastLevelMaxPool)
    p["lat3_w"] = _init(next(keys), (1, 1, 24, FPN_CH)); p["lat3_b"] = jnp.zeros((FPN_CH,))
    p["lat4_w"] = _init(next(keys), (1, 1, 48, FPN_CH)); p["lat4_b"] = jnp.zeros((FPN_CH,))
    p["out3_w"] = _init(next(keys), (3, 3, FPN_CH, FPN_CH)); p["out3_b"] = jnp.zeros((FPN_CH,))
    p["out4_w"] = _init(next(keys), (3, 3, FPN_CH, FPN_CH)); p["out4_b"] = jnp.zeros((FPN_CH,))
    # RPN head (shared across levels)
    p["rpn_conv_w"] = _init(next(keys), (3, 3, FPN_CH, FPN_CH)); p["rpn_conv_b"] = jnp.zeros((FPN_CH,))
    p["rpn_cls_w"] = _init(next(keys), (1, 1, FPN_CH, NUM_ANCHORS)); p["rpn_cls_b"] = jnp.zeros((NUM_ANCHORS,))
    p["rpn_reg_w"] = _init(next(keys), (1, 1, FPN_CH, NUM_ANCHORS * 4)); p["rpn_reg_b"] = jnp.zeros((NUM_ANCHORS * 4,))
    # box head (TwoMLPHead) + FastRCNNPredictor(in_features, NUM_CLASSES).
    # fc6 rows are generated in (C,S,S) order (torchvision flatten) and permuted
    # ONCE on the host to the natural NHWC (S,S,C) flatten order the kernel uses.
    fc6_src = _init(next(keys), (FPN_CH, ROI_SIZE, ROI_SIZE, REP))
    p["fc6_w"] = jnp.transpose(fc6_src, (1, 2, 0, 3)).reshape(
        ROI_SIZE * ROI_SIZE * FPN_CH, REP)
    p["fc6_b"] = jnp.zeros((REP,))
    p["fc7_w"] = _init(next(keys), (REP, REP)); p["fc7_b"] = jnp.zeros((REP,))
    p["cls_w"] = _init(next(keys), (REP, NUM_CLASSES)); p["cls_b"] = jnp.zeros((NUM_CLASSES,))
    p["reg_w"] = _init(next(keys), (REP, NUM_CLASSES * 4)); p["reg_b"] = jnp.zeros((NUM_CLASSES * 4,))
    return p


# ----------------------------------------------------------------------------
# Detection glue (anchors, decode, clip, proposals, postprocess)
# ----------------------------------------------------------------------------
def make_anchors(hf, wf, stride, size, aspect_ratios=(0.5, 1.0, 2.0)):
    base = []
    for ar in aspect_ratios:
        h = size * (ar ** 0.5)
        w = size / (ar ** 0.5)
        base.append([-w / 2.0, -h / 2.0, w / 2.0, h / 2.0])
    base = jnp.asarray(base, jnp.float32)                       # (A, 4)
    sy = (jnp.arange(hf, dtype=jnp.float32) + 0.5) * stride
    sx = (jnp.arange(wf, dtype=jnp.float32) + 0.5) * stride
    cy, cx = jnp.meshgrid(sy, sx, indexing="ij")
    centers = jnp.stack([cx, cy, cx, cy], axis=-1).reshape(-1, 1, 4)
    return (centers + base[None]).reshape(-1, 4)                # (hf*wf*A, 4)


def decode_boxes(anchors, deltas):
    wa = anchors[:, 2] - anchors[:, 0]
    ha = anchors[:, 3] - anchors[:, 1]
    xa = anchors[:, 0] + 0.5 * wa
    ya = anchors[:, 1] + 0.5 * ha
    dx, dy, dw, dh = deltas[:, 0], deltas[:, 1], deltas[:, 2], deltas[:, 3]
    xc = dx * wa + xa
    yc = dy * ha + ya
    w = jnp.exp(jnp.minimum(dw, 4.135)) * wa
    h = jnp.exp(jnp.minimum(dh, 4.135)) * ha
    return jnp.stack([xc - 0.5 * w, yc - 0.5 * h,
                      xc + 0.5 * w, yc + 0.5 * h], axis=1)


def clip_boxes(boxes, img_size):
    H, W = img_size
    x1 = jnp.clip(boxes[..., 0], 0.0, W)
    y1 = jnp.clip(boxes[..., 1], 0.0, H)
    x2 = jnp.clip(boxes[..., 2], 0.0, W)
    y2 = jnp.clip(boxes[..., 3], 0.0, H)
    return jnp.stack([x1, y1, x2, y2], axis=-1)


def fpn(c3, c4, p):
    l4 = conv2d(c4, p["lat4_w"], p["lat4_b"], stride=1, padding=0)
    l3 = conv2d(c3, p["lat3_w"], p["lat3_b"], stride=1, padding=0)
    up4 = jnp.repeat(jnp.repeat(l4, 2, axis=1), 2, axis=2)   # nearest 2x
    l3 = l3 + up4
    p4 = conv2d(l4, p["out4_w"], p["out4_b"], stride=1, padding=1)
    p3 = conv2d(l3, p["out3_w"], p["out3_b"], stride=1, padding=1)
    p5 = p4[:, ::2, ::2, :]                                   # LastLevelMaxPool(k=1,s=2)
    return p3, p4, p5


def rpn_head_fused(feats, p):
    """RPN head shared across levels, batched along M and fused: the shared
    3x3 conv+ReLU and the cls||reg 1x1 run as ONE pallas_call (2 dots in VMEM)."""
    cols, shapes = [], []
    for f in feats:
        c, sh = im2col(f, 3, 3, stride=1, padding=1)
        cols.append(c)
        shapes.append(sh)
    cols = jnp.concatenate(cols, axis=0)                        # (sum(B*Hf*Wf), 9*C)
    w_cr = jnp.concatenate([p["rpn_cls_w"].reshape(FPN_CH, NUM_ANCHORS),
                            p["rpn_reg_w"].reshape(FPN_CH, NUM_ANCHORS * 4)], axis=1)
    b_cr = jnp.concatenate([p["rpn_cls_b"], p["rpn_reg_b"]])
    n_cr = NUM_ANCHORS + NUM_ANCHORS * 4
    cr = fused_mlp(
        cols,
        [(p["rpn_conv_w"].reshape(9 * FPN_CH, FPN_CH), p["rpn_conv_b"]),
         (w_cr, b_cr)],
        acts=("relu", "none"), out_dtype=jnp.float32)[:, :n_cr]

    cls_list, reg_list = [], []
    off = 0
    for (n, ho, wo) in shapes:
        rows = n * ho * wo
        blk = cr[off:off + rows]
        off += rows
        cls_list.append(blk[:, :NUM_ANCHORS].reshape(n, ho, wo, NUM_ANCHORS))
        reg_list.append(blk[:, NUM_ANCHORS:].reshape(n, ho, wo, NUM_ANCHORS * 4))
    return cls_list, reg_list


def generate_proposals(cls_list, reg_list, anchors_list, img_size, num_props=8):
    B = cls_list[0].shape[0]
    scores, deltas = [], []
    for cls, reg in zip(cls_list, reg_list):
        _, hf, wf, a = cls.shape
        scores.append(cls.reshape(B, hf * wf * a))
        deltas.append(reg.reshape(B, hf * wf * a, 4))
    scores = jnp.concatenate(scores, axis=1)
    deltas = jnp.concatenate(deltas, axis=1)
    anchors = jnp.concatenate(anchors_list, axis=0)
    boxes = jax.vmap(lambda d: decode_boxes(anchors, d))(deltas)
    boxes = clip_boxes(boxes, img_size)
    obj = jax.nn.sigmoid(scores)
    _, top_idx = jax.lax.top_k(obj, num_props)
    idx = jnp.broadcast_to(top_idx[:, :, None], top_idx.shape + (4,))
    props = jnp.take_along_axis(boxes, idx, axis=1)
    # TODO(synk): RPN NMS and min-size filtering omitted (data-dependent sizes).
    return props                                                # (B, num_props, 4)


# ----------------------------------------------------------------------------
# Gather-free ROI align: bilinear sampling as one MXU GEMM
# ----------------------------------------------------------------------------
def _bilinear_weights(boxes, H, W, spatial_scale, out_size):
    """(B*R*S*S, B*H*W) interpolation matrix built with pure arithmetic (one-hot
    comparisons), so the slow XLA gather disappears."""
    B, R, _ = boxes.shape
    S = out_size
    x1 = boxes[..., 0] * spatial_scale
    y1 = boxes[..., 1] * spatial_scale
    x2 = boxes[..., 2] * spatial_scale
    y2 = boxes[..., 3] * spatial_scale
    steps = (jnp.arange(S, dtype=jnp.float32) + 0.5) / S
    gy = y1[..., None] + steps * (y2 - y1)[..., None]           # (B,R,S)
    gx = x1[..., None] + steps * (x2 - x1)[..., None]           # (B,R,S)
    yy = jnp.broadcast_to(gy[:, :, :, None], (B, R, S, S))
    xx = jnp.broadcast_to(gx[:, :, None, :], (B, R, S, S))
    y0 = jnp.floor(yy - 0.5)
    x0 = jnp.floor(xx - 0.5)
    ly = yy - 0.5 - y0
    lx = xx - 0.5 - x0
    y0i = jnp.clip(y0, 0, H - 1).astype(jnp.int32)
    x0i = jnp.clip(x0, 0, W - 1).astype(jnp.int32)
    y1i = jnp.clip(y0 + 1, 0, H - 1).astype(jnp.int32)
    x1i = jnp.clip(x0 + 1, 0, W - 1).astype(jnp.int32)
    b_off = (jnp.arange(B, dtype=jnp.int32) * (H * W))[:, None, None, None]
    cols = jnp.arange(B * H * W, dtype=jnp.int32)

    def scatter(yi, xi, w):
        idx = b_off + yi * W + xi                               # (B,R,S,S)
        return (idx[..., None] == cols).astype(jnp.float32) * w[..., None]

    Wm = (scatter(y0i, x0i, (1 - ly) * (1 - lx))
          + scatter(y0i, x1i, (1 - ly) * lx)
          + scatter(y1i, x0i, ly * (1 - lx))
          + scatter(y1i, x1i, ly * lx))
    return Wm.reshape(B * R * S * S, B * H * W)


def roi_align_matmul(feat, boxes, spatial_scale, out_size=ROI_SIZE):
    """pooled = W_bilinear @ feat as one Pallas GEMM.  feat:(B,H,W,C) bf16,
    boxes:(B,R,4).  Returns (B*R, S*S*C) bf16 in (S,S,C) flatten order."""
    B, H, W, C = feat.shape
    R = boxes.shape[1]
    S = out_size
    Wm = _bilinear_weights(boxes, H, W, spatial_scale, S)       # (B*R*S*S, B*H*W)
    pooled = pallas_matmul(Wm, feat.reshape(B * H * W, C),
                           act="none", out_dtype=jnp.bfloat16)  # (B*R*S*S, C)
    return pooled.reshape(B * R, S * S * C)                     # contiguous merge


def roi_box_heads(flat, p):
    """TwoMLPHead + FastRCNNPredictor in ONE pallas_call (cls||reg fused on N)."""
    wp = jnp.concatenate([p["cls_w"], p["reg_w"]], axis=1)
    bp = jnp.concatenate([p["cls_b"], p["reg_b"]])
    out = fused_mlp(
        flat,
        [(p["fc6_w"], p["fc6_b"]), (p["fc7_w"], p["fc7_b"]), (wp, bp)],
        acts=("relu", "relu", "none"), out_dtype=jnp.float32)
    n_out = NUM_CLASSES + NUM_CLASSES * 4
    return out[:, :NUM_CLASSES], out[:, NUM_CLASSES:n_out]


def postprocess(props, cls_logits, box_deltas, img_size, topk=5):
    probs = jax.nn.softmax(cls_logits, axis=-1)
    deltas = box_deltas.reshape(-1, NUM_CLASSES, 4)
    boxes = jax.vmap(lambda d: decode_boxes(props, d),
                     in_axes=1, out_axes=1)(deltas)             # (R, C, 4)
    boxes = clip_boxes(boxes, img_size)
    fg_scores = probs[:, 1:].reshape(-1)
    fg_boxes = boxes[:, 1:, :].reshape(-1, 4)
    fg_labels = jnp.tile(jnp.arange(1, NUM_CLASSES), (props.shape[0],))
    top_scores, idx = jax.lax.top_k(fg_scores, topk)
    # TODO(synk): class-wise NMS and vis_threshold filtering omitted
    #             (variable-length outputs have no static Pallas equivalent).
    return {"boxes": fg_boxes[idx],
            "labels": fg_labels[idx],
            "scores": top_scores}


# ----------------------------------------------------------------------------
# Full forward (inference semantics of FasterRCNN mobilenet_v3 320 fpn)
# ----------------------------------------------------------------------------
def faster_rcnn_forward(images_nchw, params, num_props=8):
    # TODO(synk): GeneralizedRCNNTransform (mean/std normalize + resize-to-320)
    #             omitted; equal-size images are stacked directly.
    x = jnp.transpose(images_nchw, (0, 2, 3, 1)).astype(jnp.float32)  # -> NHWC
    B, H, W, _ = x.shape

    # --- backbone (bf16 activations between layers) ---
    c1 = conv2d(x, params["stem_w"], params["stem_b"], stride=2, padding=1, act="hardswish")
    c3 = conv2d(c1, params["b1_w"], params["b1_b"], stride=2, padding=1, act="relu")
    c4 = conv2d(c3, params["b2_w"], params["b2_b"], stride=2, padding=1, act="hardswish")

    # --- FPN ---
    p3, p4, p5 = fpn(c3, c4, params)
    feats = [p3, p4, p5]
    strides = [4, 8, 16]
    sizes = [8.0, 16.0, 32.0]

    # --- RPN (one fused pallas_call across all levels) ---
    cls_list, reg_list = rpn_head_fused(feats, params)
    anchors_list = [make_anchors(f.shape[1], f.shape[2], s, sz)
                    for f, s, sz in zip(feats, strides, sizes)]
    props = generate_proposals(cls_list, reg_list, anchors_list, (H, W),
                               num_props=num_props)              # (B, R, 4)

    # --- ROI heads: gather-free ROI align (GEMM) + one fused box-head kernel ---
    # TODO(synk): multi-level ROI assignment omitted; all ROIs sample level P3.
    flat = roi_align_matmul(p3, props, 1.0 / 4.0)                # (B*R, S*S*C)
    cls_flat, reg_flat = roi_box_heads(flat, params)
    R = props.shape[1]
    cls_logits = cls_flat.reshape(B, R, NUM_CLASSES)
    box_deltas = reg_flat.reshape(B, R, NUM_CLASSES * 4)

    results = []
    for i in range(B):
        results.append(postprocess(props[i], cls_logits[i], box_deltas[i], (H, W)))
    return results


if __name__ == "__main__":
    key = jax.random.PRNGKey(0)
    # List[Tensor] of equal-size images (batch=2, 3x32x32), NCHW like PyTorch.
    images = jax.random.uniform(key, (2, 3, 32, 32), jnp.float32)
    params = init_params()
    forward = jax.jit(functools.partial(faster_rcnn_forward, num_props=8))
    results = forward(images, params)
    results = jax.block_until_ready(results)
    assert results[0]["boxes"].shape == (5, 4)
    assert results[0]["scores"].shape == (5,)
    assert results[0]["labels"].shape == (5,)
    print("KERNEL_OK")
</pallas_src>

<mosaic_0001>
module attributes {stable_mosaic.version = 11 : i64} {
  func.func @_mm_single_k_kernel(%arg0: i32, %arg1: i32, %arg2: memref<256x128xbf16, #tpu.memory_space<vmem>>, %arg3: memref<128x128xbf16, #tpu.memory_space<vmem>>, %arg4: memref<1x128xf32, #tpu.memory_space<vmem>>, %arg5: memref<256x128xbf16, #tpu.memory_space<vmem>>) attributes {dimension_semantics = [#tpu.dimension_semantics<parallel>, #tpu.dimension_semantics<parallel>], iteration_bounds = array<i64: 2, 1>, scalar_prefetch = 0 : i64, scratch_operands = 0 : i64, tpu.core_type = #tpu.core_type<tc>, window_params = [{transform_indices = @transform_0, window_bounds = array<i64: 256, 128>}, {transform_indices = @transform_1, window_bounds = array<i64: 128, 128>}, {transform_indices = @transform_2, window_bounds = array<i64: 1, 128>}, {transform_indices = @transform_3, window_bounds = array<i64: 256, 128>}]} {
    %c0 = arith.constant 0 : index
    %c0_0 = arith.constant 0 : index
    %0 = vector.load %arg2[%c0, %c0_0] : memref<256x128xbf16, #tpu.memory_space<vmem>>, vector<256x128xbf16>
    %c0_1 = arith.constant 0 : index
    %c0_2 = arith.constant 0 : index
    %1 = vector.load %arg3[%c0_1, %c0_2] : memref<128x128xbf16, #tpu.memory_space<vmem>>, vector<128x128xbf16>
    %cst = arith.constant dense<0.000000e+00> : vector<256x128xf32>
    %2 = tpu.matmul %0, %1, %cst {dimension_numbers = #tpu.dot_dimension_numbers<[1], [0], [0], [1], [0, 0, 1, 1], [], []>} : vector<256x128xbf16>, vector<128x128xbf16>, vector<256x128xf32> -> vector<256x128xf32>
    %c0_3 = arith.constant 0 : index
    %c0_4 = arith.constant 0 : index
    %3 = vector.load %arg4[%c0_3, %c0_4] : memref<1x128xf32, #tpu.memory_space<vmem>>, vector<1x128xf32>
    %4 = vector.broadcast %3 : vector<1x128xf32> to vector<256x128xf32>
    %5 = arith.addf %2, %4 : vector<256x128xf32>
    %cst_5 = arith.constant 3.000000e+00 : f32
    %6 = vector.broadcast %cst_5 : f32 to vector<256x128xf32>
    %7 = arith.addf %5, %6 : vector<256x128xf32>
    %cst_6 = arith.constant 0.000000e+00 : f32
    %cst_7 = arith.constant 6.000000e+00 : f32
    %8 = vector.broadcast %cst_6 : f32 to vector<256x128xf32>
    %9 = arith.maximumf %8, %7 : vector<256x128xf32>
    %10 = vector.broadcast %cst_7 : f32 to vector<256x128xf32>
    %11 = arith.minimumf %10, %9 : vector<256x128xf32>
    %12 = arith.mulf %5, %11 : vector<256x128xf32>
    %cst_8 = arith.constant 0.166666672 : f32
    %13 = vector.broadcast %cst_8 : f32 to vector<256x128xf32>
    %14 = arith.mulf %12, %13 : vector<256x128xf32>
    %15 = arith.truncf %14 : vector<256x128xf32> to vector<256x128xbf16>
    %c0_9 = arith.constant 0 : index
    %c0_10 = arith.constant 0 : index
    %16 = vector.load %arg5[%c0_9, %c0_10] : memref<256x128xbf16, #tpu.memory_space<vmem>>, vector<256x128xbf16>
    tpu.vector_store %arg5[%c0_9, %c0_10], %15 {strides = array<i32>} : memref<256x128xbf16, #tpu.memory_space<vmem>>, vector<256x128xbf16>,
    return
  }
  func.func @transform_0(%arg0: i32, %arg1: i32) -> (i32, i32) {
    %c0_i32 = arith.constant 0 : i32
    %c0_i32_0 = arith.constant 0 : i32
    return %arg0, %c0_i32 : i32, i32
  }
  func.func @transform_1(%arg0: i32, %arg1: i32) -> (i32, i32) {
    %c0_i32 = arith.constant 0 : i32
    %c0_i32_0 = arith.constant 0 : i32
    return %c0_i32, %arg1 : i32, i32
  }
  func.func @transform_2(%arg0: i32, %arg1: i32) -> (i32, i32) {
    %c0_i32 = arith.constant 0 : i32
    %c0_i32_0 = arith.constant 0 : i32
    return %c0_i32, %arg1 : i32, i32
  }
  func.func @transform_3(%arg0: i32, %arg1: i32) -> (i32, i32) {
    %c0_i32 = arith.constant 0 : i32
    return %arg0, %arg1 : i32, i32
  }
}

module attributes {stable_mosaic.version = 11 : i64} {
  func.func @_mm_single_k_kernel(%arg0: i32, %arg1: i32, %arg2: memref<128x256xbf16, #tpu.memory_space<vmem>>, %arg3: memref<256x128xbf16, #tpu.memory_space<vmem>>, %arg4: memref<1x128xf32, #tpu.memory_space<vmem>>, %arg5: memref<128x128xbf16, #tpu.memory_space<vmem>>) attributes {dimension_semantics = [#tpu.dimension_semantics<parallel>, #tpu.dimension_semantics<parallel>], iteration_bounds = array<i64: 1, 1>, scalar_prefetch = 0 : i64, scratch_operands = 0 : i64, tpu.core_type = #tpu.core_type<tc>, window_params = [{transform_indices = @transform_0, window_bounds = array<i64: 128, 256>}, {transform_indices = @transform_1, window_bounds = array<i64: 256, 128>}, {transform_indices = @transform_2, window_bounds = array<i64: 1, 128>}, {transform_indices = @transform_3, window_bounds = array<i64: 128, 128>}]} {
    %c0 = arith.constant 0 : index
    %c0_0 = arith.constant 0 : index
    %0 = vector.load %arg2[%c0, %c0_0] : memref<128x256xbf16, #tpu.memory_space<vmem>>, vector<128x256xbf16>
    %c0_1 = arith.constant 0 : index
    %c0_2 = arith.constant 0 : index
    %1 = vector.load %arg3[%c0_1, %c0_2] : memref<256x128xbf16, #tpu.memory_space<vmem>>, vector<256x128xbf16>
    %cst = arith.constant dense<0.000000e+00> : vector<128x128xf32>
    %2 = tpu.matmul %0, %1, %cst {dimension_numbers = #tpu.dot_dimension_numbers<[1], [0], [0], [1], [0, 0, 1, 1], [], []>} : vector<128x256xbf16>, vector<256x128xbf16>, vector<128x128xf32> -> vector<128x128xf32>
    %c0_3 = arith.constant 0 : index
    %c0_4 = arith.constant 0 : index
    %3 = vector.load %arg4[%c0_3, %c0_4] : memref<1x128xf32, #tpu.memory_space<vmem>>, vector<1x128xf32>
    %4 = vector.broadcast %3 : vector<1x128xf32> to vector<128x128xf32>
    %5 = arith.addf %2, %4 : vector<128x128xf32>
    %cst_5 = arith.constant 0.000000e+00 : f32
    %6 = vector.broadcast %cst_5 : f32 to vector<128x128xf32>
    %7 = arith.maximumf %5, %6 : vector<128x128xf32>
    %8 = arith.truncf %7 : vector<128x128xf32> to vector<128x128xbf16>
    %c0_6 = arith.constant 0 : index
    %c0_7 = arith.constant 0 : index
    %9 = vector.load %arg5[%c0_6, %c0_7] : memref<128x128xbf16, #tpu.memory_space<vmem>>, vector<128x128xbf16>
    tpu.vector_store %arg5[%c0_6, %c0_7], %8 {strides = array<i32>} : memref<128x128xbf16, #tpu.memory_space<vmem>>, vector<128x128xbf16>,
    return
  }
  func.func @transform_0(%arg0: i32, %arg1: i32) -> (i32, i32) {
    %c0_i32 = arith.constant 0 : i32
    %c0_i32_0 = arith.constant 0 : i32
    return %arg0, %c0_i32 : i32, i32
  }
  func.func @transform_1(%arg0: i32, %arg1: i32) -> (i32, i32) {
    %c0_i32 = arith.constant 0 : i32
    %c0_i32_0 = arith.constant 0 : i32
    return %c0_i32, %arg1 : i32, i32
  }
  func.func @transform_2(%arg0: i32, %arg1: i32) -> (i32, i32) {
    %c0_i32 = arith.constant 0 : i32
    %c0_i32_0 = arith.constant 0 : i32
    return %c0_i32, %arg1 : i32, i32
  }
  func.func @transform_3(%arg0: i32, %arg1: i32) -> (i32, i32) {
    %c0_i32 = arith.constant 0 : i32
    return %arg0, %arg1 : i32, i32
  }
}

module attributes {stable_mosaic.version = 11 : i64} {
  func.func @_mm_single_k_kernel(%arg0: i32, %arg1: i32, %arg2: memref<32x256xbf16, #tpu.memory_space<vmem>>, %arg3: memref<256x128xbf16, #tpu.memory_space<vmem>>, %arg4: memref<1x128xf32, #tpu.memory_space<vmem>>, %arg5: memref<32x128xbf16, #tpu.memory_space<vmem>>) attributes {dimension_semantics = [#tpu.dimension_semantics<parallel>, #tpu.dimension_semantics<parallel>], iteration_bounds = array<i64: 1, 1>, scalar_prefetch = 0 : i64, scratch_operands = 0 : i64, tpu.core_type = #tpu.core_type<tc>, window_params = [{transform_indices = @transform_0, window_bounds = array<i64: 32, 256>}, {transform_indices = @transform_1, window_bounds = array<i64: 256, 128>}, {transform_indices = @transform_2, window_bounds = array<i64: 1, 128>}, {transform_indices = @transform_3, window_bounds = array<i64: 32, 128>}]} {
    %c0 = arith.constant 0 : index
    %c0_0 = arith.constant 0 : index
    %0 = vector.load %arg2[%c0, %c0_0] : memref<32x256xbf16, #tpu.memory_space<vmem>>, vector<32x256xbf16>
    %c0_1 = arith.constant 0 : index
    %c0_2 = arith.constant 0 : index
    %1 = vector.load %arg3[%c0_1, %c0_2] : memref<256x128xbf16, #tpu.memory_space<vmem>>, vector<256x128xbf16>
    %cst = arith.constant dense<0.000000e+00> : vector<32x128xf32>
    %2 = tpu.matmul %0, %1, %cst {dimension_numbers = #tpu.dot_dimension_numbers<[1], [0], [0], [1], [0, 0, 1, 1], [], []>} : vector<32x256xbf16>, vector<256x128xbf16>, vector<32x128xf32> -> vector<32x128xf32>
    %c0_3 = arith.constant 0 : index
    %c0_4 = arith.constant 0 : index
    %3 = vector.load %arg4[%c0_3, %c0_4] : memref<1x128xf32, #tpu.memory_space<vmem>>, vector<1x128xf32>
    %4 = vector.broadcast %3 : vector<1x128xf32> to vector<32x128xf32>
    %5 = arith.addf %2, %4 : vector<32x128xf32>
    %cst_5 = arith.constant 3.000000e+00 : f32
    %6 = vector.broadcast %cst_5 : f32 to vector<32x128xf32>
    %7 = arith.addf %5, %6 : vector<32x128xf32>
    %cst_6 = arith.constant 0.000000e+00 : f32
    %cst_7 = arith.constant 6.000000e+00 : f32
    %8 = vector.broadcast %cst_6 : f32 to vector<32x128xf32>
    %9 = arith.maximumf %8, %7 : vector<32x128xf32>
    %10 = vector.broadcast %cst_7 : f32 to vector<32x128xf32>
    %11 = arith.minimumf %10, %9 : vector<32x128xf32>
    %12 = arith.mulf %5, %11 : vector<32x128xf32>
    %cst_8 = arith.constant 0.166666672 : f32
    %13 = vector.broadcast %cst_8 : f32 to vector<32x128xf32>
    %14 = arith.mulf %12, %13 : vector<32x128xf32>
    %15 = arith.truncf %14 : vector<32x128xf32> to vector<32x128xbf16>
    %c0_9 = arith.constant 0 : index
    %c0_10 = arith.constant 0 : index
    %16 = vector.load %arg5[%c0_9, %c0_10] : memref<32x128xbf16, #tpu.memory_space<vmem>>, vector<32x128xbf16>
    tpu.vector_store %arg5[%c0_9, %c0_10], %15 {strides = array<i32>} : memref<32x128xbf16, #tpu.memory_space<vmem>>, vector<32x128xbf16>,
    return
  }
  func.func @transform_0(%arg0: i32, %arg1: i32) -> (i32, i32) {
    %c0_i32 = arith.constant 0 : i32
    %c0_i32_0 = arith.constant 0 : i32
    return %arg0, %c0_i32 : i32, i32
  }
  func.func @transform_1(%arg0: i32, %arg1: i32) -> (i32, i32) {
    %c0_i32 = arith.constant 0 : i32
    %c0_i32_0 = arith.constant 0 : i32
    return %c0_i32, %arg1 : i32, i32
  }
  func.func @transform_2(%arg0: i32, %arg1: i32) -> (i32, i32) {
    %c0_i32 = arith.constant 0 : i32
    %c0_i32_0 = arith.constant 0 : i32
    return %c0_i32, %arg1 : i32, i32
  }
  func.func @transform_3(%arg0: i32, %arg1: i32) -> (i32, i32) {
    %c0_i32 = arith.constant 0 : i32
    return %arg0, %arg1 : i32, i32
  }
}

module attributes {stable_mosaic.version = 11 : i64} {
  func.func @_mm_single_k_kernel(%arg0: i32, %arg1: i32, %arg2: memref<32x128xbf16, #tpu.memory_space<vmem>>, %arg3: memref<128x128xbf16, #tpu.memory_space<vmem>>, %arg4: memref<1x128xf32, #tpu.memory_space<vmem>>, %arg5: memref<32x128xbf16, #tpu.memory_space<vmem>>) attributes {dimension_semantics = [#tpu.dimension_semantics<parallel>, #tpu.dimension_semantics<parallel>], iteration_bounds = array<i64: 1, 1>, scalar_prefetch = 0 : i64, scratch_operands = 0 : i64, tpu.core_type = #tpu.core_type<tc>, window_params = [{transform_indices = @transform_0, window_bounds = array<i64: 32, 128>}, {transform_indices = @transform_1, window_bounds = array<i64: 128, 128>}, {transform_indices = @transform_2, window_bounds = array<i64: 1, 128>}, {transform_indices = @transform_3, window_bounds = array<i64: 32, 128>}]} {
    %c0 = arith.constant 0 : index
    %c0_0 = arith.constant 0 : index
    %0 = vector.load %arg2[%c0, %c0_0] : memref<32x128xbf16, #tpu.memory_space<vmem>>, vector<32x128xbf16>
    %c0_1 = arith.constant 0 : index
    %c0_2 = arith.constant 0 : index
    %1 = vector.load %arg3[%c0_1, %c0_2] : memref<128x128xbf16, #tpu.memory_space<vmem>>, vector<128x128xbf16>
    %cst = arith.constant dense<0.000000e+00> : vector<32x128xf32>
    %2 = tpu.matmul %0, %1, %cst {dimension_numbers = #tpu.dot_dimension_numbers<[1], [0], [0], [1], [0, 0, 1, 1], [], []>} : vector<32x128xbf16>, vector<128x128xbf16>, vector<32x128xf32> -> vector<32x128xf32>
    %c0_3 = arith.constant 0 : index
    %c0_4 = arith.constant 0 : index
    %3 = vector.load %arg4[%c0_3, %c0_4] : memref<1x128xf32, #tpu.memory_space<vmem>>, vector<1x128xf32>
    %4 = vector.broadcast %3 : vector<1x128xf32> to vector<32x128xf32>
    %5 = arith.addf %2, %4 : vector<32x128xf32>
    %6 = arith.truncf %5 : vector<32x128xf32> to vector<32x128xbf16>
    %c0_5 = arith.constant 0 : index
    %c0_6 = arith.constant 0 : index
    %7 = vector.load %arg5[%c0_5, %c0_6] : memref<32x128xbf16, #tpu.memory_space<vmem>>, vector<32x128xbf16>
    tpu.vector_store %arg5[%c0_5, %c0_6], %6 {strides = array<i32>} : memref<32x128xbf16, #tpu.memory_space<vmem>>, vector<32x128xbf16>,
    return
  }
  func.func @transform_0(%arg0: i32, %arg1: i32) -> (i32, i32) {
    %c0_i32 = arith.constant 0 : i32
    %c0_i32_0 = arith.constant 0 : i32
    return %arg0, %c0_i32 : i32, i32
  }
  func.func @transform_1(%arg0: i32, %arg1: i32) -> (i32, i32) {
    %c0_i32 = arith.constant 0 : i32
    %c0_i32_0 = arith.constant 0 : i32
    return %c0_i32, %arg1 : i32, i32
  }
  func.func @transform_2(%arg0: i32, %arg1: i32) -> (i32, i32) {
    %c0_i32 = arith.constant 0 : i32
    %c0_i32_0 = arith.constant 0 : i32
    return %c0_i32, %arg1 : i32, i32
  }
  func.func @transform_3(%arg0: i32, %arg1: i32) -> (i32, i32) {
    %c0_i32 = arith.constant 0 : i32
    return %arg0, %arg1 : i32, i32
  }
}

module attributes {stable_mosaic.version = 11 : i64} {
  func.func @_mm_single_k_kernel(%arg0: i32, %arg1: i32, %arg2: memref<128x128xbf16, #tpu.memory_space<vmem>>, %arg3: memref<128x128xbf16, #tpu.memory_space<vmem>>, %arg4: memref<1x128xf32, #tpu.memory_space<vmem>>, %arg5: memref<128x128xbf16, #tpu.memory_space<vmem>>) attributes {dimension_semantics = [#tpu.dimension_semantics<parallel>, #tpu.dimension_semantics<parallel>], iteration_bounds = array<i64: 1, 1>, scalar_prefetch = 0 : i64, scratch_operands = 0 : i64, tpu.core_type = #tpu.core_type<tc>, window_params = [{transform_indices = @transform_0, window_bounds = array<i64: 128, 128>}, {transform_indices = @transform_1, window_bounds = array<i64: 128, 128>}, {transform_indices = @transform_2, window_bounds = array<i64: 1, 128>}, {transform_indices = @transform_3, window_bounds = array<i64: 128, 128>}]} {
    %c0 = arith.constant 0 : index
    %c0_0 = arith.constant 0 : index
    %0 = vector.load %arg2[%c0, %c0_0] : memref<128x128xbf16, #tpu.memory_space<vmem>>, vector<128x128xbf16>
    %c0_1 = arith.constant 0 : index
    %c0_2 = arith.constant 0 : index
    %1 = vector.load %arg3[%c0_1, %c0_2] : memref<128x128xbf16, #tpu.memory_space<vmem>>, vector<128x128xbf16>
    %cst = arith.constant dense<0.000000e+00> : vector<128x128xf32>
    %2 = tpu.matmul %0, %1, %cst {dimension_numbers = #tpu.dot_dimension_numbers<[1], [0], [0], [1], [0, 0, 1, 1], [], []>} : vector<128x128xbf16>, vector<128x128xbf16>, vector<128x128xf32> -> vector<128x128xf32>
    %c0_3 = arith.constant 0 : index
    %c0_4 = arith.constant 0 : index
    %3 = vector.load %arg4[%c0_3, %c0_4] : memref<1x128xf32, #tpu.memory_space<vmem>>, vector<1x128xf32>
    %4 = vector.broadcast %3 : vector<1x128xf32> to vector<128x128xf32>
    %5 = arith.addf %2, %4 : vector<128x128xf32>
    %6 = arith.truncf %5 : vector<128x128xf32> to vector<128x128xbf16>
    %c0_5 = arith.constant 0 : index
    %c0_6 = arith.constant 0 : index
    %7 = vector.load %arg5[%c0_5, %c0_6] : memref<128x128xbf16, #tpu.memory_space<vmem>>, vector<128x128xbf16>
    tpu.vector_store %arg5[%c0_5, %c0_6], %6 {strides = array<i32>} : memref<128x128xbf16, #tpu.memory_space<vmem>>, vector<128x128xbf16>,
    return
  }
  func.func @transform_0(%arg0: i32, %arg1: i32) -> (i32, i32) {
    %c0_i32 = arith.constant 0 : i32
    %c0_i32_0 = arith.constant 0 : i32
    return %arg0, %c0_i32 : i32, i32
  }
  func.func @transform_1(%arg0: i32, %arg1: i32) -> (i32, i32) {
    %c0_i32 = arith.constant 0 : i32
    %c0_i32_0 = arith.constant 0 : i32
    return %c0_i32, %arg1 : i32, i32
  }
  func.func @transform_2(%arg0: i32, %arg1: i32) -> (i32, i32) {
    %c0_i32 = arith.constant 0 : i32
    %c0_i32_0 = arith.constant 0 : i32
    return %c0_i32, %arg1 : i32, i32
  }
  func.func @transform_3(%arg0: i32, %arg1: i32) -> (i32, i32) {
    %c0_i32 = arith.constant 0 : i32
    return %arg0, %arg1 : i32, i32
  }
}

module attributes {stable_mosaic.version = 11 : i64} {
  func.func @_mm_single_k_kernel(%arg0: i32, %arg1: i32, %arg2: memref<128x384xbf16, #tpu.memory_space<vmem>>, %arg3: memref<384x128xbf16, #tpu.memory_space<vmem>>, %arg4: memref<1x128xf32, #tpu.memory_space<vmem>>, %arg5: memref<128x128xbf16, #tpu.memory_space<vmem>>) attributes {dimension_semantics = [#tpu.dimension_semantics<parallel>, #tpu.dimension_semantics<parallel>], iteration_bounds = array<i64: 1, 1>, scalar_prefetch = 0 : i64, scratch_operands = 0 : i64, tpu.core_type = #tpu.core_type<tc>, window_params = [{transform_indices = @transform_0, window_bounds = array<i64: 128, 384>}, {transform_indices = @transform_1, window_bounds = array<i64: 384, 128>}, {transform_indices = @transform_2, window_bounds = array<i64: 1, 128>}, {transform_indices = @transform_3, window_bounds = array<i64: 128, 128>}]} {
    %c0 = arith.constant 0 : index
    %c0_0 = arith.constant 0 : index
    %0 = vector.load %arg2[%c0, %c0_0] : memref<128x384xbf16, #tpu.memory_space<vmem>>, vector<128x384xbf16>
    %c0_1 = arith.constant 0 : index
    %c0_2 = arith.constant 0 : index
    %1 = vector.load %arg3[%c0_1, %c0_2] : memref<384x128xbf16, #tpu.memory_space<vmem>>, vector<384x128xbf16>
    %cst = arith.constant dense<0.000000e+00> : vector<128x128xf32>
    %2 = tpu.matmul %0, %1, %cst {dimension_numbers = #tpu.dot_dimension_numbers<[1], [0], [0], [1], [0, 0, 1, 1], [], []>} : vector<128x384xbf16>, vector<384x128xbf16>, vector<128x128xf32> -> vector<128x128xf32>
    %c0_3 = arith.constant 0 : index
    %c0_4 = arith.constant 0 : index
    %3 = vector.load %arg4[%c0_3, %c0_4] : memref<1x128xf32, #tpu.memory_space<vmem>>, vector<1x128xf32>
    %4 = vector.broadcast %3 : vector<1x128xf32> to vector<128x128xf32>
    %5 = arith.addf %2, %4 : vector<128x128xf32>
    %6 = arith.truncf %5 : vector<128x128xf32> to vector<128x128xbf16>
    %c0_5 = arith.constant 0 : index
    %c0_6 = arith.constant 0 : index
    %7 = vector.load %arg5[%c0_5, %c0_6] : memref<128x128xbf16, #tpu.memory_space<vmem>>, vector<128x128xbf16>
    tpu.vector_store %arg5[%c0_5, %c0_6], %6 {strides = array<i32>} : memref<128x128xbf16, #tpu.memory_space<vmem>>, vector<128x128xbf16>,
    return
  }
  func.func @transform_0(%arg0: i32, %arg1: i32) -> (i32, i32) {
    %c0_i32 = arith.constant 0 : i32
    %c0_i32_0 = arith.constant 0 : i32
    return %arg0, %c0_i32 : i32, i32
  }
  func.func @transform_1(%arg0: i32, %arg1: i32) -> (i32, i32) {
    %c0_i32 = arith.constant 0 : i32
    %c0_i32_0 = arith.constant 0 : i32
    return %c0_i32, %arg1 : i32, i32
  }
  func.func @transform_2(%arg0: i32, %arg1: i32) -> (i32, i32) {
    %c0_i32 = arith.constant 0 : i32
    %c0_i32_0 = arith.constant 0 : i32
    return %c0_i32, %arg1 : i32, i32
  }
  func.func @transform_3(%arg0: i32, %arg1: i32) -> (i32, i32) {
    %c0_i32 = arith.constant 0 : i32
    return %arg0, %arg1 : i32, i32
  }
}

module attributes {stable_mosaic.version = 11 : i64} {
  func.func @_mm_single_k_kernel(%arg0: i32, %arg1: i32, %arg2: memref<32x384xbf16, #tpu.memory_space<vmem>>, %arg3: memref<384x128xbf16, #tpu.memory_space<vmem>>, %arg4: memref<1x128xf32, #tpu.memory_space<vmem>>, %arg5: memref<32x128xbf16, #tpu.memory_space<vmem>>) attributes {dimension_semantics = [#tpu.dimension_semantics<parallel>, #tpu.dimension_semantics<parallel>], iteration_bounds = array<i64: 1, 1>, scalar_prefetch = 0 : i64, scratch_operands = 0 : i64, tpu.core_type = #tpu.core_type<tc>, window_params = [{transform_indices = @transform_0, window_bounds = array<i64: 32, 384>}, {transform_indices = @transform_1, window_bounds = array<i64: 384, 128>}, {transform_indices = @transform_2, window_bounds = array<i64: 1, 128>}, {transform_indices = @transform_3, window_bounds = array<i64: 32, 128>}]} {
    %c0 = arith.constant 0 : index
    %c0_0 = arith.constant 0 : index
    %0 = vector.load %arg2[%c0, %c0_0] : memref<32x384xbf16, #tpu.memory_space<vmem>>, vector<32x384xbf16>
    %c0_1 = arith.constant 0 : index
    %c0_2 = arith.constant 0 : index
    %1 = vector.load %arg3[%c0_1, %c0_2] : memref<384x128xbf16, #tpu.memory_space<vmem>>, vector<384x128xbf16>
    %cst = arith.constant dense<0.000000e+00> : vector<32x128xf32>
    %2 = tpu.matmul %0, %1, %cst {dimension_numbers = #tpu.dot_dimension_numbers<[1], [0], [0], [1], [0, 0, 1, 1], [], []>} : vector<32x384xbf16>, vector<384x128xbf16>, vector<32x128xf32> -> vector<32x128xf32>
    %c0_3 = arith.constant 0 : index
    %c0_4 = arith.constant 0 : index
    %3 = vector.load %arg4[%c0_3, %c0_4] : memref<1x128xf32, #tpu.memory_space<vmem>>, vector<1x128xf32>
    %4 = vector.broadcast %3 : vector<1x128xf32> to vector<32x128xf32>
    %5 = arith.addf %2, %4 : vector<32x128xf32>
    %6 = arith.truncf %5 : vector<32x128xf32> to vector<32x128xbf16>
    %c0_5 = arith.constant 0 : index
    %c0_6 = arith.constant 0 : index
    %7 = vector.load %arg5[%c0_5, %c0_6] : memref<32x128xbf16, #tpu.memory_space<vmem>>, vector<32x128xbf16>
    tpu.vector_store %arg5[%c0_5, %c0_6], %6 {strides = array<i32>} : memref<32x128xbf16, #tpu.memory_space<vmem>>, vector<32x128xbf16>,
    return
  }
  func.func @transform_0(%arg0: i32, %arg1: i32) -> (i32, i32) {
    %c0_i32 = arith.constant 0 : i32
    %c0_i32_0 = arith.constant 0 : i32
    return %arg0, %c0_i32 : i32, i32
  }
  func.func @transform_1(%arg0: i32, %arg1: i32) -> (i32, i32) {
    %c0_i32 = arith.constant 0 : i32
    %c0_i32_0 = arith.constant 0 : i32
    return %c0_i32, %arg1 : i32, i32
  }
  func.func @transform_2(%arg0: i32, %arg1: i32) -> (i32, i32) {
    %c0_i32 = arith.constant 0 : i32
    %c0_i32_0 = arith.constant 0 : i32
    return %c0_i32, %arg1 : i32, i32
  }
  func.func @transform_3(%arg0: i32, %arg1: i32) -> (i32, i32) {
    %c0_i32 = arith.constant 0 : i32
    return %arg0, %arg1 : i32, i32
  }
}

module attributes {stable_mosaic.version = 11 : i64} {
  func.func @_fused_mlp_kernel(%arg0: memref<176x384xbf16, #tpu.memory_space<vmem>>, %arg1: memref<384x128xbf16, #tpu.memory_space<vmem>>, %arg2: memref<1x128xf32, #tpu.memory_space<vmem>>, %arg3: memref<128x128xbf16, #tpu.memory_space<vmem>>, %arg4: memref<1x128xf32, #tpu.memory_space<vmem>>, %arg5: memref<176x128xf32, #tpu.memory_space<vmem>>) attributes {dimension_semantics = [], scalar_prefetch = 0 : i64, scratch_operands = 0 : i64, tpu.core_type = #tpu.core_type<tc>} {
    %c0 = arith.constant 0 : index
    %c0_0 = arith.constant 0 : index
    %0 = vector.load %arg0[%c0, %c0_0] : memref<176x384xbf16, #tpu.memory_space<vmem>>, vector<176x384xbf16>
    %c0_1 = arith.constant 0 : index
    %c0_2 = arith.constant 0 : index
    %1 = vector.load %arg1[%c0_1, %c0_2] : memref<384x128xbf16, #tpu.memory_space<vmem>>, vector<384x128xbf16>
    %c0_3 = arith.constant 0 : index
    %c0_4 = arith.constant 0 : index
    %2 = vector.load %arg2[%c0_3, %c0_4] : memref<1x128xf32, #tpu.memory_space<vmem>>, vector<1x128xf32>
    %cst = arith.constant dense<0.000000e+00> : vector<176x128xf32>
    %3 = tpu.matmul %0, %1, %cst {dimension_numbers = #tpu.dot_dimension_numbers<[1], [0], [0], [1], [0, 0, 1, 1], [], []>} : vector<176x384xbf16>, vector<384x128xbf16>, vector<176x128xf32> -> vector<176x128xf32>
    %4 = vector.broadcast %2 : vector<1x128xf32> to vector<176x128xf32>
    %5 = arith.addf %3, %4 : vector<176x128xf32>
    %cst_5 = arith.constant 0.000000e+00 : f32
    %6 = vector.broadcast %cst_5 : f32 to vector<176x128xf32>
    %7 = arith.maximumf %5, %6 : vector<176x128xf32>
    %8 = arith.truncf %7 : vector<176x128xf32> to vector<176x128xbf16>
    %c0_6 = arith.constant 0 : index
    %c0_7 = arith.constant 0 : index
    %9 = vector.load %arg3[%c0_6, %c0_7] : memref<128x128xbf16, #tpu.memory_space<vmem>>, vector<128x128xbf16>
    %c0_8 = arith.constant 0 : index
    %c0_9 = arith.constant 0 : index
    %10 = vector.load %arg4[%c0_8, %c0_9] : memref<1x128xf32, #tpu.memory_space<vmem>>, vector<1x128xf32>
    %cst_10 = arith.constant dense<0.000000e+00> : vector<176x128xf32>
    %11 = tpu.matmul %8, %9, %cst_10 {dimension_numbers = #tpu.dot_dimension_numbers<[1], [0], [0], [1], [0, 0, 1, 1], [], []>} : vector<176x128xbf16>, vector<128x128xbf16>, vector<176x128xf32> -> vector<176x128xf32>
    %12 = vector.broadcast %10 : vector<1x128xf32> to vector<176x128xf32>
    %13 = arith.addf %11, %12 : vector<176x128xf32>
    %c0_11 = arith.constant 0 : index
    %c0_12 = arith.constant 0 : index
    %14 = vector.load %arg5[%c0_11, %c0_12] : memref<176x128xf32, #tpu.memory_space<vmem>>, vector<176x128xf32>
    tpu.vector_store %arg5[%c0_11, %c0_12], %13 {strides = array<i32>} : memref<176x128xf32, #tpu.memory_space<vmem>>, vector<176x128xf32>,
    return
  }
}

module attributes {stable_mosaic.version = 11 : i64} {
  func.func @_mm_single_k_kernel(%arg0: i32, %arg1: i32, %arg2: memref<400x128xbf16, #tpu.memory_space<vmem>>, %arg3: memref<128x128xbf16, #tpu.memory_space<vmem>>, %arg4: memref<1x128xf32, #tpu.memory_space<vmem>>, %arg5: memref<400x128xbf16, #tpu.memory_space<vmem>>) attributes {dimension_semantics = [#tpu.dimension_semantics<parallel>, #tpu.dimension_semantics<parallel>], iteration_bounds = array<i64: 2, 1>, scalar_prefetch = 0 : i64, scratch_operands = 0 : i64, tpu.core_type = #tpu.core_type<tc>, window_params = [{transform_indices = @transform_0, window_bounds = array<i64: 400, 128>}, {transform_indices = @transform_1, window_bounds = array<i64: 128, 128>}, {transform_indices = @transform_2, window_bounds = array<i64: 1, 128>}, {transform_indices = @transform_3, window_bounds = array<i64: 400, 128>}]} {
    %c0 = arith.constant 0 : index
    %c0_0 = arith.constant 0 : index
    %0 = vector.load %arg2[%c0, %c0_0] : memref<400x128xbf16, #tpu.memory_space<vmem>>, vector<400x128xbf16>
    %c0_1 = arith.constant 0 : index
    %c0_2 = arith.constant 0 : index
    %1 = vector.load %arg3[%c0_1, %c0_2] : memref<128x128xbf16, #tpu.memory_space<vmem>>, vector<128x128xbf16>
    %cst = arith.constant dense<0.000000e+00> : vector<400x128xf32>
    %2 = tpu.matmul %0, %1, %cst {dimension_numbers = #tpu.dot_dimension_numbers<[1], [0], [0], [1], [0, 0, 1, 1], [], []>} : vector<400x128xbf16>, vector<128x128xbf16>, vector<400x128xf32> -> vector<400x128xf32>
    %c0_3 = arith.constant 0 : index
    %c0_4 = arith.constant 0 : index
    %3 = vector.load %arg4[%c0_3, %c0_4] : memref<1x128xf32, #tpu.memory_space<vmem>>, vector<1x128xf32>
    %4 = vector.broadcast %3 : vector<1x128xf32> to vector<400x128xf32>
    %5 = arith.addf %2, %4 : vector<400x128xf32>
    %6 = arith.truncf %5 : vector<400x128xf32> to vector<400x128xbf16>
    %c0_5 = arith.constant 0 : index
    %c0_6 = arith.constant 0 : index
    %7 = vector.load %arg5[%c0_5, %c0_6] : memref<400x128xbf16, #tpu.memory_space<vmem>>, vector<400x128xbf16>
    tpu.vector_store %arg5[%c0_5, %c0_6], %6 {strides = array<i32>} : memref<400x128xbf16, #tpu.memory_space<vmem>>, vector<400x128xbf16>,
    return
  }
  func.func @transform_0(%arg0: i32, %arg1: i32) -> (i32, i32) {
    %c0_i32 = arith.constant 0 : i32
    %c0_i32_0 = arith.constant 0 : i32
    return %arg0, %c0_i32 : i32, i32
  }
  func.func @transform_1(%arg0: i32, %arg1: i32) -> (i32, i32) {
    %c0_i32 = arith.constant 0 : i32
    %c0_i32_0 = arith.constant 0 : i32
    return %c0_i32, %arg1 : i32, i32
  }
  func.func @transform_2(%arg0: i32, %arg1: i32) -> (i32, i32) {
    %c0_i32 = arith.constant 0 : i32
    %c0_i32_0 = arith.constant 0 : i32
    return %c0_i32, %arg1 : i32, i32
  }
  func.func @transform_3(%arg0: i32, %arg1: i32) -> (i32, i32) {
    %c0_i32 = arith.constant 0 : i32
    return %arg0, %arg1 : i32, i32
  }
}

module attributes {stable_mosaic.version = 11 : i64} {
  func.func @_fused_mlp_kernel(%arg0: memref<16x1664xbf16, #tpu.memory_space<vmem>>, %arg1: memref<1664x128xbf16, #tpu.memory_space<vmem>>, %arg2: memref<1x128xf32, #tpu.memory_space<vmem>>, %arg3: memref<128x128xbf16, #tpu.memory_space<vmem>>, %arg4: memref<1x128xf32, #tpu.memory_space<vmem>>, %arg5: memref<128x128xbf16, #tpu.memory_space<vmem>>, %arg6: memref<1x128xf32, #tpu.memory_space<vmem>>, %arg7: memref<16x128xf32, #tpu.memory_space<vmem>>) attributes {dimension_semantics = [], scalar_prefetch = 0 : i64, scratch_operands = 0 : i64, tpu.core_type = #tpu.core_type<tc>} {
    %c0 = arith.constant 0 : index
    %c0_0 = arith.constant 0 : index
    %0 = vector.load %arg0[%c0, %c0_0] : memref<16x1664xbf16, #tpu.memory_space<vmem>>, vector<16x1664xbf16>
    %c0_1 = arith.constant 0 : index
    %c0_2 = arith.constant 0 : index
    %1 = vector.load %arg1[%c0_1, %c0_2] : memref<1664x128xbf16, #tpu.memory_space<vmem>>, vector<1664x128xbf16>
    %c0_3 = arith.constant 0 : index
    %c0_4 = arith.constant 0 : index
    %2 = vector.load %arg2[%c0_3, %c0_4] : memref<1x128xf32, #tpu.memory_space<vmem>>, vector<1x128xf32>
    %cst = arith.constant dense<0.000000e+00> : vector<16x128xf32>
    %3 = tpu.matmul %0, %1, %cst {dimension_numbers = #tpu.dot_dimension_numbers<[1], [0], [0], [1], [0, 0, 1, 1], [], []>} : vector<16x1664xbf16>, vector<1664x128xbf16>, vector<16x128xf32> -> vector<16x128xf32>
    %4 = vector.broadcast %2 : vector<1x128xf32> to vector<16x128xf32>
    %5 = arith.addf %3, %4 : vector<16x128xf32>
    %cst_5 = arith.constant 0.000000e+00 : f32
    %6 = vector.broadcast %cst_5 : f32 to vector<16x128xf32>
    %7 = arith.maximumf %5, %6 : vector<16x128xf32>
    %8 = arith.truncf %7 : vector<16x128xf32> to vector<16x128xbf16>
    %c0_6 = arith.constant 0 : index
    %c0_7 = arith.constant 0 : index
    %9 = vector.load %arg3[%c0_6, %c0_7] : memref<128x128xbf16, #tpu.memory_space<vmem>>, vector<128x128xbf16>
    %c0_8 = arith.constant 0 : index
    %c0_9 = arith.constant 0 : index
    %10 = vector.load %arg4[%c0_8, %c0_9] : memref<1x128xf32, #tpu.memory_space<vmem>>, vector<1x128xf32>
    %cst_10 = arith.constant dense<0.000000e+00> : vector<16x128xf32>
    %11 = tpu.matmul %8, %9, %cst_10 {dimension_numbers = #tpu.dot_dimension_numbers<[1], [0], [0], [1], [0, 0, 1, 1], [], []>} : vector<16x128xbf16>, vector<128x128xbf16>, vector<16x128xf32> -> vector<16x128xf32>
    %12 = vector.broadcast %10 : vector<1x128xf32> to vector<16x128xf32>
    %13 = arith.addf %11, %12 : vector<16x128xf32>
    %cst_11 = arith.constant 0.000000e+00 : f32
    %14 = vector.broadcast %cst_11 : f32 to vector<16x128xf32>
    %15 = arith.maximumf %13, %14 : vector<16x128xf32>
    %16 = arith.truncf %15 : vector<16x128xf32> to vector<16x128xbf16>
    %c0_12 = arith.constant 0 : index
    %c0_13 = arith.constant 0 : index
    %17 = vector.load %arg5[%c0_12, %c0_13] : memref<128x128xbf16, #tpu.memory_space<vmem>>, vector<128x128xbf16>
    %c0_14 = arith.constant 0 : index
    %c0_15 = arith.constant 0 : index
    %18 = vector.load %arg6[%c0_14, %c0_15] : memref<1x128xf32, #tpu.memory_space<vmem>>, vector<1x128xf32>
    %cst_16 = arith.constant dense<0.000000e+00> : vector<16x128xf32>
    %19 = tpu.matmul %16, %17, %cst_16 {dimension_numbers = #tpu.dot_dimension_numbers<[1], [0], [0], [1], [0, 0, 1, 1], [], []>} : vector<16x128xbf16>, vector<128x128xbf16>, vector<16x128xf32> -> vector<16x128xf32>
    %20 = vector.broadcast %18 : vector<1x128xf32> to vector<16x128xf32>
    %21 = arith.addf %19, %20 : vector<16x128xf32>
    %c0_17 = arith.constant 0 : index
    %c0_18 = arith.constant 0 : index
    %22 = vector.load %arg7[%c0_17, %c0_18] : memref<16x128xf32, #tpu.memory_space<vmem>>, vector<16x128xf32>
    tpu.vector_store %arg7[%c0_17, %c0_18], %21 {strides = array<i32>} : memref<16x128xf32, #tpu.memory_space<vmem>>, vector<16x128xf32>,
    return
  }
}

</mosaic_0001>

<bundles_post_ra>
// kernel: faster_rcnn_forward.10
= control target key start
LH: loop header
LB: loop body
LE: loop exit
PB: predicated region body
PF: predicated region fallthrough
CT: control target
= control target key end

     0   :  { %s1157_s12 = smov 0   ;;  %s1159_s13 = smov 0   ;;  %s1297_s0 = inlined_call_operand.vmem [shape: bf16[512,128], index: 0, kind: input, shape index: {}]   ;;  %s1298_s1 = inlined_call_operand.vmem [shape: bf16[128,128], index: 1, kind: input, shape index: {}]   ;;  %s1299_s2 = inlined_call_operand.vmem [shape: f32[1,128], index: 2, kind: input, shape index: {}]   ;;  %s1300_s3 = inlined_call_operand.vmem [shape: bf16[512,128], index: 3, kind: output, shape index: {}]  }
   0x1   :  { %s1161_s14 = smov 0  }
   0x2 LB: > { %s25_s15 = sadd.s32 1, %s1131_s13  ;;  %p842_p0 = scmp.ge.s32.totalorder %s1135_s14, 1  ;;  %s1135_s14 = sphi %s1161_s14, %s13_s14   ;;  %s1131_s13 = sphi %s1159_s13, %s1302_s13   ;;  %s1127_s12 = sphi %s1157_s12, %s1301_s12  }
   0x3   : > { %p27_p1 = scmp.ge.s32.totalorder %s25_s15, 2  ;;  %p169_p2 = scmp.lt.s32.totalorder %s1135_s14, 3 }
   0x5   : > { %s1304_s15 = smov (%p27_p1, %s25_s15), 0  ;;  %p170_p3 = pnand %p842_p0, %p169_p2 }
   0x6   : > { %s843_s24 = sshll.u32 (!%p170_p3), %s1127_s12, 5 }
   0x7   : > { %173 = sbr.rel (%p170_p3) target bundleno = 249 (0xf9), region = 32  ;;  %p204_p4 = scmp.lt.s32.totalorder (!%p170_p3), %s843_s24, 63 }
   0xc   : > { %v968_v0 = vld [vmem:[%s1298_s1 + $0x38] sm:$0xff]  ;;  %v967_v1 = vld [vmem:[%s1298_s1 + $0x30] sm:$0xff]  ;;  %v966_v2 = vld [vmem:[%s1298_s1 + $0x28] sm:$0xff]  ;;  %s1306_s24 = smov (!%p204_p4, %s843_s24), 63 }
   0xd   : > { %421 = vmatpush.bf16.msra.mxu0 %v968_v0  ;;  %1064 = vmatpush.bf16.msra.mxu1 %v968_v0  ;;  %v965_v3 = vld [vmem:[%s1298_s1 + $0x20] sm:$0xff]  ;;  %v964_v4 = vld [vmem:[%s1298_s1 + $0x18] sm:$0xff]  ;;  %v963_v5 = vld [vmem:[%s1298_s1 + $0x10] sm:$0xff]  ;;  %s844_s4 = sshll.u32 %s1306_s24, 2 }
   0xe   : > { %1065 = vmatpush.bf16.msra.mxu2 %v968_v0  ;;  %1066 = vmatpush.bf16.msra.mxu3 %v968_v0  ;;  %v962_v6 = vld [vmem:[%s1298_s1 + $0x8] sm:$0xff]  ;;  %v961_v7 = vld [vmem:[%s1298_s1] sm:$0xff]  ;;  %s1210_s9 = scalar_lea.vmem %s1297_s0, %s844_s4  ;;  %s1248_s17 = scalar_lea.vmem %s1300_s3, %s844_s4 }
   0xf   : > { %v945_v8 = vld [vmem:[%s1210_s9] sm:$0xff]  ;;  %v946_v12 = vld [vmem:[%s1210_s9 + $0x8] sm:$0xff]  ;;  %v947_v16 = vld [vmem:[%s1210_s9 + $0x10] sm:$0xff] }
  0x10   : > { %v949_v9 = vld [vmem:[%s1210_s9 + $0x20] sm:$0xff]  ;;  %v950_v13 = vld [vmem:[%s1210_s9 + $0x28] sm:$0xff]  ;;  %v951_v17 = vld [vmem:[%s1210_s9 + $0x30] sm:$0xff] }
  0x11   : > { %422 = vmatpush.bf16.msra.mxu0 %v967_v1  ;;  %1067 = vmatpush.bf16.msra.mxu1 %v967_v1  ;;  %v953_v10 = vld [vmem:[%s1210_s9 + $0x40] sm:$0xff]  ;;  %v954_v14 = vld [vmem:[%s1210_s9 + $0x48] sm:$0xff]  ;;  %v955_v18 = vld [vmem:[%s1210_s9 + $0x50] sm:$0xff] }
  0x12   : > { %1068 = vmatpush.bf16.msra.mxu2 %v967_v1  ;;  %1069 = vmatpush.bf16.msra.mxu3 %v967_v1  ;;  %v957_v11 = vld [vmem:[%s1210_s9 + $0x60] sm:$0xff]  ;;  %v958_v15 = vld [vmem:[%s1210_s9 + $0x68] sm:$0xff]  ;;  %v959_v19 = vld [vmem:[%s1210_s9 + $0x70] sm:$0xff] }
  0x13   : > { %v948_v20 = vld [vmem:[%s1210_s9 + $0x18] sm:$0xff]  ;;  %v1231_v24 = vld [vmem:[%s1299_s2] ss:$0 sm:$0xff] }
  0x14   : > { %v952_v21 = vld [vmem:[%s1210_s9 + $0x38] sm:$0xff] }
  0x15   : > { %423 = vmatpush.bf16.msra.mxu0 %v966_v2  ;;  %1070 = vmatpush.bf16.msra.mxu1 %v966_v2  ;;  %v956_v22 = vld [vmem:[%s1210_s9 + $0x58] sm:$0xff] }
  0x16   : > { %1071 = vmatpush.bf16.msra.mxu2 %v966_v2  ;;  %1072 = vmatpush.bf16.msra.mxu3 %v966_v2  ;;  %v960_v23 = vld [vmem:[%s1210_s9 + $0x78] sm:$0xff] }
  0x19   : > { %424 = vmatpush.bf16.msra.mxu0 %v965_v3  ;;  %1073 = vmatpush.bf16.msra.mxu1 %v965_v3 }
  0x1a   : > { %1074 = vmatpush.bf16.msra.mxu2 %v965_v3  ;;  %1075 = vmatpush.bf16.msra.mxu3 %v965_v3 }
  0x1d   : > { %425 = vmatpush.bf16.msra.mxu0 %v964_v4  ;;  %1076 = vmatpush.bf16.msra.mxu1 %v964_v4 }
  0x1e   : > { %1077 = vmatpush.bf16.msra.mxu2 %v964_v4  ;;  %1078 = vmatpush.bf16.msra.mxu3 %v964_v4 }
  0x21   : > { %426 = vmatpush.bf16.msra.mxu0 %v963_v5  ;;  %1079 = vmatpush.bf16.msra.mxu1 %v963_v5 }
  0x22   : > { %1080 = vmatpush.bf16.msra.mxu2 %v963_v5  ;;  %1081 = vmatpush.bf16.msra.mxu3 %v963_v5 }
  0x25   : > { %427 = vmatpush.bf16.msra.mxu0 %v962_v6  ;;  %1082 = vmatpush.bf16.msra.mxu1 %v962_v6 }
  0x26   : > { %1083 = vmatpush.bf16.msra.mxu2 %v962_v6  ;;  %1084 = vmatpush.bf16.msra.mxu3 %v962_v6 }
  0x29   : > { %428 = vmatpush.bf16.msra.mxu0 %v961_v7  ;;  %1085 = vmatpush.bf16.msra.mxu1 %v961_v7 }
  0x2a   : > { %1086 = vmatpush.bf16.msra.mxu2 %v961_v7  ;;  %1087 = vmatpush.bf16.msra.mxu3 %v961_v7 }
  0x2c   : > { %429 = vmatmul.bf16.vlgmr.msra.gmra.mxu0 %v945_v8  ;;  %449 = vmatmul.bf16.vlgmr.msra.gmra.mxu1 %v949_v9 }
  0x2d   : > { %469 = vmatmul.bf16.vlgmr.msra.gmra.mxu2 %v953_v10  ;;  %489 = vmatmul.bf16.vlgmr.msra.gmra.mxu3 %v957_v11 }
  0x3c   : > { %434 = vmatmul.bf16.gmra.mxu0 %v946_v12  ;;  %454 = vmatmul.bf16.gmra.mxu1 %v950_v13 }
  0x3d   : > { %474 = vmatmul.bf16.gmra.mxu2 %v954_v14  ;;  %494 = vmatmul.bf16.gmra.mxu3 %v958_v15 }
  0x4c   : > { %439 = vmatmul.bf16.gmra.mxu0 %v947_v16  ;;  %459 = vmatmul.bf16.gmra.mxu1 %v951_v17 }
  0x4d   : > { %479 = vmatmul.bf16.gmra.mxu2 %v955_v18  ;;  %499 = vmatmul.bf16.gmra.mxu3 %v959_v19 }
  0x5c   : > { %444 = vmatmul.bf16.gmra.mxu0 %v948_v20  ;;  %464 = vmatmul.bf16.gmra.mxu1 %v952_v21 }
  0x5d   : > { %484 = vmatmul.bf16.gmra.mxu2 %v956_v22  ;;  %504 = vmatmul.bf16.gmra.mxu3 %v960_v23 }
  0xa9   : > { %v430_v25 = vpop.f32.mrf.mxu0  ;;  %v450_v26 = vpop.f32.mrf.mxu1 }
  0xaa   : > { %v431_v27 = vadd.f32 %v1231_v24, %v430_v25  ;;  %v451_v28 = vadd.f32 %v1231_v24, %v450_v26 }
  0xac   : > { %v510_v29 = vadd.f32 3.0, %v431_v27  ;;  %v518_v30 = vadd.f32 3.0, %v451_v28 }
  0xae   : > { %v542_v31 = vmax.f32 %v510_v29, 0.0  ;;  %v550_v32 = vmax.f32 %v518_v30, 0.0 }
  0xb0   : > { %v470_v33 = vpop.f32.mrf.mxu2  ;;  %v490_v34 = vpop.f32.mrf.mxu3  ;;  %v574_v35 = vmin.f32 %v542_v31, 6.0  ;;  %v582_v42 = vmin.f32 %v550_v32, 6.0 }
  0xb1   : > { %v471_v36 = vadd.f32 %v1231_v24, %v470_v33  ;;  %v491_v37 = vadd.f32 %v1231_v24, %v490_v34  ;;  %v432_v38 = vpop.f32.mrf.mxu0  ;;  %v452_v39 = vpop.f32.mrf.mxu1 }
  0xb2   : > { %v433_v40 = vadd.f32 %v1231_v24, %v432_v38  ;;  %v453_v41 = vadd.f32 %v1231_v24, %v452_v39  ;;  %v606_v47 = vmul.f32 %v574_v35, %v431_v27  ;;  %v614_v52 = vmul.f32 %v582_v42, %v451_v28 }
  0xb3   : > { %v526_v43 = vadd.f32 3.0, %v471_v36  ;;  %v534_v44 = vadd.f32 3.0, %v491_v37 }
  0xb4   : > { %v511_v45 = vadd.f32 3.0, %v433_v40  ;;  %v519_v46 = vadd.f32 3.0, %v453_v41  ;;  %v638_v58 = vmul.f32 0.16666667, %v606_v47  ;;  %v646_v4 = vmul.f32 0.16666667, %v614_v52 }
  0xb5   : > { %v558_v48 = vmax.f32 %v526_v43, 0.0  ;;  %v566_v49 = vmax.f32 %v534_v44, 0.0 }
  0xb6   : > { %v543_v50 = vmax.f32 %v511_v45, 0.0  ;;  %v551_v51 = vmax.f32 %v519_v46, 0.0 }
  0xb7   : > { %v590_v53 = vmin.f32 %v558_v48, 6.0  ;;  %v598_v59 = vmin.f32 %v566_v49, 6.0 }
  0xb8   : > { %v575_v54 = vmin.f32 %v543_v50, 6.0  ;;  %v583_v55 = vmin.f32 %v551_v51, 6.0  ;;  %v472_v56 = vpop.f32.mrf.mxu2  ;;  %v492_v57 = vpop.f32.mrf.mxu3 }
  0xb9   : > { %v473_v60 = vadd.f32 %v1231_v24, %v472_v56  ;;  %v493_v61 = vadd.f32 %v1231_v24, %v492_v57  ;;  %v435_v62 = vpop.f32.mrf.mxu0  ;;  %v455_v63 = vpop.f32.mrf.mxu1  ;;  %v622_v5 = vmul.f32 %v590_v53, %v471_v36  ;;  %v630_v12 = vmul.f32 %v598_v59, %v491_v37 }
  0xba   : > { %v607_v0 = vmul.f32 %v575_v54, %v433_v40  ;;  %v615_v1 = vmul.f32 %v583_v55, %v453_v41  ;;  %v436_v2 = vadd.f32 %v1231_v24, %v435_v62  ;;  %v456_v3 = vadd.f32 %v1231_v24, %v455_v63 }
  0xbb   : > { %v527_v6 = vadd.f32 3.0, %v473_v60  ;;  %v535_v7 = vadd.f32 3.0, %v493_v61  ;;  %v654_v21 = vmul.f32 0.16666667, %v622_v5  ;;  %v662_v32 = vmul.f32 0.16666667, %v630_v12 }
  0xbc   : > { %v639_v8 = vmul.f32 0.16666667, %v607_v0  ;;  %v647_v9 = vmul.f32 0.16666667, %v615_v1  ;;  %v512_v10 = vadd.f32 3.0, %v436_v2  ;;  %v520_v11 = vadd.f32 3.0, %v456_v3 }
  0xbd   : > { %v559_v13 = vmax.f32 %v527_v6, 0.0  ;;  %v567_v14 = vmax.f32 %v535_v7, 0.0 }
  0xbe   : > { %v972_v15 = vpack.c.bf16 %v639_v8, %v638_v58  ;;  %v992_v16 = vpack.c.bf16 %v647_v9, %v646_v4  ;;  %v544_v17 = vmax.f32 %v512_v10, 0.0  ;;  %v552_v18 = vmax.f32 %v520_v11, 0.0 }
  0xbf   : > { %v591_v19 = vmin.f32 %v559_v13, 6.0  ;;  %v599_v20 = vmin.f32 %v567_v14, 6.0 }
  0xc0   : > { %973 = vst [vmem:[%s1248_s17] sm:$0xff] %v972_v15   ;;  %v576_v22 = vmin.f32 %v544_v17, 6.0  ;;  %v475_v23 = vpop.f32.mrf.mxu2  ;;  %v495_v25 = vpop.f32.mrf.mxu3  ;;  %v584_v33 = vmin.f32 %v552_v18, 6.0 }
  0xc1   : > { %1052 = vst [vmem:[%s1248_s17 + $0x20] sm:$0xff] %v992_v16   ;;  %v623_v26 = vmul.f32 %v591_v19, %v473_v60  ;;  %v631_v27 = vmul.f32 %v599_v20, %v493_v61  ;;  %v476_v28 = vadd.f32 %v1231_v24, %v475_v23  ;;  %v496_v29 = vadd.f32 %v1231_v24, %v495_v25  ;;  %v437_v30 = vpop.f32.mrf.mxu0  ;;  %v457_v31 = vpop.f32.mrf.mxu1 }
  0xc2   : > { %v438_v34 = vadd.f32 %v1231_v24, %v437_v30  ;;  %v458_v35 = vadd.f32 %v1231_v24, %v457_v31  ;;  %v608_v40 = vmul.f32 %v576_v22, %v436_v2  ;;  %v616_v49 = vmul.f32 %v584_v33, %v456_v3 }
  0xc3   : > { %v655_v36 = vmul.f32 0.16666667, %v623_v26  ;;  %v663_v37 = vmul.f32 0.16666667, %v631_v27  ;;  %v528_v38 = vadd.f32 3.0, %v476_v28  ;;  %v536_v39 = vadd.f32 3.0, %v496_v29 }
  0xc4   : > { %v513_v41 = vadd.f32 3.0, %v438_v34  ;;  %v521_v42 = vadd.f32 3.0, %v458_v35  ;;  %v640_v55 = vmul.f32 0.16666667, %v608_v40  ;;  %v648_v1 = vmul.f32 0.16666667, %v616_v49 }
  0xc5   : > { %v1012_v43 = vpack.c.bf16 %v655_v36, %v654_v21  ;;  %v1032_v44 = vpack.c.bf16 %v663_v37, %v662_v32  ;;  %v560_v45 = vmax.f32 %v528_v38, 0.0  ;;  %v568_v46 = vmax.f32 %v536_v39, 0.0 }
  0xc6   : > { %v545_v47 = vmax.f32 %v513_v41, 0.0  ;;  %v553_v48 = vmax.f32 %v521_v42, 0.0 }
  0xc7   : > { %1056 = vst [vmem:[%s1248_s17 + $0x40] sm:$0xff] %v1012_v43   ;;  %v592_v50 = vmin.f32 %v560_v45, 6.0  ;;  %v600_v56 = vmin.f32 %v568_v46, 6.0 }
  0xc8   : > { %1060 = vst [vmem:[%s1248_s17 + $0x60] sm:$0xff] %v1032_v44   ;;  %v577_v51 = vmin.f32 %v545_v47, 6.0  ;;  %v585_v52 = vmin.f32 %v553_v48, 6.0  ;;  %v477_v53 = vpop.f32.mrf.mxu2  ;;  %v497_v54 = vpop.f32.mrf.mxu3 }
  0xc9   : > { %v478_v57 = vadd.f32 %v1231_v24, %v477_v53  ;;  %v498_v58 = vadd.f32 %v1231_v24, %v497_v54  ;;  %v440_v59 = vpop.f32.mrf.mxu0  ;;  %v460_v60 = vpop.f32.mrf.mxu1  ;;  %v624_v2 = vmul.f32 %v592_v50, %v476_v28  ;;  %v632_v9 = vmul.f32 %v600_v56, %v496_v29 }
  0xca   : > { %v609_v61 = vmul.f32 %v577_v51, %v438_v34  ;;  %v617_v62 = vmul.f32 %v585_v52, %v458_v35  ;;  %v441_v63 = vadd.f32 %v1231_v24, %v440_v59  ;;  %v461_v0 = vadd.f32 %v1231_v24, %v460_v60 }
  0xcb   : > { %v529_v3 = vadd.f32 3.0, %v478_v57  ;;  %v537_v4 = vadd.f32 3.0, %v498_v58  ;;  %v656_v18 = vmul.f32 0.16666667, %v624_v2  ;;  %v664_v29 = vmul.f32 0.16666667, %v632_v9 }
  0xcc   : > { %v641_v5 = vmul.f32 0.16666667, %v609_v61  ;;  %v649_v6 = vmul.f32 0.16666667, %v617_v62  ;;  %v514_v7 = vadd.f32 3.0, %v441_v63  ;;  %v522_v8 = vadd.f32 3.0, %v461_v0 }
  0xcd   : > { %v561_v10 = vmax.f32 %v529_v3, 0.0  ;;  %v569_v11 = vmax.f32 %v537_v4, 0.0 }
  0xce   : > { %v977_v12 = vpack.c.bf16 %v641_v5, %v640_v55  ;;  %v997_v13 = vpack.c.bf16 %v649_v6, %v648_v1  ;;  %v546_v14 = vmax.f32 %v514_v7, 0.0  ;;  %v554_v15 = vmax.f32 %v522_v8, 0.0 }
  0xcf   : > { %v593_v16 = vmin.f32 %v561_v10, 6.0  ;;  %v601_v17 = vmin.f32 %v569_v11, 6.0 }
  0xd0   : > { %1049 = vst [vmem:[%s1248_s17 + $0x8] sm:$0xff] %v977_v12   ;;  %v578_v19 = vmin.f32 %v546_v14, 6.0  ;;  %v480_v20 = vpop.f32.mrf.mxu2  ;;  %v500_v21 = vpop.f32.mrf.mxu3  ;;  %v586_v30 = vmin.f32 %v554_v15, 6.0 }
  0xd1   : > { %1053 = vst [vmem:[%s1248_s17 + $0x28] sm:$0xff] %v997_v13   ;;  %v625_v22 = vmul.f32 %v593_v16, %v478_v57  ;;  %v633_v23 = vmul.f32 %v601_v17, %v498_v58  ;;  %v481_v25 = vadd.f32 %v1231_v24, %v480_v20  ;;  %v501_v26 = vadd.f32 %v1231_v24, %v500_v21  ;;  %v442_v27 = vpop.f32.mrf.mxu0  ;;  %v462_v28 = vpop.f32.mrf.mxu1 }
  0xd2   : > { %v443_v31 = vadd.f32 %v1231_v24, %v442_v27  ;;  %v463_v32 = vadd.f32 %v1231_v24, %v462_v28  ;;  %v610_v37 = vmul.f32 %v578_v19, %v441_v63  ;;  %v618_v46 = vmul.f32 %v586_v30, %v461_v0 }
  0xd3   : > { %v657_v33 = vmul.f32 0.16666667, %v625_v22  ;;  %v665_v34 = vmul.f32 0.16666667, %v633_v23  ;;  %v530_v35 = vadd.f32 3.0, %v481_v25  ;;  %v538_v36 = vadd.f32 3.0, %v501_v26 }
  0xd4   : > { %v515_v38 = vadd.f32 3.0, %v443_v31  ;;  %v523_v39 = vadd.f32 3.0, %v463_v32  ;;  %v642_v52 = vmul.f32 0.16666667, %v610_v37  ;;  %v650_v62 = vmul.f32 0.16666667, %v618_v46 }
  0xd5   : > { %v1017_v40 = vpack.c.bf16 %v657_v33, %v656_v18  ;;  %v1037_v41 = vpack.c.bf16 %v665_v34, %v664_v29  ;;  %v562_v42 = vmax.f32 %v530_v35, 0.0  ;;  %v570_v43 = vmax.f32 %v538_v36, 0.0 }
  0xd6   : > { %v547_v44 = vmax.f32 %v515_v38, 0.0  ;;  %v555_v45 = vmax.f32 %v523_v39, 0.0 }
  0xd7   : > { %1057 = vst [vmem:[%s1248_s17 + $0x48] sm:$0xff] %v1017_v40   ;;  %v594_v47 = vmin.f32 %v562_v42, 6.0  ;;  %v602_v53 = vmin.f32 %v570_v43, 6.0 }
  0xd8   : > { %1061 = vst [vmem:[%s1248_s17 + $0x68] sm:$0xff] %v1037_v41   ;;  %v579_v48 = vmin.f32 %v547_v44, 6.0  ;;  %v587_v49 = vmin.f32 %v555_v45, 6.0  ;;  %v482_v50 = vpop.f32.mrf.mxu2  ;;  %v502_v51 = vpop.f32.mrf.mxu3 }
  0xd9   : > { %v483_v54 = vadd.f32 %v1231_v24, %v482_v50  ;;  %v503_v55 = vadd.f32 %v1231_v24, %v502_v51  ;;  %v445_v56 = vpop.f32.mrf.mxu0  ;;  %v465_v57 = vpop.f32.mrf.mxu1  ;;  %v626_v63 = vmul.f32 %v594_v47, %v481_v25  ;;  %v634_v8 = vmul.f32 %v602_v53, %v501_v26 }
  0xda   : > { %v611_v58 = vmul.f32 %v579_v48, %v443_v31  ;;  %v619_v59 = vmul.f32 %v587_v49, %v463_v32  ;;  %v446_v60 = vadd.f32 %v1231_v24, %v445_v56  ;;  %v466_v61 = vadd.f32 %v1231_v24, %v465_v57 }
  0xdb   : > { %v531_v0 = vadd.f32 3.0, %v483_v54  ;;  %v539_v1 = vadd.f32 3.0, %v503_v55  ;;  %v658_v14 = vmul.f32 0.16666667, %v626_v63  ;;  %v666_v25 = vmul.f32 0.16666667, %v634_v8 }
  0xdc   : > { %v643_v2 = vmul.f32 0.16666667, %v611_v58  ;;  %v651_v3 = vmul.f32 0.16666667, %v619_v59  ;;  %v516_v4 = vadd.f32 3.0, %v446_v60  ;;  %v524_v5 = vadd.f32 3.0, %v466_v61 }
  0xdd   : > { %v563_v6 = vmax.f32 %v531_v0, 0.0  ;;  %v571_v7 = vmax.f32 %v539_v1, 0.0 }
  0xde   : > { %v982_v9 = vpack.c.bf16 %v643_v2, %v642_v52  ;;  %v1002_v10 = vpack.c.bf16 %v651_v3, %v650_v62  ;;  %v548_v11 = vmax.f32 %v516_v4, 0.0  ;;  %v556_v15 = vmax.f32 %v524_v5, 0.0 }
  0xdf   : > { %v595_v12 = vmin.f32 %v563_v6, 6.0  ;;  %v603_v13 = vmin.f32 %v571_v7, 6.0 }
  0xe0   : > { %1050 = vst [vmem:[%s1248_s17 + $0x10] sm:$0xff] %v982_v9   ;;  %v485_v16 = vpop.f32.mrf.mxu2  ;;  %v505_v17 = vpop.f32.mrf.mxu3  ;;  %v580_v26 = vmin.f32 %v548_v11, 6.0  ;;  %v588_v33 = vmin.f32 %v556_v15, 6.0 }
  0xe1   : > { %1054 = vst [vmem:[%s1248_s17 + $0x30] sm:$0xff] %v1002_v10   ;;  %v627_v18 = vmul.f32 %v595_v12, %v483_v54  ;;  %v635_v19 = vmul.f32 %v603_v13, %v503_v55  ;;  %v486_v20 = vadd.f32 %v1231_v24, %v485_v16  ;;  %v506_v21 = vadd.f32 %v1231_v24, %v505_v17  ;;  %v447_v22 = vpop.f32.mrf.mxu0  ;;  %v467_v23 = vpop.f32.mrf.mxu1 }
  0xe2   : > { %v448_v27 = vadd.f32 %v1231_v24, %v447_v22  ;;  %v468_v28 = vadd.f32 %v1231_v24, %v467_v23  ;;  %v612_v41 = vmul.f32 %v580_v26, %v446_v60  ;;  %v620_v43 = vmul.f32 %v588_v33, %v466_v61 }
  0xe3   : > { %v659_v29 = vmul.f32 0.16666667, %v627_v18  ;;  %v667_v30 = vmul.f32 0.16666667, %v635_v19  ;;  %v532_v31 = vadd.f32 3.0, %v486_v20  ;;  %v540_v32 = vadd.f32 3.0, %v506_v21 }
  0xe4   : > { %v517_v34 = vadd.f32 3.0, %v448_v27  ;;  %v525_v35 = vadd.f32 3.0, %v468_v28  ;;  %v644_v53 = vmul.f32 0.16666667, %v612_v41  ;;  %v652_v57 = vmul.f32 0.16666667, %v620_v43 }
  0xe5   : > { %v1022_v36 = vpack.c.bf16 %v659_v29, %v658_v14  ;;  %v1042_v37 = vpack.c.bf16 %v667_v30, %v666_v25  ;;  %v564_v38 = vmax.f32 %v532_v31, 0.0  ;;  %v572_v42 = vmax.f32 %v540_v32, 0.0 }
  0xe6   : > { %v549_v39 = vmax.f32 %v517_v34, 0.0  ;;  %v557_v40 = vmax.f32 %v525_v35, 0.0 }
  0xe7   : > { %1058 = vst [vmem:[%s1248_s17 + $0x50] sm:$0xff] %v1022_v36   ;;  %v596_v50 = vmin.f32 %v564_v38, 6.0  ;;  %v604_v54 = vmin.f32 %v572_v42, 6.0 }
  0xe8   : > { %1062 = vst [vmem:[%s1248_s17 + $0x70] sm:$0xff] %v1042_v37   ;;  %v581_v44 = vmin.f32 %v549_v39, 6.0  ;;  %v589_v45 = vmin.f32 %v557_v40, 6.0  ;;  %v487_v46 = vpop.f32.mrf.mxu2  ;;  %v507_v47 = vpop.f32.mrf.mxu3 }
  0xe9   : > { %v488_v48 = vadd.f32 %v1231_v24, %v487_v46  ;;  %v508_v49 = vadd.f32 %v1231_v24, %v507_v47  ;;  %v628_v62 = vmul.f32 %v596_v50, %v486_v20  ;;  %v636_v24 = vmul.f32 %v604_v54, %v506_v21 }
  0xea   : > { %v613_v51 = vmul.f32 %v581_v44, %v448_v27  ;;  %v621_v52 = vmul.f32 %v589_v45, %v468_v28 }
  0xeb   : > { %v533_v55 = vadd.f32 3.0, %v488_v48  ;;  %v541_v56 = vadd.f32 3.0, %v508_v49  ;;  %v660_v5 = vmul.f32 0.16666667, %v628_v62  ;;  %v668_v6 = vmul.f32 0.16666667, %v636_v24 }
  0xec   : > { %v645_v58 = vmul.f32 0.16666667, %v613_v51  ;;  %v653_v59 = vmul.f32 0.16666667, %v621_v52 }
  0xed   : > { %v565_v60 = vmax.f32 %v533_v55, 0.0  ;;  %v573_v61 = vmax.f32 %v541_v56, 0.0 }
  0xee   : > { %v987_v63 = vpack.c.bf16 %v645_v58, %v644_v53  ;;  %v1007_v0 = vpack.c.bf16 %v653_v59, %v652_v57 }
  0xef   : > { %v597_v1 = vmin.f32 %v565_v60, 6.0  ;;  %v605_v2 = vmin.f32 %v573_v61, 6.0 }
  0xf0   : > { %1051 = vst [vmem:[%s1248_s17 + $0x18] sm:$0xff] %v987_v63  }
  0xf1   : > { %1055 = vst [vmem:[%s1248_s17 + $0x38] sm:$0xff] %v1007_v0   ;;  %v629_v3 = vmul.f32 %v597_v1, %v488_v48  ;;  %v637_v4 = vmul.f32 %v605_v2, %v508_v49 }
  0xf3   : > { %v661_v7 = vmul.f32 0.16666667, %v629_v3  ;;  %v669_v8 = vmul.f32 0.16666667, %v637_v4 }
  0xf5   : > { %v1027_v9 = vpack.c.bf16 %v661_v7, %v660_v5  ;;  %v1047_v10 = vpack.c.bf16 %v669_v8, %v668_v6 }
  0xf7   : > { %1059 = vst [vmem:[%s1248_s17 + $0x58] sm:$0xff] %v1027_v9  }
  0xf8   : > { %1063 = vst [vmem:[%s1248_s17 + $0x78] sm:$0xff] %v1047_v10  }
  0xf9 PF: > { %s13_s14 = sadd.s32 1, %s1135_s14   ;;  %s1301_s12 = smov %s1131_s13 }
  0xfa   : > { %p10_p5 = scmp.ge.s32.totalorder %s13_s14, 4   ;;  %s1302_s13 = smov %s1304_s15 }
  0xfc   :  { %12 = sbr.rel (!%p10_p5) target bundleno = 2 (0x2), region = 68 }

// kernel: faster_rcnn_forward.11
= control target key start
LH: loop header
LB: loop body
LE: loop exit
PB: predicated region body
PF: predicated region fallthrough
CT: control target
= control target key end

     0   :  { %s825_s1 = inlined_call_operand.vmem [shape: bf16[256,128], index: 1, kind: input, shape index: {}]   ;;  %s826_s2 = inlined_call_operand.vmem [shape: f32[1,128], index: 2, kind: input, shape index: {}]   ;;  %s827_s0 = inlined_call_operand.vmem [shape: bf16[128,256], index: 0, kind: input, shape index: {}]   ;;  %s828_s3 = inlined_call_operand.vmem [shape: bf16[128,128], index: 3, kind: output, shape index: {}]  }
   0x1   :  { %v543_v0 = vld [vmem:[%s825_s1 + $0x38] sm:$0xff]  ;;  %v542_v2 = vld [vmem:[%s825_s1 + $0x30] sm:$0xff]  ;;  %v541_v4 = vld [vmem:[%s825_s1 + $0x28] sm:$0xff] }
   0x2   :  { %v551_v1 = vld [vmem:[%s825_s1 + $0x78] sm:$0xff]  ;;  %242 = vmatpush.bf16.msra.mxu0 %v543_v0  ;;  %599 = vmatpush.bf16.msra.mxu2 %v543_v0  ;;  %v550_v3 = vld [vmem:[%s825_s1 + $0x70] sm:$0xff]  ;;  %v549_v5 = vld [vmem:[%s825_s1 + $0x68] sm:$0xff] }
   0x3   :  { %291 = vmatpush.bf16.msra.mxu1 %v551_v1  ;;  %607 = vmatpush.bf16.msra.mxu3 %v551_v1  ;;  %v540_v6 = vld [vmem:[%s825_s1 + $0x20] sm:$0xff]  ;;  %v539_v8 = vld [vmem:[%s825_s1 + $0x18] sm:$0xff]  ;;  %v538_v10 = vld [vmem:[%s825_s1 + $0x10] sm:$0xff] }
   0x4   :  { %v548_v7 = vld [vmem:[%s825_s1 + $0x60] sm:$0xff]  ;;  %v547_v9 = vld [vmem:[%s825_s1 + $0x58] sm:$0xff]  ;;  %v546_v11 = vld [vmem:[%s825_s1 + $0x50] sm:$0xff] }
   0x5   :  { %v537_v12 = vld [vmem:[%s825_s1 + $0x8] sm:$0xff]  ;;  %v536_v14 = vld [vmem:[%s825_s1] sm:$0xff]  ;;  %v402_v28 = vld [vmem:[%s827_s0 + $0x10] sm:$0xf] }
   0x6   :  { %243 = vmatpush.bf16.msra.mxu0 %v542_v2  ;;  %600 = vmatpush.bf16.msra.mxu2 %v542_v2  ;;  %v545_v13 = vld [vmem:[%s825_s1 + $0x48] sm:$0xff]  ;;  %v544_v15 = vld [vmem:[%s825_s1 + $0x40] sm:$0xff]  ;;  %v523_v29 = vld [vmem:[%s827_s0 + $0x14] sm:$0xf0] }
   0x7   :  { %292 = vmatpush.bf16.msra.mxu1 %v550_v3  ;;  %608 = vmatpush.bf16.msra.mxu3 %v550_v3  ;;  %v394_v16 = vld [vmem:[%s827_s0] sm:$0xf]  ;;  %v521_v17 = vld [vmem:[%s827_s0 + $0x4] sm:$0xf0]  ;;  %v520_v20 = vld [vmem:[%s827_s0 + $0x4] sm:$0xf]  ;;  %v403_v36 = vor.u32 %v523_v29, %v402_v28 }
   0x8   :  { %v426_v18 = vld [vmem:[%s827_s0 + $0x40] sm:$0xf]  ;;  %v529_v19 = vld [vmem:[%s827_s0 + $0x44] sm:$0xf0]  ;;  %v396_v21 = vld [vmem:[%s827_s0 + $0x8] sm:$0xf0]  ;;  %v395_v24 = vor.u32 %v521_v17, %v394_v16 }
   0x9   :  { %v528_v22 = vld [vmem:[%s827_s0 + $0x44] sm:$0xf]  ;;  %v428_v23 = vld [vmem:[%s827_s0 + $0x48] sm:$0xf0]  ;;  %v427_v25 = vor.u32 %v529_v19, %v426_v18  ;;  %v399_v26 = vor.u32 %v520_v20, %v396_v21  ;;  %v434_v30 = vld [vmem:[%s827_s0 + $0x50] sm:$0xf] }
   0xa   :  { %244 = vmatpush.bf16.msra.mxu0 %v541_v4  ;;  %601 = vmatpush.bf16.msra.mxu2 %v541_v4  ;;  %v431_v27 = vor.u32 %v528_v22, %v428_v23  ;;  %v531_v31 = vld [vmem:[%s827_s0 + $0x54] sm:$0xf0]  ;;  %v522_v32 = vld [vmem:[%s827_s0 + $0x14] sm:$0xf]  ;;  %v404_v33 = vld [vmem:[%s827_s0 + $0x18] sm:$0xf0] }
   0xb   :  { %293 = vmatpush.bf16.msra.mxu1 %v549_v5  ;;  %609 = vmatpush.bf16.msra.mxu3 %v549_v5  ;;  %v530_v34 = vld [vmem:[%s827_s0 + $0x54] sm:$0xf]  ;;  %v436_v35 = vld [vmem:[%s827_s0 + $0x58] sm:$0xf0]  ;;  %v435_v37 = vor.u32 %v531_v31, %v434_v30  ;;  %v407_v38 = vor.u32 %v522_v32, %v404_v33  ;;  %v410_v40 = vld [vmem:[%s827_s0 + $0x20] sm:$0xf] }
   0xc   :  { %v439_v39 = vor.u32 %v530_v34, %v436_v35  ;;  %v525_v41 = vld [vmem:[%s827_s0 + $0x24] sm:$0xf0]  ;;  %v442_v42 = vld [vmem:[%s827_s0 + $0x60] sm:$0xf]  ;;  %v524_v44 = vld [vmem:[%s827_s0 + $0x24] sm:$0xf] }
   0xd   :  { %v533_v43 = vld [vmem:[%s827_s0 + $0x64] sm:$0xf0]  ;;  %v412_v45 = vld [vmem:[%s827_s0 + $0x28] sm:$0xf0]  ;;  %v532_v46 = vld [vmem:[%s827_s0 + $0x64] sm:$0xf]  ;;  %v411_v48 = vor.u32 %v525_v41, %v410_v40 }
   0xe   :  { %245 = vmatpush.bf16.msra.mxu0 %v540_v6  ;;  %602 = vmatpush.bf16.msra.mxu2 %v540_v6  ;;  %v444_v47 = vld [vmem:[%s827_s0 + $0x68] sm:$0xf0]  ;;  %v443_v49 = vor.u32 %v533_v43, %v442_v42  ;;  %v415_v50 = vor.u32 %v524_v44, %v412_v45  ;;  %v418_v52 = vld [vmem:[%s827_s0 + $0x30] sm:$0xf]  ;;  %v527_v53 = vld [vmem:[%s827_s0 + $0x34] sm:$0xf0] }
   0xf   :  { %294 = vmatpush.bf16.msra.mxu1 %v548_v7  ;;  %610 = vmatpush.bf16.msra.mxu3 %v548_v7  ;;  %v447_v51 = vor.u32 %v532_v46, %v444_v47  ;;  %v450_v54 = vld [vmem:[%s827_s0 + $0x70] sm:$0xf]  ;;  %v535_v55 = vld [vmem:[%s827_s0 + $0x74] sm:$0xf0]  ;;  %v526_v56 = vld [vmem:[%s827_s0 + $0x34] sm:$0xf]  ;;  %v419_v60 = vor.u32 %v527_v53, %v418_v52 }
  0x10   :  { %v420_v57 = vld [vmem:[%s827_s0 + $0x38] sm:$0xf0]  ;;  %v534_v58 = vld [vmem:[%s827_s0 + $0x74] sm:$0xf]  ;;  %v451_v61 = vor.u32 %v535_v55, %v450_v54  ;;  %v783_v1 = vld [vmem:[%s826_s2] ss:$0 sm:$0xff] }
  0x11   :  { %v452_v59 = vld [vmem:[%s827_s0 + $0x78] sm:$0xf0]  ;;  %v423_v62 = vor.u32 %v526_v56, %v420_v57 }
  0x12   :  { %246 = vmatpush.bf16.msra.mxu0 %v539_v8  ;;  %603 = vmatpush.bf16.msra.mxu2 %v539_v8  ;;  %v455_v63 = vor.u32 %v534_v58, %v452_v59 }
  0x13   :  { %295 = vmatpush.bf16.msra.mxu1 %v547_v9  ;;  %611 = vmatpush.bf16.msra.mxu3 %v547_v9 }
  0x16   :  { %247 = vmatpush.bf16.msra.mxu0 %v538_v10  ;;  %604 = vmatpush.bf16.msra.mxu2 %v538_v10 }
  0x17   :  { %296 = vmatpush.bf16.msra.mxu1 %v546_v11  ;;  %612 = vmatpush.bf16.msra.mxu3 %v546_v11 }
  0x1a   :  { %248 = vmatpush.bf16.msra.mxu0 %v537_v12  ;;  %605 = vmatpush.bf16.msra.mxu2 %v537_v12 }
  0x1b   :  { %297 = vmatpush.bf16.msra.mxu1 %v545_v13  ;;  %613 = vmatpush.bf16.msra.mxu3 %v545_v13 }
  0x1e   :  { %249 = vmatpush.bf16.msra.mxu0 %v536_v14  ;;  %606 = vmatpush.bf16.msra.mxu2 %v536_v14 }
  0x1f   :  { %298 = vmatpush.bf16.msra.mxu1 %v544_v15  ;;  %614 = vmatpush.bf16.msra.mxu3 %v544_v15 }
  0x21   :  { %250 = vmatmul.bf16.vlgmr.msra.gmra.mxu0 %v395_v24  ;;  %270 = vmatmul.bf16.vlgmr.msra.gmra.mxu2 %v427_v25 }
  0x22   :  { %299 = vmatmul.bf16.vlgmr.msra.gmra.mxu1 %v399_v26  ;;  %319 = vmatmul.bf16.vlgmr.msra.gmra.mxu3 %v431_v27 }
  0x31   :  { %255 = vmatmul.bf16.gmra.mxu0 %v403_v36  ;;  %275 = vmatmul.bf16.gmra.mxu2 %v435_v37 }
  0x32   :  { %304 = vmatmul.bf16.gmra.mxu1 %v407_v38  ;;  %324 = vmatmul.bf16.gmra.mxu3 %v439_v39 }
  0x41   :  { %260 = vmatmul.bf16.gmra.mxu0 %v411_v48  ;;  %280 = vmatmul.bf16.gmra.mxu2 %v443_v49 }
  0x42   :  { %309 = vmatmul.bf16.gmra.mxu1 %v415_v50  ;;  %329 = vmatmul.bf16.gmra.mxu3 %v447_v51 }
  0x51   :  { %265 = vmatmul.bf16.gmra.mxu0 %v419_v60  ;;  %285 = vmatmul.bf16.gmra.mxu2 %v451_v61 }
  0x52   :  { %314 = vmatmul.bf16.gmra.mxu1 %v423_v62  ;;  %334 = vmatmul.bf16.gmra.mxu3 %v455_v63 }
  0x9e   :  { %v251_v0 = vpop.f32.mrf.mxu0 }
  0x9f   :  { %v300_v2 = vpop.f32.mrf.mxu1  ;;  %v252_v3 = vadd.f32 %v783_v1, %v251_v0 }
  0xa1   :  { %v301_v7 = vadd.f32 %v300_v2, %v252_v3 }
  0xa3   :  { %v340_v12 = vmax.f32 %v301_v7, 0.0 }
  0xa4   :  { %v271_v4 = vpop.f32.mrf.mxu2 }
  0xa5   :  { %v320_v5 = vpop.f32.mrf.mxu3  ;;  %v272_v10 = vadd.f32 %v783_v1, %v271_v4 }
  0xa6   :  { %v253_v6 = vpop.f32.mrf.mxu0 }
  0xa7   :  { %v254_v8 = vadd.f32 %v783_v1, %v253_v6  ;;  %v302_v9 = vpop.f32.mrf.mxu1  ;;  %v321_v15 = vadd.f32 %v320_v5, %v272_v10 }
  0xa9   :  { %v303_v11 = vadd.f32 %v302_v9, %v254_v8  ;;  %v348_v22 = vmax.f32 %v321_v15, 0.0 }
  0xab   :  { %v341_v13 = vmax.f32 %v303_v11, 0.0 }
  0xac   :  { %v273_v14 = vpop.f32.mrf.mxu2 }
  0xad   :  { %v555_v16 = vpack.c.bf16 %v341_v13, %v340_v12  ;;  %v274_v17 = vadd.f32 %v783_v1, %v273_v14  ;;  %v322_v18 = vpop.f32.mrf.mxu3 }
  0xae   :  { %v256_v19 = vpop.f32.mrf.mxu0 }
  0xaf   :  { %556 = vst [vmem:[%s828_s3] sm:$0xff] %v555_v16   ;;  %v323_v20 = vadd.f32 %v322_v18, %v274_v17  ;;  %v305_v21 = vpop.f32.mrf.mxu1  ;;  %v257_v25 = vadd.f32 %v783_v1, %v256_v19 }
  0xb1   :  { %v349_v23 = vmax.f32 %v323_v20, 0.0  ;;  %v306_v29 = vadd.f32 %v305_v21, %v257_v25 }
  0xb3   :  { %v575_v24 = vpack.c.bf16 %v349_v23, %v348_v22  ;;  %v342_v34 = vmax.f32 %v306_v29, 0.0 }
  0xb4   :  { %v276_v26 = vpop.f32.mrf.mxu2 }
  0xb5   :  { %595 = vst [vmem:[%s828_s3 + $0x20] sm:$0xff] %v575_v24   ;;  %v325_v27 = vpop.f32.mrf.mxu3  ;;  %v277_v32 = vadd.f32 %v783_v1, %v276_v26 }
  0xb6   :  { %v258_v28 = vpop.f32.mrf.mxu0 }
  0xb7   :  { %v259_v30 = vadd.f32 %v783_v1, %v258_v28  ;;  %v307_v31 = vpop.f32.mrf.mxu1  ;;  %v326_v37 = vadd.f32 %v325_v27, %v277_v32 }
  0xb9   :  { %v308_v33 = vadd.f32 %v307_v31, %v259_v30  ;;  %v350_v44 = vmax.f32 %v326_v37, 0.0 }
  0xbb   :  { %v343_v35 = vmax.f32 %v308_v33, 0.0 }
  0xbc   :  { %v278_v36 = vpop.f32.mrf.mxu2 }
  0xbd   :  { %v560_v38 = vpack.c.bf16 %v343_v35, %v342_v34  ;;  %v279_v39 = vadd.f32 %v783_v1, %v278_v36  ;;  %v327_v40 = vpop.f32.mrf.mxu3 }
  0xbe   :  { %v261_v41 = vpop.f32.mrf.mxu0 }
  0xbf   :  { %592 = vst [vmem:[%s828_s3 + $0x8] sm:$0xff] %v560_v38   ;;  %v328_v42 = vadd.f32 %v327_v40, %v279_v39  ;;  %v310_v43 = vpop.f32.mrf.mxu1  ;;  %v262_v47 = vadd.f32 %v783_v1, %v261_v41 }
  0xc1   :  { %v351_v45 = vmax.f32 %v328_v42, 0.0  ;;  %v311_v51 = vadd.f32 %v310_v43, %v262_v47 }
  0xc3   :  { %v580_v46 = vpack.c.bf16 %v351_v45, %v350_v44  ;;  %v344_v56 = vmax.f32 %v311_v51, 0.0 }
  0xc4   :  { %v281_v48 = vpop.f32.mrf.mxu2 }
  0xc5   :  { %596 = vst [vmem:[%s828_s3 + $0x28] sm:$0xff] %v580_v46   ;;  %v330_v49 = vpop.f32.mrf.mxu3  ;;  %v282_v54 = vadd.f32 %v783_v1, %v281_v48 }
  0xc6   :  { %v263_v50 = vpop.f32.mrf.mxu0 }
  0xc7   :  { %v264_v52 = vadd.f32 %v783_v1, %v263_v50  ;;  %v312_v53 = vpop.f32.mrf.mxu1  ;;  %v331_v59 = vadd.f32 %v330_v49, %v282_v54 }
  0xc9   :  { %v313_v55 = vadd.f32 %v312_v53, %v264_v52  ;;  %v352_v3 = vmax.f32 %v331_v59, 0.0 }
  0xcb   :  { %v345_v57 = vmax.f32 %v313_v55, 0.0 }
  0xcc   :  { %v283_v58 = vpop.f32.mrf.mxu2 }
  0xcd   :  { %v565_v60 = vpack.c.bf16 %v345_v57, %v344_v56  ;;  %v284_v61 = vadd.f32 %v783_v1, %v283_v58  ;;  %v332_v62 = vpop.f32.mrf.mxu3 }
  0xce   :  { %v266_v63 = vpop.f32.mrf.mxu0 }
  0xcf   :  { %593 = vst [vmem:[%s828_s3 + $0x10] sm:$0xff] %v565_v60   ;;  %v333_v0 = vadd.f32 %v332_v62, %v284_v61  ;;  %v315_v2 = vpop.f32.mrf.mxu1  ;;  %v267_v6 = vadd.f32 %v783_v1, %v266_v63 }
  0xd1   :  { %v353_v4 = vmax.f32 %v333_v0, 0.0  ;;  %v316_v10 = vadd.f32 %v315_v2, %v267_v6 }
  0xd3   :  { %v585_v5 = vpack.c.bf16 %v353_v4, %v352_v3  ;;  %v346_v15 = vmax.f32 %v316_v10, 0.0 }
  0xd4   :  { %v286_v7 = vpop.f32.mrf.mxu2 }
  0xd5   :  { %597 = vst [vmem:[%s828_s3 + $0x30] sm:$0xff] %v585_v5   ;;  %v335_v8 = vpop.f32.mrf.mxu3  ;;  %v287_v13 = vadd.f32 %v783_v1, %v286_v7 }
  0xd6   :  { %v268_v9 = vpop.f32.mrf.mxu0 }
  0xd7   :  { %v269_v11 = vadd.f32 %v783_v1, %v268_v9  ;;  %v317_v12 = vpop.f32.mrf.mxu1  ;;  %v336_v18 = vadd.f32 %v335_v8, %v287_v13 }
  0xd9   :  { %v318_v14 = vadd.f32 %v317_v12, %v269_v11  ;;  %v354_v23 = vmax.f32 %v336_v18, 0.0 }
  0xdb   :  { %v347_v16 = vmax.f32 %v318_v14, 0.0 }
  0xdc   :  { %v288_v17 = vpop.f32.mrf.mxu2 }
  0xdd   :  { %v570_v19 = vpack.c.bf16 %v347_v16, %v346_v15  ;;  %v289_v20 = vadd.f32 %v783_v1, %v288_v17  ;;  %v337_v21 = vpop.f32.mrf.mxu3 }
  0xdf   :  { %594 = vst [vmem:[%s828_s3 + $0x18] sm:$0xff] %v570_v19   ;;  %v338_v22 = vadd.f32 %v337_v21, %v289_v20 }
  0xe1   :  { %v355_v24 = vmax.f32 %v338_v22, 0.0 }
  0xe3   :  { %v590_v25 = vpack.c.bf16 %v355_v24, %v354_v23 }
  0xe5   :  { %598 = vst [vmem:[%s828_s3 + $0x38] sm:$0xff] %v590_v25  }

// kernel: faster_rcnn_forward.12
= control target key start
LH: loop header
LB: loop body
LE: loop exit
PB: predicated region body
PF: predicated region fallthrough
CT: control target
= control target key end

     0   :  { %s469_s1 = inlined_call_operand.vmem [shape: bf16[256,128], index: 1, kind: input, shape index: {}]   ;;  %s470_s2 = inlined_call_operand.vmem [shape: f32[1,128], index: 2, kind: input, shape index: {}]   ;;  %s471_s0 = inlined_call_operand.vmem [shape: bf16[32,256], index: 0, kind: input, shape index: {}]   ;;  %s472_s3 = inlined_call_operand.vmem [shape: bf16[32,128], index: 3, kind: output, shape index: {}]  }
   0x1   :  { %v331_v0 = vld [vmem:[%s469_s1 + $0x38] sm:$0xff]  ;;  %v330_v2 = vld [vmem:[%s469_s1 + $0x30] sm:$0xff]  ;;  %v329_v4 = vld [vmem:[%s469_s1 + $0x28] sm:$0xff] }
   0x2   :  { %v339_v1 = vld [vmem:[%s469_s1 + $0x78] sm:$0xff]  ;;  %170 = vmatpush.bf16.msra.mxu0 %v331_v0  ;;  %351 = vmatpush.bf16.msra.mxu2 %v331_v0  ;;  %v338_v3 = vld [vmem:[%s469_s1 + $0x70] sm:$0xff]  ;;  %v337_v5 = vld [vmem:[%s469_s1 + $0x68] sm:$0xff] }
   0x3   :  { %189 = vmatpush.bf16.msra.mxu1 %v339_v1  ;;  %359 = vmatpush.bf16.msra.mxu3 %v339_v1  ;;  %v328_v6 = vld [vmem:[%s469_s1 + $0x20] sm:$0xff]  ;;  %v327_v8 = vld [vmem:[%s469_s1 + $0x18] sm:$0xff]  ;;  %v326_v10 = vld [vmem:[%s469_s1 + $0x10] sm:$0xff] }
   0x4   :  { %v336_v7 = vld [vmem:[%s469_s1 + $0x60] sm:$0xff]  ;;  %v335_v9 = vld [vmem:[%s469_s1 + $0x58] sm:$0xff]  ;;  %v334_v11 = vld [vmem:[%s469_s1 + $0x50] sm:$0xff] }
   0x5   :  { %v325_v12 = vld [vmem:[%s469_s1 + $0x8] sm:$0xff]  ;;  %v324_v14 = vld [vmem:[%s469_s1] sm:$0xff]  ;;  %v250_v18 = vld [vmem:[%s471_s0 + $0x10] sm:$0xf] }
   0x6   :  { %171 = vmatpush.bf16.msra.mxu0 %v330_v2  ;;  %352 = vmatpush.bf16.msra.mxu2 %v330_v2  ;;  %v333_v13 = vld [vmem:[%s469_s1 + $0x48] sm:$0xff]  ;;  %v332_v15 = vld [vmem:[%s469_s1 + $0x40] sm:$0xff]  ;;  %v323_v19 = vld [vmem:[%s471_s0 + $0x14] sm:$0xf0] }
   0x7   :  { %190 = vmatpush.bf16.msra.mxu1 %v338_v3  ;;  %360 = vmatpush.bf16.msra.mxu3 %v338_v3  ;;  %v242_v16 = vld [vmem:[%s471_s0] sm:$0xf]  ;;  %v321_v17 = vld [vmem:[%s471_s0 + $0x4] sm:$0xf0]  ;;  %v320_v20 = vld [vmem:[%s471_s0 + $0x4] sm:$0xf]  ;;  %v251_v25 = vor.u32 %v323_v19, %v250_v18 }
   0x8   :  { %v244_v21 = vld [vmem:[%s471_s0 + $0x8] sm:$0xf0]  ;;  %v322_v22 = vld [vmem:[%s471_s0 + $0x14] sm:$0xf]  ;;  %v252_v23 = vld [vmem:[%s471_s0 + $0x18] sm:$0xf0]  ;;  %v243_v24 = vor.u32 %v321_v17, %v242_v16 }
   0x9   :  { %v247_v26 = vor.u32 %v320_v20, %v244_v21  ;;  %v255_v27 = vor.u32 %v322_v22, %v252_v23  ;;  %v367_v28 = vld [vmem:[%s470_s2] ss:$0 sm:$0xff] }
   0xa   :  { %172 = vmatpush.bf16.msra.mxu0 %v329_v4  ;;  %353 = vmatpush.bf16.msra.mxu2 %v329_v4 }
   0xb   :  { %191 = vmatpush.bf16.msra.mxu1 %v337_v5  ;;  %361 = vmatpush.bf16.msra.mxu3 %v337_v5 }
   0xe   :  { %173 = vmatpush.bf16.msra.mxu0 %v328_v6  ;;  %354 = vmatpush.bf16.msra.mxu2 %v328_v6 }
   0xf   :  { %192 = vmatpush.bf16.msra.mxu1 %v336_v7  ;;  %362 = vmatpush.bf16.msra.mxu3 %v336_v7 }
  0x12   :  { %174 = vmatpush.bf16.msra.mxu0 %v327_v8  ;;  %355 = vmatpush.bf16.msra.mxu2 %v327_v8 }
  0x13   :  { %193 = vmatpush.bf16.msra.mxu1 %v335_v9  ;;  %363 = vmatpush.bf16.msra.mxu3 %v335_v9 }
  0x16   :  { %175 = vmatpush.bf16.msra.mxu0 %v326_v10  ;;  %356 = vmatpush.bf16.msra.mxu2 %v326_v10 }
  0x17   :  { %194 = vmatpush.bf16.msra.mxu1 %v334_v11  ;;  %364 = vmatpush.bf16.msra.mxu3 %v334_v11 }
  0x1a   :  { %176 = vmatpush.bf16.msra.mxu0 %v325_v12  ;;  %357 = vmatpush.bf16.msra.mxu2 %v325_v12 }
  0x1b   :  { %195 = vmatpush.bf16.msra.mxu1 %v333_v13  ;;  %365 = vmatpush.bf16.msra.mxu3 %v333_v13 }
  0x1e   :  { %177 = vmatpush.bf16.msra.mxu0 %v324_v14  ;;  %358 = vmatpush.bf16.msra.mxu2 %v324_v14 }
  0x1f   :  { %196 = vmatpush.bf16.msra.mxu1 %v332_v15  ;;  %366 = vmatpush.bf16.msra.mxu3 %v332_v15 }
  0x21   :  { %178 = vmatmul.bf16.vlgmr.msra.gmra.mxu0 %v243_v24  ;;  %183 = vmatmul.bf16.vlgmr.msra.gmra.mxu2 %v251_v25 }
  0x22   :  { %197 = vmatmul.bf16.vlgmr.msra.gmra.mxu1 %v247_v26  ;;  %202 = vmatmul.bf16.vlgmr.msra.gmra.mxu3 %v255_v27 }
  0x9e   :  { %v179_v29 = vpop.f32.mrf.mxu0 }
  0x9f   :  { %v180_v30 = vadd.f32 %v367_v28, %v179_v29  ;;  %v198_v31 = vpop.f32.mrf.mxu1 }
  0xa1   :  { %v199_v32 = vadd.f32 %v198_v31, %v180_v30 }
  0xa3   :  { %v208_v33 = vadd.f32 3.0, %v199_v32 }
  0xa4   :  { %v184_v34 = vpop.f32.mrf.mxu2 }
  0xa5   :  { %v185_v35 = vadd.f32 %v367_v28, %v184_v34  ;;  %v203_v36 = vpop.f32.mrf.mxu3  ;;  %v212_v38 = vmax.f32 %v208_v33, 0.0 }
  0xa6   :  { %v181_v37 = vpop.f32.mrf.mxu0 }
  0xa7   :  { %v204_v39 = vadd.f32 %v203_v36, %v185_v35  ;;  %v182_v40 = vadd.f32 %v367_v28, %v181_v37  ;;  %v200_v41 = vpop.f32.mrf.mxu1  ;;  %v216_v44 = vmin.f32 %v212_v38, 6.0 }
  0xa9   :  { %v210_v42 = vadd.f32 3.0, %v204_v39  ;;  %v201_v43 = vadd.f32 %v200_v41, %v182_v40  ;;  %v220_v51 = vmul.f32 %v216_v44, %v199_v32 }
  0xab   :  { %v209_v45 = vadd.f32 3.0, %v201_v43  ;;  %v214_v47 = vmax.f32 %v210_v42, 0.0  ;;  %v224_v57 = vmul.f32 0.16666667, %v220_v51 }
  0xac   :  { %v186_v46 = vpop.f32.mrf.mxu2 }
  0xad   :  { %v213_v48 = vmax.f32 %v209_v45, 0.0  ;;  %v187_v49 = vadd.f32 %v367_v28, %v186_v46  ;;  %v205_v50 = vpop.f32.mrf.mxu3  ;;  %v218_v54 = vmin.f32 %v214_v47, 6.0 }
  0xaf   :  { %v217_v52 = vmin.f32 %v213_v48, 6.0  ;;  %v206_v53 = vadd.f32 %v205_v50, %v187_v49  ;;  %v222_v60 = vmul.f32 %v218_v54, %v204_v39 }
  0xb1   :  { %v221_v55 = vmul.f32 %v217_v52, %v201_v43  ;;  %v211_v56 = vadd.f32 3.0, %v206_v53  ;;  %v226_v0 = vmul.f32 0.16666667, %v222_v60 }
  0xb3   :  { %v225_v58 = vmul.f32 0.16666667, %v221_v55  ;;  %v215_v59 = vmax.f32 %v211_v56, 0.0 }
  0xb5   :  { %v343_v61 = vpack.c.bf16 %v225_v58, %v224_v57  ;;  %v219_v62 = vmin.f32 %v215_v59, 6.0 }
  0xb7   :  { %344 = vst [vmem:[%s472_s3] sm:$0xff] %v343_v61   ;;  %v223_v63 = vmul.f32 %v219_v62, %v206_v53 }
  0xb9   :  { %v227_v1 = vmul.f32 0.16666667, %v223_v63 }
  0xbb   :  { %v348_v2 = vpack.c.bf16 %v227_v1, %v226_v0 }
  0xbd   :  { %350 = vst [vmem:[%s472_s3 + $0x8] sm:$0xff] %v348_v2  }

// kernel: faster_rcnn_forward.13
= control target key start
LH: loop header
LB: loop body
LE: loop exit
PB: predicated region body
PF: predicated region fallthrough
CT: control target
= control target key end

     0   :  { %s258_s1 = inlined_call_operand.vmem [shape: bf16[128,128], index: 1, kind: input, shape index: {}]   ;;  %s259_s2 = inlined_call_operand.vmem [shape: f32[1,128], index: 2, kind: input, shape index: {}]   ;;  %s260_s0 = inlined_call_operand.vmem [shape: bf16[32,128], index: 0, kind: input, shape index: {}]   ;;  %s261_s3 = inlined_call_operand.vmem [shape: bf16[32,128], index: 3, kind: output, shape index: {}]  }
   0x1   :  { %v178_v0 = vld [vmem:[%s258_s1 + $0x38] sm:$0xff]  ;;  %v177_v1 = vld [vmem:[%s258_s1 + $0x30] sm:$0xff]  ;;  %v176_v2 = vld [vmem:[%s258_s1 + $0x28] sm:$0xff] }
   0x2   :  { %98 = vmatpush.bf16.msra.mxu0 %v178_v0  ;;  %190 = vmatpush.bf16.msra.mxu1 %v178_v0  ;;  %v175_v3 = vld [vmem:[%s258_s1 + $0x20] sm:$0xff]  ;;  %v174_v4 = vld [vmem:[%s258_s1 + $0x18] sm:$0xff]  ;;  %v173_v5 = vld [vmem:[%s258_s1 + $0x10] sm:$0xff] }
   0x3   :  { %v172_v6 = vld [vmem:[%s258_s1 + $0x8] sm:$0xff]  ;;  %v171_v7 = vld [vmem:[%s258_s1] sm:$0xff] }
   0x4   :  { %v169_v8 = vld [vmem:[%s260_s0] sm:$0xff]  ;;  %v170_v9 = vld [vmem:[%s260_s0 + $0x8] sm:$0xff] }
   0x5   :  { %v198_v12 = vld [vmem:[%s259_s2] ss:$0 sm:$0xff] }
   0x6   :  { %99 = vmatpush.bf16.msra.mxu0 %v177_v1  ;;  %191 = vmatpush.bf16.msra.mxu1 %v177_v1 }
   0xa   :  { %100 = vmatpush.bf16.msra.mxu0 %v176_v2  ;;  %192 = vmatpush.bf16.msra.mxu1 %v176_v2 }
   0xe   :  { %101 = vmatpush.bf16.msra.mxu0 %v175_v3  ;;  %193 = vmatpush.bf16.msra.mxu1 %v175_v3 }
  0x12   :  { %102 = vmatpush.bf16.msra.mxu0 %v174_v4  ;;  %194 = vmatpush.bf16.msra.mxu1 %v174_v4 }
  0x16   :  { %103 = vmatpush.bf16.msra.mxu0 %v173_v5  ;;  %195 = vmatpush.bf16.msra.mxu1 %v173_v5 }
  0x1a   :  { %104 = vmatpush.bf16.msra.mxu0 %v172_v6  ;;  %196 = vmatpush.bf16.msra.mxu1 %v172_v6 }
  0x1e   :  { %105 = vmatpush.bf16.msra.mxu0 %v171_v7  ;;  %197 = vmatpush.bf16.msra.mxu1 %v171_v7 }
  0x21   :  { %106 = vmatmul.bf16.vlgmr.msra.gmra.mxu0 %v169_v8  ;;  %111 = vmatmul.bf16.vlgmr.msra.gmra.mxu1 %v170_v9 }
  0x9e   :  { %v107_v10 = vpop.f32.mrf.mxu0  ;;  %v112_v11 = vpop.f32.mrf.mxu1 }
  0x9f   :  { %v108_v15 = vadd.f32 %v198_v12, %v107_v10  ;;  %v113_v16 = vadd.f32 %v198_v12, %v112_v11 }
  0xa6   :  { %v109_v13 = vpop.f32.mrf.mxu0  ;;  %v114_v14 = vpop.f32.mrf.mxu1 }
  0xa7   :  { %v110_v17 = vadd.f32 %v198_v12, %v109_v13  ;;  %v115_v18 = vadd.f32 %v198_v12, %v114_v14 }
  0xa9   :  { %v182_v19 = vpack.c.bf16 %v110_v17, %v108_v15  ;;  %v187_v20 = vpack.c.bf16 %v115_v18, %v113_v16 }
  0xab   :  { %183 = vst [vmem:[%s261_s3] sm:$0xff] %v182_v19  }
  0xac   :  { %189 = vst [vmem:[%s261_s3 + $0x8] sm:$0xff] %v187_v20  }

// kernel: faster_rcnn_forward.14
= control target key start
LH: loop header
LB: loop body
LE: loop exit
PB: predicated region body
PF: predicated region fallthrough
CT: control target
= control target key end

     0   :  { %s478_s1 = inlined_call_operand.vmem [shape: bf16[128,128], index: 1, kind: input, shape index: {}]   ;;  %s479_s2 = inlined_call_operand.vmem [shape: f32[1,128], index: 2, kind: input, shape index: {}]   ;;  %s480_s0 = inlined_call_operand.vmem [shape: bf16[128,128], index: 0, kind: input, shape index: {}]   ;;  %s481_s3 = inlined_call_operand.vmem [shape: bf16[128,128], index: 3, kind: output, shape index: {}]  }
   0x1   :  { %v310_v0 = vld [vmem:[%s478_s1 + $0x38] sm:$0xff]  ;;  %v309_v1 = vld [vmem:[%s478_s1 + $0x30] sm:$0xff]  ;;  %v308_v2 = vld [vmem:[%s478_s1 + $0x28] sm:$0xff] }
   0x2   :  { %146 = vmatpush.bf16.msra.mxu0 %v310_v0  ;;  %358 = vmatpush.bf16.msra.mxu1 %v310_v0  ;;  %v307_v3 = vld [vmem:[%s478_s1 + $0x20] sm:$0xff]  ;;  %v306_v4 = vld [vmem:[%s478_s1 + $0x18] sm:$0xff]  ;;  %v305_v5 = vld [vmem:[%s478_s1 + $0x10] sm:$0xff] }
   0x3   :  { %359 = vmatpush.bf16.msra.mxu2 %v310_v0  ;;  %360 = vmatpush.bf16.msra.mxu3 %v310_v0  ;;  %v304_v6 = vld [vmem:[%s478_s1 + $0x8] sm:$0xff]  ;;  %v303_v7 = vld [vmem:[%s478_s1] sm:$0xff]  ;;  %v297_v9 = vld [vmem:[%s480_s0 + $0x10] sm:$0xff] }
   0x4   :  { %v295_v8 = vld [vmem:[%s480_s0] sm:$0xff]  ;;  %v301_v11 = vld [vmem:[%s480_s0 + $0x30] sm:$0xff]  ;;  %v296_v12 = vld [vmem:[%s480_s0 + $0x8] sm:$0xff] }
   0x5   :  { %v299_v10 = vld [vmem:[%s480_s0 + $0x20] sm:$0xff]  ;;  %v298_v13 = vld [vmem:[%s480_s0 + $0x18] sm:$0xff]  ;;  %v300_v14 = vld [vmem:[%s480_s0 + $0x28] sm:$0xff] }
   0x6   :  { %147 = vmatpush.bf16.msra.mxu0 %v309_v1  ;;  %361 = vmatpush.bf16.msra.mxu1 %v309_v1  ;;  %v302_v15 = vld [vmem:[%s480_s0 + $0x38] sm:$0xff]  ;;  %v382_v18 = vld [vmem:[%s479_s2] ss:$0 sm:$0xff] }
   0x7   :  { %362 = vmatpush.bf16.msra.mxu2 %v309_v1  ;;  %363 = vmatpush.bf16.msra.mxu3 %v309_v1 }
   0xa   :  { %148 = vmatpush.bf16.msra.mxu0 %v308_v2  ;;  %364 = vmatpush.bf16.msra.mxu1 %v308_v2 }
   0xb   :  { %365 = vmatpush.bf16.msra.mxu2 %v308_v2  ;;  %366 = vmatpush.bf16.msra.mxu3 %v308_v2 }
   0xe   :  { %149 = vmatpush.bf16.msra.mxu0 %v307_v3  ;;  %367 = vmatpush.bf16.msra.mxu1 %v307_v3 }
   0xf   :  { %368 = vmatpush.bf16.msra.mxu2 %v307_v3  ;;  %369 = vmatpush.bf16.msra.mxu3 %v307_v3 }
  0x12   :  { %150 = vmatpush.bf16.msra.mxu0 %v306_v4  ;;  %370 = vmatpush.bf16.msra.mxu1 %v306_v4 }
  0x13   :  { %371 = vmatpush.bf16.msra.mxu2 %v306_v4  ;;  %372 = vmatpush.bf16.msra.mxu3 %v306_v4 }
  0x16   :  { %151 = vmatpush.bf16.msra.mxu0 %v305_v5  ;;  %373 = vmatpush.bf16.msra.mxu1 %v305_v5 }
  0x17   :  { %374 = vmatpush.bf16.msra.mxu2 %v305_v5  ;;  %375 = vmatpush.bf16.msra.mxu3 %v305_v5 }
  0x1a   :  { %152 = vmatpush.bf16.msra.mxu0 %v304_v6  ;;  %376 = vmatpush.bf16.msra.mxu1 %v304_v6 }
  0x1b   :  { %377 = vmatpush.bf16.msra.mxu2 %v304_v6  ;;  %378 = vmatpush.bf16.msra.mxu3 %v304_v6 }
  0x1e   :  { %153 = vmatpush.bf16.msra.mxu0 %v303_v7  ;;  %379 = vmatpush.bf16.msra.mxu1 %v303_v7 }
  0x1f   :  { %380 = vmatpush.bf16.msra.mxu2 %v303_v7  ;;  %381 = vmatpush.bf16.msra.mxu3 %v303_v7 }
  0x21   :  { %154 = vmatmul.bf16.vlgmr.msra.gmra.mxu0 %v295_v8  ;;  %164 = vmatmul.bf16.vlgmr.msra.gmra.mxu1 %v297_v9 }
  0x22   :  { %174 = vmatmul.bf16.vlgmr.msra.gmra.mxu2 %v299_v10  ;;  %184 = vmatmul.bf16.vlgmr.msra.gmra.mxu3 %v301_v11 }
  0x31   :  { %159 = vmatmul.bf16.gmra.mxu0 %v296_v12  ;;  %169 = vmatmul.bf16.gmra.mxu1 %v298_v13 }
  0x32   :  { %179 = vmatmul.bf16.gmra.mxu2 %v300_v14  ;;  %189 = vmatmul.bf16.gmra.mxu3 %v302_v15 }
  0x9e   :  { %v155_v16 = vpop.f32.mrf.mxu0  ;;  %v165_v17 = vpop.f32.mrf.mxu1 }
  0x9f   :  { %v156_v23 = vadd.f32 %v382_v18, %v155_v16  ;;  %v166_v24 = vadd.f32 %v382_v18, %v165_v17 }
  0xa5   :  { %v175_v19 = vpop.f32.mrf.mxu2  ;;  %v185_v20 = vpop.f32.mrf.mxu3 }
  0xa6   :  { %v157_v21 = vpop.f32.mrf.mxu0  ;;  %v167_v22 = vpop.f32.mrf.mxu1  ;;  %v176_v31 = vadd.f32 %v382_v18, %v175_v19  ;;  %v186_v32 = vadd.f32 %v382_v18, %v185_v20 }
  0xa7   :  { %v158_v25 = vadd.f32 %v382_v18, %v157_v21  ;;  %v168_v26 = vadd.f32 %v382_v18, %v167_v22 }
  0xa9   :  { %v314_v27 = vpack.c.bf16 %v158_v25, %v156_v23  ;;  %v324_v28 = vpack.c.bf16 %v168_v26, %v166_v24 }
  0xab   :  { %315 = vst [vmem:[%s481_s3] sm:$0xff] %v314_v27  }
  0xac   :  { %352 = vst [vmem:[%s481_s3 + $0x10] sm:$0xff] %v324_v28  }
  0xad   :  { %v177_v29 = vpop.f32.mrf.mxu2  ;;  %v187_v30 = vpop.f32.mrf.mxu3 }
  0xae   :  { %v178_v33 = vadd.f32 %v382_v18, %v177_v29  ;;  %v188_v34 = vadd.f32 %v382_v18, %v187_v30  ;;  %v160_v35 = vpop.f32.mrf.mxu0  ;;  %v170_v36 = vpop.f32.mrf.mxu1 }
  0xaf   :  { %v161_v43 = vadd.f32 %v382_v18, %v160_v35  ;;  %v171_v44 = vadd.f32 %v382_v18, %v170_v36 }
  0xb0   :  { %v334_v37 = vpack.c.bf16 %v178_v33, %v176_v31  ;;  %v344_v38 = vpack.c.bf16 %v188_v34, %v186_v32 }
  0xb2   :  { %354 = vst [vmem:[%s481_s3 + $0x20] sm:$0xff] %v334_v37  }
  0xb3   :  { %356 = vst [vmem:[%s481_s3 + $0x30] sm:$0xff] %v344_v38  }
  0xb5   :  { %v180_v39 = vpop.f32.mrf.mxu2  ;;  %v190_v40 = vpop.f32.mrf.mxu3 }
  0xb6   :  { %v162_v41 = vpop.f32.mrf.mxu0  ;;  %v172_v42 = vpop.f32.mrf.mxu1  ;;  %v181_v51 = vadd.f32 %v382_v18, %v180_v39  ;;  %v191_v52 = vadd.f32 %v382_v18, %v190_v40 }
  0xb7   :  { %v163_v45 = vadd.f32 %v382_v18, %v162_v41  ;;  %v173_v46 = vadd.f32 %v382_v18, %v172_v42 }
  0xb9   :  { %v319_v47 = vpack.c.bf16 %v163_v45, %v161_v43  ;;  %v329_v48 = vpack.c.bf16 %v173_v46, %v171_v44 }
  0xbb   :  { %351 = vst [vmem:[%s481_s3 + $0x8] sm:$0xff] %v319_v47  }
  0xbc   :  { %353 = vst [vmem:[%s481_s3 + $0x18] sm:$0xff] %v329_v48  }
  0xbd   :  { %v182_v49 = vpop.f32.mrf.mxu2  ;;  %v192_v50 = vpop.f32.mrf.mxu3 }
  0xbe   :  { %v183_v53 = vadd.f32 %v382_v18, %v182_v49  ;;  %v193_v54 = vadd.f32 %v382_v18, %v192_v50 }
  0xc0   :  { %v339_v55 = vpack.c.bf16 %v183_v53, %v181_v51  ;;  %v349_v56 = vpack.c.bf16 %v193_v54, %v191_v52 }
  0xc2   :  { %355 = vst [vmem:[%s481_s3 + $0x28] sm:$0xff] %v339_v55  }
  0xc3   :  { %357 = vst [vmem:[%s481_s3 + $0x38] sm:$0xff] %v349_v56  }

// kernel: faster_rcnn_forward.16
= control target key start
LH: loop header
LB: loop body
LE: loop exit
PB: predicated region body
PF: predicated region fallthrough
CT: control target
= control target key end

     0   :  { %s1198_s1 = inlined_call_operand.vmem [shape: bf16[384,128], index: 1, kind: input, shape index: {}]   ;;  %s1199_s2 = inlined_call_operand.vmem [shape: f32[1,128], index: 2, kind: input, shape index: {}]   ;;  %s1200_s0 = inlined_call_operand.vmem [shape: bf16[128,384], index: 0, kind: input, shape index: {}]   ;;  %s1201_s3 = inlined_call_operand.vmem [shape: bf16[128,128], index: 3, kind: output, shape index: {}]  }
   0x1   :  { %v776_v0 = vld [vmem:[%s1198_s1 + $0x38] sm:$0xff]  ;;  %v775_v3 = vld [vmem:[%s1198_s1 + $0x30] sm:$0xff]  ;;  %v774_v6 = vld [vmem:[%s1198_s1 + $0x28] sm:$0xff] }
   0x2   :  { %v891_v1 = vld [vmem:[%s1198_s1 + $0x78] sm:$0xff]  ;;  %370 = vmatpush.bf16.msra.mxu0 %v776_v0  ;;  %840 = vmatpush.bf16.msra.mxu3 %v776_v0  ;;  %v906_v4 = vld [vmem:[%s1198_s1 + $0x70] sm:$0xff]  ;;  %v782_v7 = vld [vmem:[%s1198_s1 + $0x68] sm:$0xff] }
   0x3   :  { %v896_v2 = vld [vmem:[%s1198_s1 + $0xb8] sm:$0xff]  ;;  %419 = vmatpush.bf16.msra.mxu1 %v891_v1  ;;  %v911_v5 = vld [vmem:[%s1198_s1 + $0xb0] sm:$0xff]  ;;  %v924_v8 = vld [vmem:[%s1198_s1 + $0xa8] sm:$0xff] }
   0x4   :  { %468 = vmatpush.bf16.msra.mxu2 %v896_v2  ;;  %v773_v9 = vld [vmem:[%s1198_s1 + $0x20] sm:$0xff]  ;;  %v772_v12 = vld [vmem:[%s1198_s1 + $0x18] sm:$0xff]  ;;  %v771_v15 = vld [vmem:[%s1198_s1 + $0x10] sm:$0xff] }
   0x5   :  { %v781_v10 = vld [vmem:[%s1198_s1 + $0x60] sm:$0xff]  ;;  %v780_v13 = vld [vmem:[%s1198_s1 + $0x58] sm:$0xff]  ;;  %v779_v16 = vld [vmem:[%s1198_s1 + $0x50] sm:$0xff] }
   0x6   :  { %371 = vmatpush.bf16.msra.mxu0 %v775_v3  ;;  %841 = vmatpush.bf16.msra.mxu3 %v775_v3  ;;  %v936_v11 = vld [vmem:[%s1198_s1 + $0xa0] sm:$0xff]  ;;  %v948_v14 = vld [vmem:[%s1198_s1 + $0x98] sm:$0xff]  ;;  %v960_v17 = vld [vmem:[%s1198_s1 + $0x90] sm:$0xff] }
   0x7   :  { %420 = vmatpush.bf16.msra.mxu1 %v906_v4  ;;  %v770_v18 = vld [vmem:[%s1198_s1 + $0x8] sm:$0xff]  ;;  %v769_v21 = vld [vmem:[%s1198_s1] sm:$0xff]  ;;  %v627_v26 = vld [vmem:[%s1200_s0 + $0x90] sm:$0xf] }
   0x8   :  { %469 = vmatpush.bf16.msra.mxu2 %v911_v5  ;;  %v778_v19 = vld [vmem:[%s1198_s1 + $0x48] sm:$0xff]  ;;  %v777_v22 = vld [vmem:[%s1198_s1 + $0x40] sm:$0xff]  ;;  %v764_v27 = vld [vmem:[%s1200_s0 + $0x98] sm:$0xf0] }
   0x9   :  { %v972_v20 = vld [vmem:[%s1198_s1 + $0x88] sm:$0xff]  ;;  %v983_v23 = vld [vmem:[%s1198_s1 + $0x80] sm:$0xff]  ;;  %v557_v29 = vld [vmem:[%s1200_s0 + $0xc] sm:$0xf0]  ;;  %v628_v33 = vor.u32 %v764_v27, %v627_v26 }
   0xa   :  { %372 = vmatpush.bf16.msra.mxu0 %v774_v6  ;;  %842 = vmatpush.bf16.msra.mxu3 %v774_v6  ;;  %v555_v24 = vld [vmem:[%s1200_s0] sm:$0xf]  ;;  %v746_v25 = vld [vmem:[%s1200_s0 + $0x8] sm:$0xf0]  ;;  %v745_v28 = vld [vmem:[%s1200_s0 + $0x4] sm:$0xf] }
   0xb   :  { %421 = vmatpush.bf16.msra.mxu1 %v782_v7  ;;  %v563_v30 = vld [vmem:[%s1200_s0 + $0x8] sm:$0xf]  ;;  %v747_v31 = vld [vmem:[%s1200_s0 + $0x10] sm:$0xf0]  ;;  %v556_v32 = vor.u32 %v746_v25, %v555_v24  ;;  %v560_v34 = vor.u32 %v745_v28, %v557_v29  ;;  %v567_v36 = vld [vmem:[%s1200_s0 + $0x18] sm:$0xf] }
   0xc   :  { %470 = vmatpush.bf16.msra.mxu2 %v924_v8  ;;  %v564_v35 = vor.u32 %v747_v31, %v563_v30  ;;  %v749_v37 = vld [vmem:[%s1200_s0 + $0x20] sm:$0xf0]  ;;  %v639_v38 = vld [vmem:[%s1200_s0 + $0xa8] sm:$0xf]  ;;  %v767_v39 = vld [vmem:[%s1200_s0 + $0xb0] sm:$0xf0] }
   0xd   :  { %v748_v40 = vld [vmem:[%s1200_s0 + $0x1c] sm:$0xf]  ;;  %v569_v41 = vld [vmem:[%s1200_s0 + $0x24] sm:$0xf0]  ;;  %v575_v42 = vld [vmem:[%s1200_s0 + $0x20] sm:$0xf]  ;;  %v568_v44 = vor.u32 %v749_v37, %v567_v36  ;;  %v640_v45 = vor.u32 %v767_v39, %v639_v38 }
   0xe   :  { %373 = vmatpush.bf16.msra.mxu0 %v773_v9  ;;  %843 = vmatpush.bf16.msra.mxu3 %v773_v9  ;;  %v750_v43 = vld [vmem:[%s1200_s0 + $0x28] sm:$0xf0]  ;;  %v572_v46 = vor.u32 %v748_v40, %v569_v41  ;;  %v579_v48 = vld [vmem:[%s1200_s0 + $0x30] sm:$0xf]  ;;  %v752_v49 = vld [vmem:[%s1200_s0 + $0x38] sm:$0xf0] }
   0xf   :  { %422 = vmatpush.bf16.msra.mxu1 %v781_v10  ;;  %v576_v47 = vor.u32 %v750_v43, %v575_v42  ;;  %v751_v50 = vld [vmem:[%s1200_s0 + $0x34] sm:$0xf]  ;;  %v629_v52 = vld [vmem:[%s1200_s0 + $0x9c] sm:$0xf0]  ;;  %v587_v54 = vld [vmem:[%s1200_s0 + $0x38] sm:$0xf]  ;;  %v580_v56 = vor.u32 %v752_v49, %v579_v48 }
  0x10   :  { %471 = vmatpush.bf16.msra.mxu2 %v936_v11  ;;  %v763_v51 = vld [vmem:[%s1200_s0 + $0x94] sm:$0xf]  ;;  %v581_v53 = vld [vmem:[%s1200_s0 + $0x3c] sm:$0xf0]  ;;  %v753_v55 = vld [vmem:[%s1200_s0 + $0x40] sm:$0xf0] }
  0x11   :  { %v632_v57 = vor.u32 %v763_v51, %v629_v52  ;;  %v584_v58 = vor.u32 %v751_v50, %v581_v53  ;;  %v588_v59 = vor.u32 %v753_v55, %v587_v54  ;;  %v591_v60 = vld [vmem:[%s1200_s0 + $0x48] sm:$0xf]  ;;  %v755_v61 = vld [vmem:[%s1200_s0 + $0x50] sm:$0xf0]  ;;  %v754_v62 = vld [vmem:[%s1200_s0 + $0x4c] sm:$0xf] }
  0x12   :  { %374 = vmatpush.bf16.msra.mxu0 %v772_v12  ;;  %844 = vmatpush.bf16.msra.mxu3 %v772_v12  ;;  %v766_v63 = vld [vmem:[%s1200_s0 + $0xac] sm:$0xf]  ;;  %v641_v0 = vld [vmem:[%s1200_s0 + $0xb4] sm:$0xf0]  ;;  %v756_v3 = vld [vmem:[%s1200_s0 + $0x58] sm:$0xf0] }
  0x13   :  { %423 = vmatpush.bf16.msra.mxu1 %v780_v13  ;;  %v758_v9 = vld [vmem:[%s1200_s0 + $0x68] sm:$0xf0]  ;;  %v765_v12 = vld [vmem:[%s1200_s0 + $0xa0] sm:$0xf0]  ;;  %v768_v24 = vld [vmem:[%s1200_s0 + $0xb8] sm:$0xf0] }
  0x14   :  { %472 = vmatpush.bf16.msra.mxu2 %v948_v14  ;;  %v617_v25 = vld [vmem:[%s1200_s0 + $0x84] sm:$0xf0]  ;;  %v623_v26 = vld [vmem:[%s1200_s0 + $0x80] sm:$0xf]  ;;  %v762_v27 = vld [vmem:[%s1200_s0 + $0x88] sm:$0xf0] }
  0x15   :  { %v624_v31 = vor.u32 %v762_v27, %v623_v26 }
  0x16   :  { %375 = vmatpush.bf16.msra.mxu0 %v771_v15  ;;  %845 = vmatpush.bf16.msra.mxu3 %v771_v15  ;;  %v759_v15 = vld [vmem:[%s1200_s0 + $0x70] sm:$0xf0] }
  0x17   :  { %424 = vmatpush.bf16.msra.mxu1 %v779_v16 }
  0x18   :  { %473 = vmatpush.bf16.msra.mxu2 %v960_v17 }
  0x1a   :  { %376 = vmatpush.bf16.msra.mxu0 %v770_v18  ;;  %846 = vmatpush.bf16.msra.mxu3 %v770_v18 }
  0x1b   :  { %425 = vmatpush.bf16.msra.mxu1 %v778_v19 }
  0x1c   :  { %474 = vmatpush.bf16.msra.mxu2 %v972_v20 }
  0x1e   :  { %377 = vmatpush.bf16.msra.mxu0 %v769_v21  ;;  %847 = vmatpush.bf16.msra.mxu3 %v769_v21  ;;  %v761_v21 = vld [vmem:[%s1200_s0 + $0x80] sm:$0xf0] }
  0x1f   :  { %426 = vmatpush.bf16.msra.mxu1 %v777_v22 }
  0x20   :  { %475 = vmatpush.bf16.msra.mxu2 %v983_v23 }
  0x21   :  { %378 = vmatmul.bf16.vlgmr.msra.gmra.mxu0 %v556_v32  ;;  %408 = vmatmul.bf16.vlgmr.msra.gmra.mxu3 %v628_v33 }
  0x22   :  { %848 = vmatpush.bf16.msrb.mxu3 %v891_v1  ;;  %427 = vmatmul.bf16.vlgmr.msra.gmra.mxu1 %v560_v34  ;;  %v593_v1 = vld [vmem:[%s1200_s0 + $0x54] sm:$0xf0]  ;;  %v1144_v34 = vld [vmem:[%s1199_s2] ss:$0 sm:$0xff] }
  0x23   :  { %476 = vmatmul.bf16.vlgmr.msra.gmra.mxu2 %v564_v35  ;;  %v596_v6 = vor.u32 %v754_v62, %v593_v1 }
  0x26   :  { %849 = vmatpush.bf16.msrb.mxu3 %v906_v4  ;;  %v592_v4 = vor.u32 %v755_v61, %v591_v60 }
  0x2a   :  { %850 = vmatpush.bf16.msrb.mxu3 %v782_v7 }
  0x2e   :  { %851 = vmatpush.bf16.msrb.mxu3 %v781_v10  ;;  %v757_v10 = vld [vmem:[%s1200_s0 + $0x64] sm:$0xf] }
  0x31   :  { %383 = vmatmul.bf16.gmra.mxu0 %v568_v44  ;;  %413 = vmatmul.bf16.gmra.mxu3 %v640_v45 }
  0x32   :  { %852 = vmatpush.bf16.msrb.mxu3 %v780_v13  ;;  %432 = vmatmul.bf16.gmra.mxu1 %v572_v46  ;;  %v605_v13 = vld [vmem:[%s1200_s0 + $0x6c] sm:$0xf0] }
  0x33   :  { %481 = vmatmul.bf16.gmra.mxu2 %v576_v47  ;;  %v608_v18 = vor.u32 %v757_v10, %v605_v13 }
  0x36   :  { %853 = vmatpush.bf16.msrb.mxu3 %v779_v16 }
  0x3a   :  { %854 = vmatpush.bf16.msrb.mxu3 %v778_v19 }
  0x3e   :  { %855 = vmatpush.bf16.msrb.mxu3 %v777_v22  ;;  %v760_v22 = vld [vmem:[%s1200_s0 + $0x7c] sm:$0xf] }
  0x3f   :  { %v620_v30 = vor.u32 %v760_v22, %v617_v25 }
  0x41   :  { %388 = vmatmul.bf16.gmra.mxu0 %v580_v56  ;;  %457 = vmatmul.bf16.vlgmr.msrb.gmra.mxu3 %v632_v57 }
  0x42   :  { %856 = vmatpush.bf16.msra.mxu3 %v896_v2  ;;  %437 = vmatmul.bf16.gmra.mxu1 %v584_v58  ;;  %v599_v2 = vld [vmem:[%s1200_s0 + $0x50] sm:$0xf] }
  0x43   :  { %486 = vmatmul.bf16.gmra.mxu2 %v588_v59  ;;  %v600_v7 = vor.u32 %v756_v3, %v599_v2 }
  0x46   :  { %857 = vmatpush.bf16.msra.mxu3 %v911_v5  ;;  %v644_v5 = vor.u32 %v766_v63, %v641_v0 }
  0x4a   :  { %858 = vmatpush.bf16.msra.mxu3 %v924_v8  ;;  %v603_v8 = vld [vmem:[%s1200_s0 + $0x60] sm:$0xf] }
  0x4b   :  { %v604_v16 = vor.u32 %v758_v9, %v603_v8 }
  0x4e   :  { %859 = vmatpush.bf16.msra.mxu3 %v936_v11  ;;  %v635_v11 = vld [vmem:[%s1200_s0 + $0x98] sm:$0xf] }
  0x51   :  { %393 = vmatmul.bf16.gmra.mxu0 %v592_v4  ;;  %462 = vmatmul.bf16.gmra.mxu3 %v644_v5 }
  0x52   :  { %860 = vmatpush.bf16.msra.mxu3 %v948_v14  ;;  %442 = vmatmul.bf16.gmra.mxu1 %v596_v6  ;;  %v611_v14 = vld [vmem:[%s1200_s0 + $0x68] sm:$0xf] }
  0x53   :  { %491 = vmatmul.bf16.gmra.mxu2 %v600_v7  ;;  %v612_v19 = vor.u32 %v759_v15, %v611_v14 }
  0x56   :  { %861 = vmatpush.bf16.msra.mxu3 %v960_v17  ;;  %v636_v17 = vor.u32 %v765_v12, %v635_v11 }
  0x5a   :  { %862 = vmatpush.bf16.msra.mxu3 %v972_v20  ;;  %v615_v20 = vld [vmem:[%s1200_s0 + $0x78] sm:$0xf] }
  0x5b   :  { %v616_v28 = vor.u32 %v761_v21, %v615_v20 }
  0x5e   :  { %863 = vmatpush.bf16.msra.mxu3 %v983_v23  ;;  %v647_v23 = vld [vmem:[%s1200_s0 + $0xb0] sm:$0xf] }
  0x5f   :  { %v648_v29 = vor.u32 %v768_v24, %v647_v23 }
  0x61   :  { %398 = vmatmul.bf16.gmra.mxu0 %v604_v16  ;;  %506 = vmatmul.bf16.vlgmr.msra.gmra.mxu3 %v636_v17 }
  0x62   :  { %447 = vmatmul.bf16.gmra.mxu1 %v608_v18 }
  0x63   :  { %496 = vmatmul.bf16.gmra.mxu2 %v612_v19 }
  0x71   :  { %403 = vmatmul.bf16.gmra.mxu0 %v616_v28  ;;  %511 = vmatmul.bf16.gmra.mxu3 %v648_v29 }
  0x72   :  { %452 = vmatmul.bf16.gmra.mxu1 %v620_v30 }
  0x73   :  { %501 = vmatmul.bf16.gmra.mxu2 %v624_v31 }
  0x9e   :  { %v379_v32 = vpop.f32.mrf.mxu0 }
  0x9f   :  { %v428_v33 = vpop.f32.mrf.mxu1  ;;  %v380_v37 = vadd.f32 %v1144_v34, %v379_v32 }
  0xa1   :  { %v429_v41 = vadd.f32 %v428_v33, %v380_v37 }
  0xa4   :  { %v1146_v35 = vpop.f32.mrf.mxu3 }
  0xa6   :  { %v477_v36 = vpop.f32.mrf.mxu2  ;;  %v381_v38 = vpop.f32.mrf.mxu0 }
  0xa7   :  { %v430_v39 = vpop.f32.mrf.mxu1  ;;  %v382_v40 = vadd.f32 %v1144_v34, %v381_v38  ;;  %v478_v45 = vadd.f32 %v477_v36, %v429_v41 }
  0xa9   :  { %v431_v42 = vadd.f32 %v430_v39, %v382_v40  ;;  %v410_v39 = vadd.f32 %v1144_v34, %v1146_v35 }
  0xac   :  { %v1150_v43 = vpop.f32.mrf.mxu3 }
  0xad   :  { %v412_v40 = vadd.f32 %v1144_v34, %v1150_v43 }
  0xae   :  { %v479_v44 = vpop.f32.mrf.mxu2  ;;  %v384_v47 = vpop.f32.mrf.mxu0 }
  0xaf   :  { %v480_v46 = vadd.f32 %v479_v44, %v431_v42  ;;  %v433_v48 = vpop.f32.mrf.mxu1  ;;  %v385_v52 = vadd.f32 %v1144_v34, %v384_v47 }
  0xb1   :  { %v796_v49 = vpack.c.bf16 %v480_v46, %v478_v45  ;;  %v434_v56 = vadd.f32 %v433_v48, %v385_v52 }
  0xb3   :  { %797 = vst [vmem:[%s1201_s3] sm:$0xff] %v796_v49  }
  0xb4   :  { %v1155_v50 = vpop.f32.mrf.mxu3 }
  0xb6   :  { %v482_v51 = vpop.f32.mrf.mxu2  ;;  %v386_v53 = vpop.f32.mrf.mxu0 }
  0xb7   :  { %v435_v54 = vpop.f32.mrf.mxu1  ;;  %v387_v55 = vadd.f32 %v1144_v34, %v386_v53  ;;  %v483_v60 = vadd.f32 %v482_v51, %v434_v56 }
  0xb9   :  { %v436_v57 = vadd.f32 %v435_v54, %v387_v55 }
  0xbc   :  { %v1159_v58 = vpop.f32.mrf.mxu3 }
  0xbe   :  { %v484_v59 = vpop.f32.mrf.mxu2  ;;  %v389_v62 = vpop.f32.mrf.mxu0 }
  0xbf   :  { %v485_v61 = vadd.f32 %v484_v59, %v436_v57  ;;  %v438_v63 = vpop.f32.mrf.mxu1  ;;  %v390_v3 = vadd.f32 %v1144_v34, %v389_v62  ;;  %v417_v62 = vadd.f32 %v1144_v34, %v1159_v58 }
  0xc1   :  { %v801_v0 = vpack.c.bf16 %v485_v61, %v483_v60  ;;  %v439_v7 = vadd.f32 %v438_v63, %v390_v3  ;;  %v415_v61 = vadd.f32 %v1144_v34, %v1155_v50 }
  0xc3   :  { %833 = vst [vmem:[%s1201_s3 + $0x8] sm:$0xff] %v801_v0  }
  0xc4   :  { %v458_v1 = vpop.f32.mrf.mxu3 }
  0xc5   :  { %v459_v42 = vadd.f32 %v458_v1, %v410_v39 }
  0xc6   :  { %v487_v2 = vpop.f32.mrf.mxu2  ;;  %v391_v4 = vpop.f32.mrf.mxu0 }
  0xc7   :  { %v440_v5 = vpop.f32.mrf.mxu1  ;;  %v392_v6 = vadd.f32 %v1144_v34, %v391_v4  ;;  %v488_v11 = vadd.f32 %v487_v2, %v439_v7 }
  0xc9   :  { %v441_v8 = vadd.f32 %v440_v5, %v392_v6 }
  0xcc   :  { %v460_v9 = vpop.f32.mrf.mxu3 }
  0xcd   :  { %v461_v44 = vadd.f32 %v460_v9, %v412_v40 }
  0xce   :  { %v489_v10 = vpop.f32.mrf.mxu2  ;;  %v394_v13 = vpop.f32.mrf.mxu0 }
  0xcf   :  { %v490_v12 = vadd.f32 %v489_v10, %v441_v8  ;;  %v443_v14 = vpop.f32.mrf.mxu1  ;;  %v395_v18 = vadd.f32 %v1144_v34, %v394_v13 }
  0xd1   :  { %v806_v15 = vpack.c.bf16 %v490_v12, %v488_v11  ;;  %v444_v22 = vadd.f32 %v443_v14, %v395_v18 }
  0xd3   :  { %834 = vst [vmem:[%s1201_s3 + $0x10] sm:$0xff] %v806_v15  }
  0xd4   :  { %v463_v16 = vpop.f32.mrf.mxu3 }
  0xd5   :  { %v464_v0 = vadd.f32 %v463_v16, %v415_v61 }
  0xd6   :  { %v492_v17 = vpop.f32.mrf.mxu2  ;;  %v396_v19 = vpop.f32.mrf.mxu0 }
  0xd7   :  { %v445_v20 = vpop.f32.mrf.mxu1  ;;  %v397_v21 = vadd.f32 %v1144_v34, %v396_v19  ;;  %v493_v26 = vadd.f32 %v492_v17, %v444_v22 }
  0xd9   :  { %v446_v23 = vadd.f32 %v445_v20, %v397_v21 }
  0xdc   :  { %v465_v24 = vpop.f32.mrf.mxu3 }
  0xdd   :  { %v466_v1 = vadd.f32 %v465_v24, %v417_v62 }
  0xde   :  { %v494_v25 = vpop.f32.mrf.mxu2  ;;  %v399_v28 = vpop.f32.mrf.mxu0 }
  0xdf   :  { %v495_v27 = vadd.f32 %v494_v25, %v446_v23  ;;  %v448_v29 = vpop.f32.mrf.mxu1  ;;  %v400_v33 = vadd.f32 %v1144_v34, %v399_v28 }
  0xe1   :  { %v811_v30 = vpack.c.bf16 %v495_v27, %v493_v26  ;;  %v449_v41 = vadd.f32 %v448_v29, %v400_v33 }
  0xe3   :  { %835 = vst [vmem:[%s1201_s3 + $0x18] sm:$0xff] %v811_v30  }
  0xe4   :  { %v507_v31 = vpop.f32.mrf.mxu3 }
  0xe5   :  { %v508_v47 = vadd.f32 %v507_v31, %v459_v42 }
  0xe6   :  { %v497_v32 = vpop.f32.mrf.mxu2  ;;  %v401_v36 = vpop.f32.mrf.mxu0 }
  0xe7   :  { %v450_v37 = vpop.f32.mrf.mxu1  ;;  %v402_v38 = vadd.f32 %v1144_v34, %v401_v36  ;;  %v498_v51 = vadd.f32 %v497_v32, %v449_v41 }
  0xe9   :  { %v451_v45 = vadd.f32 %v450_v37, %v402_v38 }
  0xec   :  { %v509_v46 = vpop.f32.mrf.mxu3 }
  0xed   :  { %v510_v49 = vadd.f32 %v509_v46, %v461_v44 }
  0xee   :  { %v499_v48 = vpop.f32.mrf.mxu2  ;;  %v404_v53 = vpop.f32.mrf.mxu0 }
  0xef   :  { %v500_v52 = vadd.f32 %v499_v48, %v451_v45  ;;  %v826_v54 = vpack.c.bf16 %v510_v49, %v508_v47  ;;  %v453_v35 = vpop.f32.mrf.mxu1  ;;  %v405_v57 = vadd.f32 %v1144_v34, %v404_v53 }
  0xf1   :  { %v816_v55 = vpack.c.bf16 %v500_v52, %v498_v51  ;;  %838 = vst [vmem:[%s1201_s3 + $0x30] sm:$0xff] %v826_v54   ;;  %v454_v63 = vadd.f32 %v453_v35, %v405_v57 }
  0xf3   :  { %836 = vst [vmem:[%s1201_s3 + $0x20] sm:$0xff] %v816_v55  }
  0xf4   :  { %v512_v43 = vpop.f32.mrf.mxu3 }
  0xf5   :  { %v513_v5 = vadd.f32 %v512_v43, %v464_v0 }
  0xf6   :  { %v502_v56 = vpop.f32.mrf.mxu2  ;;  %v406_v59 = vpop.f32.mrf.mxu0 }
  0xf7   :  { %v407_v60 = vadd.f32 %v1144_v34, %v406_v59  ;;  %v455_v2 = vpop.f32.mrf.mxu1  ;;  %v503_v8 = vadd.f32 %v502_v56, %v454_v63 }
  0xf9   :  { %v456_v3 = vadd.f32 %v455_v2, %v407_v60 }
  0xfc   :  { %v514_v4 = vpop.f32.mrf.mxu3 }
  0xfd   :  { %v515_v7 = vadd.f32 %v514_v4, %v466_v1 }
  0xfe   :  { %v504_v6 = vpop.f32.mrf.mxu2 }
  0xff   :  { %v505_v9 = vadd.f32 %v504_v6, %v456_v3  ;;  %v831_v10 = vpack.c.bf16 %v515_v7, %v513_v5 }
 0x101   :  { %v821_v11 = vpack.c.bf16 %v505_v9, %v503_v8  ;;  %839 = vst [vmem:[%s1201_s3 + $0x38] sm:$0xff] %v831_v10  }
 0x103   :  { %837 = vst [vmem:[%s1201_s3 + $0x28] sm:$0xff] %v821_v11  }

// kernel: faster_rcnn_forward.15
= control target key start
LH: loop header
LB: loop body
LE: loop exit
PB: predicated region body
PF: predicated region fallthrough
CT: control target
= control target key end

     0   :  { %s626_s1 = inlined_call_operand.vmem [shape: bf16[384,128], index: 1, kind: input, shape index: {}]   ;;  %s627_s2 = inlined_call_operand.vmem [shape: f32[1,128], index: 2, kind: input, shape index: {}]   ;;  %s628_s0 = inlined_call_operand.vmem [shape: bf16[32,384], index: 0, kind: input, shape index: {}]   ;;  %s629_s3 = inlined_call_operand.vmem [shape: bf16[32,128], index: 3, kind: output, shape index: {}]  }
   0x1   :  { %v452_v0 = vld [vmem:[%s626_s1 + $0x38] sm:$0xff]  ;;  %v451_v3 = vld [vmem:[%s626_s1 + $0x30] sm:$0xff]  ;;  %v450_v6 = vld [vmem:[%s626_s1 + $0x28] sm:$0xff] }
   0x2   :  { %v460_v1 = vld [vmem:[%s626_s1 + $0x78] sm:$0xff]  ;;  %250 = vmatpush.bf16.msra.mxu0 %v452_v0  ;;  %v459_v4 = vld [vmem:[%s626_s1 + $0x70] sm:$0xff]  ;;  %480 = vmatpush.bf16.msra.mxu3 %v452_v0  ;;  %v458_v7 = vld [vmem:[%s626_s1 + $0x68] sm:$0xff] }
   0x3   :  { %v468_v2 = vld [vmem:[%s626_s1 + $0xb8] sm:$0xff]  ;;  %269 = vmatpush.bf16.msra.mxu1 %v460_v1  ;;  %v467_v5 = vld [vmem:[%s626_s1 + $0xb0] sm:$0xff]  ;;  %v466_v8 = vld [vmem:[%s626_s1 + $0xa8] sm:$0xff] }
   0x4   :  { %288 = vmatpush.bf16.msra.mxu2 %v468_v2  ;;  %v449_v9 = vld [vmem:[%s626_s1 + $0x20] sm:$0xff]  ;;  %v448_v12 = vld [vmem:[%s626_s1 + $0x18] sm:$0xff]  ;;  %v447_v15 = vld [vmem:[%s626_s1 + $0x10] sm:$0xff] }
   0x5   :  { %v457_v10 = vld [vmem:[%s626_s1 + $0x60] sm:$0xff]  ;;  %v456_v13 = vld [vmem:[%s626_s1 + $0x58] sm:$0xff]  ;;  %v455_v16 = vld [vmem:[%s626_s1 + $0x50] sm:$0xff] }
   0x6   :  { %251 = vmatpush.bf16.msra.mxu0 %v451_v3  ;;  %481 = vmatpush.bf16.msra.mxu3 %v451_v3  ;;  %v465_v11 = vld [vmem:[%s626_s1 + $0xa0] sm:$0xff]  ;;  %v464_v14 = vld [vmem:[%s626_s1 + $0x98] sm:$0xff]  ;;  %v463_v17 = vld [vmem:[%s626_s1 + $0x90] sm:$0xff] }
   0x7   :  { %270 = vmatpush.bf16.msra.mxu1 %v459_v4  ;;  %v446_v18 = vld [vmem:[%s626_s1 + $0x8] sm:$0xff]  ;;  %v445_v21 = vld [vmem:[%s626_s1] sm:$0xff]  ;;  %v323_v27 = vld [vmem:[%s628_s0 + $0xc] sm:$0xf0] }
   0x8   :  { %289 = vmatpush.bf16.msra.mxu2 %v467_v5  ;;  %v454_v19 = vld [vmem:[%s626_s1 + $0x48] sm:$0xff]  ;;  %v453_v22 = vld [vmem:[%s626_s1 + $0x40] sm:$0xff]  ;;  %v441_v29 = vld [vmem:[%s628_s0 + $0x10] sm:$0xf0] }
   0x9   :  { %v462_v20 = vld [vmem:[%s626_s1 + $0x88] sm:$0xff]  ;;  %v461_v23 = vld [vmem:[%s626_s1 + $0x80] sm:$0xff]  ;;  %v333_v30 = vld [vmem:[%s628_s0 + $0x18] sm:$0xf] }
   0xa   :  { %252 = vmatpush.bf16.msra.mxu0 %v450_v6  ;;  %482 = vmatpush.bf16.msra.mxu3 %v450_v6  ;;  %v321_v24 = vld [vmem:[%s628_s0] sm:$0xf]  ;;  %v440_v25 = vld [vmem:[%s628_s0 + $0x8] sm:$0xf0]  ;;  %v439_v26 = vld [vmem:[%s628_s0 + $0x4] sm:$0xf] }
   0xb   :  { %271 = vmatpush.bf16.msra.mxu1 %v458_v7  ;;  %v329_v28 = vld [vmem:[%s628_s0 + $0x8] sm:$0xf]  ;;  %v443_v31 = vld [vmem:[%s628_s0 + $0x20] sm:$0xf0]  ;;  %v322_v32 = vor.u32 %v440_v25, %v321_v24  ;;  %v326_v33 = vor.u32 %v439_v26, %v323_v27  ;;  %v442_v36 = vld [vmem:[%s628_s0 + $0x1c] sm:$0xf] }
   0xc   :  { %290 = vmatpush.bf16.msra.mxu2 %v466_v8  ;;  %v330_v34 = vor.u32 %v441_v29, %v329_v28  ;;  %v334_v35 = vor.u32 %v443_v31, %v333_v30  ;;  %v335_v37 = vld [vmem:[%s628_s0 + $0x24] sm:$0xf0]  ;;  %v341_v38 = vld [vmem:[%s628_s0 + $0x20] sm:$0xf]  ;;  %v444_v39 = vld [vmem:[%s628_s0 + $0x28] sm:$0xf0] }
   0xd   :  { %v338_v40 = vor.u32 %v442_v36, %v335_v37  ;;  %v342_v41 = vor.u32 %v444_v39, %v341_v38  ;;  %v488_v44 = vld [vmem:[%s627_s2] ss:$0 sm:$0xff] }
   0xe   :  { %253 = vmatpush.bf16.msra.mxu0 %v449_v9  ;;  %483 = vmatpush.bf16.msra.mxu3 %v449_v9 }
   0xf   :  { %272 = vmatpush.bf16.msra.mxu1 %v457_v10 }
  0x10   :  { %291 = vmatpush.bf16.msra.mxu2 %v465_v11 }
  0x12   :  { %254 = vmatpush.bf16.msra.mxu0 %v448_v12  ;;  %484 = vmatpush.bf16.msra.mxu3 %v448_v12 }
  0x13   :  { %273 = vmatpush.bf16.msra.mxu1 %v456_v13 }
  0x14   :  { %292 = vmatpush.bf16.msra.mxu2 %v464_v14 }
  0x16   :  { %255 = vmatpush.bf16.msra.mxu0 %v447_v15  ;;  %485 = vmatpush.bf16.msra.mxu3 %v447_v15 }
  0x17   :  { %274 = vmatpush.bf16.msra.mxu1 %v455_v16 }
  0x18   :  { %293 = vmatpush.bf16.msra.mxu2 %v463_v17 }
  0x1a   :  { %256 = vmatpush.bf16.msra.mxu0 %v446_v18  ;;  %486 = vmatpush.bf16.msra.mxu3 %v446_v18 }
  0x1b   :  { %275 = vmatpush.bf16.msra.mxu1 %v454_v19 }
  0x1c   :  { %294 = vmatpush.bf16.msra.mxu2 %v462_v20 }
  0x1e   :  { %257 = vmatpush.bf16.msra.mxu0 %v445_v21  ;;  %487 = vmatpush.bf16.msra.mxu3 %v445_v21 }
  0x1f   :  { %276 = vmatpush.bf16.msra.mxu1 %v453_v22 }
  0x20   :  { %295 = vmatpush.bf16.msra.mxu2 %v461_v23 }
  0x21   :  { %258 = vmatmul.bf16.vlgmr.msra.gmra.mxu0 %v322_v32  ;;  %263 = vmatmul.bf16.vlgmr.msra.gmra.mxu3 %v334_v35 }
  0x22   :  { %277 = vmatmul.bf16.vlgmr.msra.gmra.mxu1 %v326_v33 }
  0x23   :  { %296 = vmatmul.bf16.vlgmr.msra.gmra.mxu2 %v330_v34 }
  0x32   :  { %282 = vmatmul.bf16.gmra.mxu1 %v338_v40 }
  0x33   :  { %301 = vmatmul.bf16.gmra.mxu2 %v342_v41 }
  0x9e   :  { %v259_v42 = vpop.f32.mrf.mxu0 }
  0x9f   :  { %v278_v43 = vpop.f32.mrf.mxu1  ;;  %v260_v46 = vadd.f32 %v488_v44, %v259_v42 }
  0xa1   :  { %v279_v50 = vadd.f32 %v278_v43, %v260_v46 }
  0xa4   :  { %v264_v52 = vpop.f32.mrf.mxu3 }
  0xa5   :  { %v265_v59 = vadd.f32 %v488_v44, %v264_v52 }
  0xa6   :  { %v297_v45 = vpop.f32.mrf.mxu2  ;;  %v261_v47 = vpop.f32.mrf.mxu0 }
  0xa7   :  { %v280_v48 = vpop.f32.mrf.mxu1  ;;  %v262_v49 = vadd.f32 %v488_v44, %v261_v47  ;;  %v298_v54 = vadd.f32 %v297_v45, %v279_v50 }
  0xa9   :  { %v281_v51 = vadd.f32 %v280_v48, %v262_v49 }
  0xac   :  { %v266_v60 = vpop.f32.mrf.mxu3 }
  0xad   :  { %v267_v63 = vadd.f32 %v488_v44, %v266_v60 }
  0xae   :  { %v299_v53 = vpop.f32.mrf.mxu2 }
  0xaf   :  { %v300_v55 = vadd.f32 %v299_v53, %v281_v51  ;;  %v283_v56 = vpop.f32.mrf.mxu1 }
  0xb0   :  { %v284_v62 = vadd.f32 %v283_v56, %v265_v59 }
  0xb1   :  { %v472_v57 = vpack.c.bf16 %v300_v55, %v298_v54 }
  0xb3   :  { %473 = vst [vmem:[%s629_s3] sm:$0xff] %v472_v57  }
  0xb6   :  { %v302_v58 = vpop.f32.mrf.mxu2 }
  0xb7   :  { %v285_v61 = vpop.f32.mrf.mxu1  ;;  %v303_v2 = vadd.f32 %v302_v58, %v284_v62 }
  0xb8   :  { %v286_v0 = vadd.f32 %v285_v61, %v267_v63 }
  0xbe   :  { %v304_v1 = vpop.f32.mrf.mxu2 }
  0xbf   :  { %v305_v3 = vadd.f32 %v304_v1, %v286_v0 }
  0xc1   :  { %v477_v4 = vpack.c.bf16 %v305_v3, %v303_v2 }
  0xc3   :  { %479 = vst [vmem:[%s629_s3 + $0x8] sm:$0xff] %v477_v4  }

// kernel: faster_rcnn_forward.17
= control target key start
LH: loop header
LB: loop body
LE: loop exit
PB: predicated region body
PF: predicated region fallthrough
CT: control target
= control target key end

     0   :  { %s1590_s1 = inlined_call_operand.vmem [shape: bf16[384,128], index: 1, kind: input, shape index: {}]   ;;  %s1591_s2 = inlined_call_operand.vmem [shape: f32[1,128], index: 2, kind: input, shape index: {}]   ;;  %s1592_s0 = inlined_call_operand.vmem [shape: bf16[176,384], index: 0, kind: input, shape index: {}]   ;;  %s1593_s3 = inlined_call_operand.vmem [shape: bf16[128,128], index: 3, kind: input, shape index: {}]   ;;  %s1594_s4 = inlined_call_operand.vmem [shape: f32[1,128], index: 4, kind: input, shape index: {}]   ;;  %s1595_s5 = inlined_call_operand.vmem [shape: f32[176,128], index: 5, kind: output, shape index: {}]  }
   0x1   :  { %v1119_v0 = vld [vmem:[%s1590_s1 + $0x38] sm:$0xff]  ;;  %v1118_v3 = vld [vmem:[%s1590_s1 + $0x30] sm:$0xff]  ;;  %v1117_v6 = vld [vmem:[%s1590_s1 + $0x28] sm:$0xff] }
   0x2   :  { %v1127_v1 = vld [vmem:[%s1590_s1 + $0x78] sm:$0xff]  ;;  %436 = vmatpush.bf16.msra.mxu0 %v1119_v0  ;;  %v1126_v4 = vld [vmem:[%s1590_s1 + $0x70] sm:$0xff]  ;;  %v1125_v7 = vld [vmem:[%s1590_s1 + $0x68] sm:$0xff] }
   0x3   :  { %v1135_v2 = vld [vmem:[%s1590_s1 + $0xb8] sm:$0xff]  ;;  %500 = vmatpush.bf16.msra.mxu1 %v1127_v1  ;;  %v1134_v5 = vld [vmem:[%s1590_s1 + $0xb0] sm:$0xff]  ;;  %v1133_v8 = vld [vmem:[%s1590_s1 + $0xa8] sm:$0xff] }
   0x4   :  { %564 = vmatpush.bf16.msra.mxu2 %v1135_v2  ;;  %v1116_v9 = vld [vmem:[%s1590_s1 + $0x20] sm:$0xff]  ;;  %v1115_v12 = vld [vmem:[%s1590_s1 + $0x18] sm:$0xff]  ;;  %v1114_v15 = vld [vmem:[%s1590_s1 + $0x10] sm:$0xff] }
   0x5   :  { %v1124_v10 = vld [vmem:[%s1590_s1 + $0x60] sm:$0xff]  ;;  %v1123_v13 = vld [vmem:[%s1590_s1 + $0x58] sm:$0xff]  ;;  %v1122_v16 = vld [vmem:[%s1590_s1 + $0x50] sm:$0xff] }
   0x6   :  { %437 = vmatpush.bf16.msra.mxu0 %v1118_v3  ;;  %v1132_v11 = vld [vmem:[%s1590_s1 + $0xa0] sm:$0xff]  ;;  %v1131_v14 = vld [vmem:[%s1590_s1 + $0x98] sm:$0xff]  ;;  %v1130_v17 = vld [vmem:[%s1590_s1 + $0x90] sm:$0xff] }
   0x7   :  { %501 = vmatpush.bf16.msra.mxu1 %v1126_v4  ;;  %v1113_v18 = vld [vmem:[%s1590_s1 + $0x8] sm:$0xff]  ;;  %v1112_v21 = vld [vmem:[%s1590_s1] sm:$0xff]  ;;  %v823_v26 = vld [vmem:[%s1592_s0 + $0xc] sm:$0xf0] }
   0x8   :  { %565 = vmatpush.bf16.msra.mxu2 %v1134_v5  ;;  %v1121_v19 = vld [vmem:[%s1590_s1 + $0x48] sm:$0xff]  ;;  %v1120_v22 = vld [vmem:[%s1590_s1 + $0x40] sm:$0xff]  ;;  %v1081_v29 = vld [vmem:[%s1592_s0 + $0x10] sm:$0xf0] }
   0x9   :  { %v1129_v20 = vld [vmem:[%s1590_s1 + $0x88] sm:$0xff]  ;;  %v821_v23 = vld [vmem:[%s1592_s0] sm:$0xf]  ;;  %v1079_v25 = vld [vmem:[%s1592_s0 + $0x4] sm:$0xf] }
   0xa   :  { %438 = vmatpush.bf16.msra.mxu0 %v1117_v6  ;;  %v1080_v24 = vld [vmem:[%s1592_s0 + $0x8] sm:$0xf0]  ;;  %v1128_v27 = vld [vmem:[%s1590_s1 + $0x80] sm:$0xff]  ;;  %v829_v28 = vld [vmem:[%s1592_s0 + $0x8] sm:$0xf]  ;;  %v826_v31 = vor.u32 %v1079_v25, %v823_v26 }
   0xb   :  { %502 = vmatpush.bf16.msra.mxu1 %v1125_v7  ;;  %v822_v30 = vor.u32 %v1080_v24, %v821_v23  ;;  %v830_v32 = vor.u32 %v1081_v29, %v829_v28  ;;  %v833_v33 = vld [vmem:[%s1592_s0 + $0x18] sm:$0xf]  ;;  %v1083_v34 = vld [vmem:[%s1592_s0 + $0x20] sm:$0xf0]  ;;  %v1082_v35 = vld [vmem:[%s1592_s0 + $0x1c] sm:$0xf] }
   0xc   :  { %566 = vmatpush.bf16.msra.mxu2 %v1133_v8  ;;  %v835_v36 = vld [vmem:[%s1592_s0 + $0x24] sm:$0xf0]  ;;  %v841_v37 = vld [vmem:[%s1592_s0 + $0x20] sm:$0xf]  ;;  %v1084_v38 = vld [vmem:[%s1592_s0 + $0x28] sm:$0xf0]  ;;  %v834_v39 = vor.u32 %v1083_v34, %v833_v33 }
   0xd   :  { %v838_v40 = vor.u32 %v1082_v35, %v835_v36  ;;  %v842_v41 = vor.u32 %v1084_v38, %v841_v37  ;;  %v845_v42 = vld [vmem:[%s1592_s0 + $0x30] sm:$0xf]  ;;  %v1086_v43 = vld [vmem:[%s1592_s0 + $0x38] sm:$0xf0]  ;;  %v1085_v44 = vld [vmem:[%s1592_s0 + $0x34] sm:$0xf] }
   0xe   :  { %439 = vmatpush.bf16.msra.mxu0 %v1116_v9  ;;  %v847_v45 = vld [vmem:[%s1592_s0 + $0x3c] sm:$0xf0]  ;;  %v853_v46 = vld [vmem:[%s1592_s0 + $0x38] sm:$0xf]  ;;  %v1087_v47 = vld [vmem:[%s1592_s0 + $0x40] sm:$0xf0]  ;;  %v846_v48 = vor.u32 %v1086_v43, %v845_v42 }
   0xf   :  { %503 = vmatpush.bf16.msra.mxu1 %v1124_v10  ;;  %v850_v49 = vor.u32 %v1085_v44, %v847_v45  ;;  %v854_v50 = vor.u32 %v1087_v47, %v853_v46  ;;  %v857_v51 = vld [vmem:[%s1592_s0 + $0x48] sm:$0xf]  ;;  %v1089_v52 = vld [vmem:[%s1592_s0 + $0x50] sm:$0xf0]  ;;  %v1088_v53 = vld [vmem:[%s1592_s0 + $0x4c] sm:$0xf] }
  0x10   :  { %567 = vmatpush.bf16.msra.mxu2 %v1132_v11  ;;  %v859_v54 = vld [vmem:[%s1592_s0 + $0x54] sm:$0xf0]  ;;  %v865_v55 = vld [vmem:[%s1592_s0 + $0x50] sm:$0xf]  ;;  %v1090_v56 = vld [vmem:[%s1592_s0 + $0x58] sm:$0xf0]  ;;  %v858_v57 = vor.u32 %v1089_v52, %v857_v51 }
  0x11   :  { %v862_v58 = vor.u32 %v1088_v53, %v859_v54  ;;  %v866_v59 = vor.u32 %v1090_v56, %v865_v55  ;;  %v869_v60 = vld [vmem:[%s1592_s0 + $0x60] sm:$0xf]  ;;  %v1092_v61 = vld [vmem:[%s1592_s0 + $0x68] sm:$0xf0]  ;;  %v1091_v62 = vld [vmem:[%s1592_s0 + $0x64] sm:$0xf] }
  0x12   :  { %440 = vmatpush.bf16.msra.mxu0 %v1115_v12  ;;  %v871_v63 = vld [vmem:[%s1592_s0 + $0x6c] sm:$0xf0]  ;;  %v877_v0 = vld [vmem:[%s1592_s0 + $0x68] sm:$0xf]  ;;  %v1093_v1 = vld [vmem:[%s1592_s0 + $0x70] sm:$0xf0]  ;;  %v870_v2 = vor.u32 %v1092_v61, %v869_v60 }
  0x13   :  { %504 = vmatpush.bf16.msra.mxu1 %v1123_v13  ;;  %v874_v3 = vor.u32 %v1091_v62, %v871_v63  ;;  %v878_v4 = vor.u32 %v1093_v1, %v877_v0  ;;  %v881_v5 = vld [vmem:[%s1592_s0 + $0x78] sm:$0xf]  ;;  %v1095_v6 = vld [vmem:[%s1592_s0 + $0x80] sm:$0xf0]  ;;  %v1094_v7 = vld [vmem:[%s1592_s0 + $0x7c] sm:$0xf] }
  0x14   :  { %568 = vmatpush.bf16.msra.mxu2 %v1131_v14  ;;  %v883_v8 = vld [vmem:[%s1592_s0 + $0x84] sm:$0xf0]  ;;  %v889_v9 = vld [vmem:[%s1592_s0 + $0x80] sm:$0xf]  ;;  %v1096_v10 = vld [vmem:[%s1592_s0 + $0x88] sm:$0xf0]  ;;  %v882_v11 = vor.u32 %v1095_v6, %v881_v5 }
  0x15   :  { %v886_v12 = vor.u32 %v1094_v7, %v883_v8  ;;  %v890_v13 = vor.u32 %v1096_v10, %v889_v9  ;;  %v1143_v14 = vld [vmem:[%s1593_s3 + $0x38] sm:$0xff]  ;;  %v1140_v26 = vld [vmem:[%s1593_s3 + $0x20] sm:$0xff]  ;;  %v1138_v28 = vld [vmem:[%s1593_s3 + $0x10] sm:$0xff] }
  0x16   :  { %441 = vmatpush.bf16.msra.mxu0 %v1114_v15  ;;  %729 = vmatpush.bf16.msra.mxu3 %v1143_v14  ;;  %v1142_v15 = vld [vmem:[%s1593_s3 + $0x30] sm:$0xff]  ;;  %v905_v29 = vld [vmem:[%s1592_s0 + $0xa8] sm:$0xf]  ;;  %v1102_v34 = vld [vmem:[%s1592_s0 + $0xb8] sm:$0xf0] }
  0x17   :  { %505 = vmatpush.bf16.msra.mxu1 %v1122_v16  ;;  %v1141_v16 = vld [vmem:[%s1593_s3 + $0x28] sm:$0xff]  ;;  %v913_v33 = vld [vmem:[%s1592_s0 + $0xb0] sm:$0xf]  ;;  %v1103_v42 = vld [vmem:[%s1592_s0 + $0xc4] sm:$0xf] }
  0x18   :  { %569 = vmatpush.bf16.msra.mxu2 %v1130_v17  ;;  %v893_v17 = vld [vmem:[%s1592_s0 + $0x90] sm:$0xf]  ;;  %v1137_v35 = vld [vmem:[%s1593_s3 + $0x8] sm:$0xff]  ;;  %v914_v38 = vor.u32 %v1102_v34, %v913_v33  ;;  %v1105_v45 = vld [vmem:[%s1592_s0 + $0xd0] sm:$0xf0] }
  0x19   :  { %v919_v43 = vld [vmem:[%s1592_s0 + $0xcc] sm:$0xf0]  ;;  %v925_v44 = vld [vmem:[%s1592_s0 + $0xc8] sm:$0xf]  ;;  %v1437_v51 = vld [vmem:[%s1591_s2] ss:$0 sm:$0xff] }
  0x1a   :  { %442 = vmatpush.bf16.msra.mxu0 %v1113_v18  ;;  %730 = vmatpush.bf16.msra.mxu3 %v1142_v15  ;;  %v1098_v18 = vld [vmem:[%s1592_s0 + $0x98] sm:$0xf0]  ;;  %v922_v47 = vor.u32 %v1103_v42, %v919_v43  ;;  %v931_v61 = vld [vmem:[%s1592_s0 + $0xe4] sm:$0xf0]  ;;  %v937_v62 = vld [vmem:[%s1592_s0 + $0xe0] sm:$0xf] }
  0x1b   :  { %506 = vmatpush.bf16.msra.mxu1 %v1121_v19  ;;  %v1097_v19 = vld [vmem:[%s1592_s0 + $0x94] sm:$0xf]  ;;  %v894_v23 = vor.u32 %v1098_v18, %v893_v17  ;;  %v1106_v60 = vld [vmem:[%s1592_s0 + $0xdc] sm:$0xf]  ;;  %v1108_v63 = vld [vmem:[%s1592_s0 + $0xe8] sm:$0xf0] }
  0x1c   :  { %570 = vmatpush.bf16.msra.mxu2 %v1129_v20  ;;  %v895_v20 = vld [vmem:[%s1592_s0 + $0x9c] sm:$0xf0]  ;;  %v938_v8 = vor.u32 %v1108_v63, %v937_v62  ;;  %v941_v18 = vld [vmem:[%s1592_s0 + $0xf0] sm:$0xf] }
  0x1d   :  { %v898_v24 = vor.u32 %v1097_v19, %v895_v20  ;;  %v1110_v19 = vld [vmem:[%s1592_s0 + $0xf8] sm:$0xf0]  ;;  %v1109_v20 = vld [vmem:[%s1592_s0 + $0xf4] sm:$0xf] }
  0x1e   :  { %443 = vmatpush.bf16.msra.mxu0 %v1112_v21  ;;  %v901_v21 = vld [vmem:[%s1592_s0 + $0x98] sm:$0xf]  ;;  %731 = vmatpush.bf16.msra.mxu3 %v1141_v16 }
  0x1f   :  { %507 = vmatpush.bf16.msra.mxu1 %v1120_v22  ;;  %v1099_v22 = vld [vmem:[%s1592_s0 + $0xa0] sm:$0xf0] }
  0x20   :  { %571 = vmatpush.bf16.msra.mxu2 %v1128_v27  ;;  %v902_v25 = vor.u32 %v1099_v22, %v901_v21  ;;  %v1139_v27 = vld [vmem:[%s1593_s3 + $0x18] sm:$0xff]  ;;  %v943_v21 = vld [vmem:[%s1592_s0 + $0xfc] sm:$0xf0] }
  0x21   :  { %444 = vmatmul.bf16.vlgmr.msra.gmra.mxu0 %v822_v30  ;;  %v1101_v30 = vld [vmem:[%s1592_s0 + $0xb0] sm:$0xf0]  ;;  %v949_v22 = vld [vmem:[%s1592_s0 + $0xf8] sm:$0xf] }
  0x22   :  { %508 = vmatmul.bf16.vlgmr.msra.gmra.mxu1 %v826_v31  ;;  %732 = vmatpush.bf16.msra.mxu3 %v1140_v26  ;;  %v1100_v31 = vld [vmem:[%s1592_s0 + $0xac] sm:$0xf]  ;;  %v906_v36 = vor.u32 %v1101_v30, %v905_v29 }
  0x23   :  { %572 = vmatmul.bf16.vlgmr.msra.gmra.mxu2 %v830_v32  ;;  %v907_v32 = vld [vmem:[%s1592_s0 + $0xb4] sm:$0xf0] }
  0x24   :  { %v910_v37 = vor.u32 %v1100_v31, %v907_v32 }
  0x26   :  { %733 = vmatpush.bf16.msra.mxu3 %v1139_v27  ;;  %v942_v27 = vor.u32 %v1110_v19, %v941_v18 }
  0x2a   :  { %734 = vmatpush.bf16.msra.mxu3 %v1138_v28  ;;  %v946_v28 = vor.u32 %v1109_v20, %v943_v21 }
  0x2e   :  { %735 = vmatpush.bf16.msra.mxu3 %v1137_v35 }
  0x31   :  { %449 = vmatmul.bf16.gmra.mxu0 %v834_v39  ;;  %v1136_v39 = vld [vmem:[%s1593_s3] sm:$0xff] }
  0x32   :  { %513 = vmatmul.bf16.gmra.mxu1 %v838_v40  ;;  %736 = vmatpush.bf16.msra.mxu3 %v1136_v39  ;;  %v917_v40 = vld [vmem:[%s1592_s0 + $0xc0] sm:$0xf] }
  0x33   :  { %577 = vmatmul.bf16.gmra.mxu2 %v842_v41  ;;  %v1104_v41 = vld [vmem:[%s1592_s0 + $0xc8] sm:$0xf0] }
  0x34   :  { %v918_v46 = vor.u32 %v1104_v41, %v917_v40 }
  0x41   :  { %454 = vmatmul.bf16.gmra.mxu0 %v846_v48 }
  0x42   :  { %518 = vmatmul.bf16.gmra.mxu1 %v850_v49 }
  0x43   :  { %582 = vmatmul.bf16.gmra.mxu2 %v854_v50  ;;  %v926_v50 = vor.u32 %v1105_v45, %v925_v44 }
  0x51   :  { %459 = vmatmul.bf16.gmra.mxu0 %v858_v57 }
  0x52   :  { %523 = vmatmul.bf16.gmra.mxu1 %v862_v58  ;;  %v929_v58 = vld [vmem:[%s1592_s0 + $0xd8] sm:$0xf] }
  0x53   :  { %587 = vmatmul.bf16.gmra.mxu2 %v866_v59  ;;  %v1107_v59 = vld [vmem:[%s1592_s0 + $0xe0] sm:$0xf0] }
  0x61   :  { %464 = vmatmul.bf16.gmra.mxu0 %v870_v2 }
  0x62   :  { %528 = vmatmul.bf16.gmra.mxu1 %v874_v3  ;;  %v930_v3 = vor.u32 %v1107_v59, %v929_v58 }
  0x63   :  { %592 = vmatmul.bf16.gmra.mxu2 %v878_v4  ;;  %v934_v4 = vor.u32 %v1106_v60, %v931_v61 }
  0x71   :  { %469 = vmatmul.bf16.gmra.mxu0 %v882_v11 }
  0x72   :  { %533 = vmatmul.bf16.gmra.mxu1 %v886_v12 }
  0x73   :  { %597 = vmatmul.bf16.gmra.mxu2 %v890_v13 }
  0x81   :  { %474 = vmatmul.bf16.gmra.mxu0 %v894_v23  ;;  %v1111_v23 = vld [vmem:[%s1592_s0 + $0x100] sm:$0xf0] }
  0x82   :  { %538 = vmatmul.bf16.gmra.mxu1 %v898_v24  ;;  %v950_v32 = vor.u32 %v1111_v23, %v949_v22 }
  0x83   :  { %602 = vmatmul.bf16.gmra.mxu2 %v902_v25 }
  0x91   :  { %479 = vmatmul.bf16.gmra.mxu0 %v906_v36 }
  0x92   :  { %543 = vmatmul.bf16.gmra.mxu1 %v910_v37 }
  0x93   :  { %607 = vmatmul.bf16.gmra.mxu2 %v914_v38 }
  0x9e   :  { %v445_v48 = vpop.f32.mrf.mxu0 }
  0x9f   :  { %v509_v49 = vpop.f32.mrf.mxu1  ;;  %v446_v52 = vadd.f32 %v1437_v51, %v445_v48 }
  0xa1   :  { %484 = vmatmul.bf16.gmra.mxu0 %v918_v46  ;;  %v510_v56 = vadd.f32 %v509_v49, %v446_v52 }
  0xa2   :  { %548 = vmatmul.bf16.gmra.mxu1 %v922_v47 }
  0xa3   :  { %612 = vmatmul.bf16.gmra.mxu2 %v926_v50 }
  0xa6   :  { %v573_v53 = vpop.f32.mrf.mxu2  ;;  %v447_v54 = vpop.f32.mrf.mxu0 }
  0xa7   :  { %v511_v55 = vpop.f32.mrf.mxu1  ;;  %v448_v57 = vadd.f32 %v1437_v51, %v447_v54  ;;  %v574_v0 = vadd.f32 %v573_v53, %v510_v56 }
  0xa9   :  { %v512_v1 = vadd.f32 %v511_v55, %v448_v57  ;;  %v628_v9 = vmax.f32 %v574_v0, 0.0 }
  0xae   :  { %v575_v2 = vpop.f32.mrf.mxu2  ;;  %v450_v6 = vpop.f32.mrf.mxu0 }
  0xaf   :  { %v576_v5 = vadd.f32 %v575_v2, %v512_v1  ;;  %v514_v7 = vpop.f32.mrf.mxu1  ;;  %v451_v12 = vadd.f32 %v1437_v51, %v450_v6 }
  0xb1   :  { %v629_v10 = vmax.f32 %v576_v5, 0.0  ;;  %489 = vmatmul.bf16.gmra.mxu0 %v930_v3  ;;  %v515_v16 = vadd.f32 %v514_v7, %v451_v12 }
  0xb2   :  { %553 = vmatmul.bf16.gmra.mxu1 %v934_v4 }
  0xb3   :  { %617 = vmatmul.bf16.gmra.mxu2 %v938_v8  ;;  %v650_v11 = vpack.c.bf16 %v629_v10, %v628_v9 }
  0xb5   :  { %737 = vmatmul.bf16.vlgmr.msra.gmra.mxu3 %v650_v11 }
  0xb6   :  { %v578_v13 = vpop.f32.mrf.mxu2  ;;  %v452_v14 = vpop.f32.mrf.mxu0 }
  0xb7   :  { %v516_v15 = vpop.f32.mrf.mxu1  ;;  %v453_v17 = vadd.f32 %v1437_v51, %v452_v14  ;;  %v579_v24 = vadd.f32 %v578_v13, %v515_v16 }
  0xb9   :  { %v517_v25 = vadd.f32 %v516_v15, %v453_v17  ;;  %v630_v33 = vmax.f32 %v579_v24, 0.0 }
  0xbe   :  { %v580_v26 = vpop.f32.mrf.mxu2  ;;  %v455_v30 = vpop.f32.mrf.mxu0 }
  0xbf   :  { %v581_v29 = vadd.f32 %v580_v26, %v517_v25  ;;  %v519_v31 = vpop.f32.mrf.mxu1  ;;  %v456_v36 = vadd.f32 %v1437_v51, %v455_v30 }
  0xc1   :  { %v631_v34 = vmax.f32 %v581_v29, 0.0  ;;  %494 = vmatmul.bf16.gmra.mxu0 %v942_v27  ;;  %v520_v40 = vadd.f32 %v519_v31, %v456_v36 }
  0xc2   :  { %558 = vmatmul.bf16.gmra.mxu1 %v946_v28 }
  0xc3   :  { %622 = vmatmul.bf16.gmra.mxu2 %v950_v32  ;;  %v651_v35 = vpack.c.bf16 %v631_v34, %v630_v33 }
  0xc5   :  { %742 = vmatmul.bf16.gmra.mxu3 %v651_v35 }
  0xc6   :  { %v583_v37 = vpop.f32.mrf.mxu2  ;;  %v457_v38 = vpop.f32.mrf.mxu0 }
  0xc7   :  { %v521_v39 = vpop.f32.mrf.mxu1  ;;  %v458_v41 = vadd.f32 %v1437_v51, %v457_v38  ;;  %v584_v42 = vadd.f32 %v583_v37, %v520_v40 }
  0xc9   :  { %v522_v43 = vadd.f32 %v521_v39, %v458_v41  ;;  %v632_v48 = vmax.f32 %v584_v42, 0.0 }
  0xce   :  { %v585_v44 = vpop.f32.mrf.mxu2  ;;  %v460_v46 = vpop.f32.mrf.mxu0 }
  0xcf   :  { %v586_v45 = vadd.f32 %v585_v44, %v522_v43  ;;  %v524_v47 = vpop.f32.mrf.mxu1  ;;  %v461_v52 = vadd.f32 %v1437_v51, %v460_v46 }
  0xd1   :  { %v633_v49 = vmax.f32 %v586_v45, 0.0  ;;  %v525_v56 = vadd.f32 %v524_v47, %v461_v52 }
  0xd3   :  { %v652_v50 = vpack.c.bf16 %v633_v49, %v632_v48 }
  0xd5   :  { %747 = vmatmul.bf16.gmra.mxu3 %v652_v50 }
  0xd6   :  { %v588_v53 = vpop.f32.mrf.mxu2  ;;  %v462_v54 = vpop.f32.mrf.mxu0 }
  0xd7   :  { %v526_v55 = vpop.f32.mrf.mxu1  ;;  %v463_v57 = vadd.f32 %v1437_v51, %v462_v54  ;;  %v589_v58 = vadd.f32 %v588_v53, %v525_v56 }
  0xd9   :  { %v527_v59 = vadd.f32 %v526_v55, %v463_v57  ;;  %v634_v0 = vmax.f32 %v589_v58, 0.0 }
  0xde   :  { %v590_v60 = vpop.f32.mrf.mxu2  ;;  %v465_v62 = vpop.f32.mrf.mxu0 }
  0xdf   :  { %v591_v61 = vadd.f32 %v590_v60, %v527_v59  ;;  %v529_v63 = vpop.f32.mrf.mxu1  ;;  %v466_v3 = vadd.f32 %v1437_v51, %v465_v62 }
  0xe1   :  { %v635_v1 = vmax.f32 %v591_v61, 0.0  ;;  %v530_v7 = vadd.f32 %v529_v63, %v466_v3 }
  0xe3   :  { %v653_v2 = vpack.c.bf16 %v635_v1, %v634_v0 }
  0xe5   :  { %752 = vmatmul.bf16.gmra.mxu3 %v653_v2 }
  0xe6   :  { %v593_v4 = vpop.f32.mrf.mxu2  ;;  %v467_v5 = vpop.f32.mrf.mxu0 }
  0xe7   :  { %v531_v6 = vpop.f32.mrf.mxu1  ;;  %v468_v8 = vadd.f32 %v1437_v51, %v467_v5  ;;  %v594_v9 = vadd.f32 %v593_v4, %v530_v7 }
  0xe9   :  { %v532_v10 = vadd.f32 %v531_v6, %v468_v8  ;;  %v636_v15 = vmax.f32 %v594_v9, 0.0 }
  0xee   :  { %v595_v11 = vpop.f32.mrf.mxu2  ;;  %v470_v13 = vpop.f32.mrf.mxu0 }
  0xef   :  { %v596_v12 = vadd.f32 %v595_v11, %v532_v10  ;;  %v534_v14 = vpop.f32.mrf.mxu1  ;;  %v471_v18 = vadd.f32 %v1437_v51, %v470_v13 }
  0xf1   :  { %v637_v16 = vmax.f32 %v596_v12, 0.0  ;;  %v535_v22 = vadd.f32 %v534_v14, %v471_v18 }
  0xf3   :  { %v654_v17 = vpack.c.bf16 %v637_v16, %v636_v15  ;;  %v1497_v16 = vld [vmem:[%s1594_s4] ss:$0 sm:$0xff] }
  0xf5   :  { %757 = vmatmul.bf16.gmra.mxu3 %v654_v17 }
  0xf6   :  { %v598_v19 = vpop.f32.mrf.mxu2  ;;  %v472_v20 = vpop.f32.mrf.mxu0 }
  0xf7   :  { %v536_v21 = vpop.f32.mrf.mxu1  ;;  %v473_v23 = vadd.f32 %v1437_v51, %v472_v20  ;;  %v599_v24 = vadd.f32 %v598_v19, %v535_v22 }
  0xf9   :  { %v537_v25 = vadd.f32 %v536_v21, %v473_v23  ;;  %v638_v30 = vmax.f32 %v599_v24, 0.0 }
  0xfe   :  { %v600_v26 = vpop.f32.mrf.mxu2  ;;  %v475_v28 = vpop.f32.mrf.mxu0 }
  0xff   :  { %v601_v27 = vadd.f32 %v600_v26, %v537_v25  ;;  %v539_v29 = vpop.f32.mrf.mxu1  ;;  %v476_v33 = vadd.f32 %v1437_v51, %v475_v28 }
 0x101   :  { %v639_v31 = vmax.f32 %v601_v27, 0.0  ;;  %v540_v37 = vadd.f32 %v539_v29, %v476_v33 }
 0x103   :  { %v655_v32 = vpack.c.bf16 %v639_v31, %v638_v30 }
 0x105   :  { %762 = vmatmul.bf16.gmra.mxu3 %v655_v32 }
 0x106   :  { %v603_v34 = vpop.f32.mrf.mxu2  ;;  %v477_v35 = vpop.f32.mrf.mxu0 }
 0x107   :  { %v541_v36 = vpop.f32.mrf.mxu1  ;;  %v478_v38 = vadd.f32 %v1437_v51, %v477_v35  ;;  %v604_v39 = vadd.f32 %v603_v34, %v540_v37 }
 0x109   :  { %v542_v40 = vadd.f32 %v541_v36, %v478_v38  ;;  %v640_v45 = vmax.f32 %v604_v39, 0.0 }
 0x10e   :  { %v605_v41 = vpop.f32.mrf.mxu2  ;;  %v480_v43 = vpop.f32.mrf.mxu0 }
 0x10f   :  { %v606_v42 = vadd.f32 %v605_v41, %v542_v40  ;;  %v544_v44 = vpop.f32.mrf.mxu1  ;;  %v481_v48 = vadd.f32 %v1437_v51, %v480_v43 }
 0x111   :  { %v641_v46 = vmax.f32 %v606_v42, 0.0  ;;  %v545_v53 = vadd.f32 %v544_v44, %v481_v48 }
 0x113   :  { %v656_v47 = vpack.c.bf16 %v641_v46, %v640_v45 }
 0x115   :  { %767 = vmatmul.bf16.gmra.mxu3 %v656_v47 }
 0x116   :  { %v608_v49 = vpop.f32.mrf.mxu2  ;;  %v482_v50 = vpop.f32.mrf.mxu0 }
 0x117   :  { %v546_v52 = vpop.f32.mrf.mxu1  ;;  %v483_v54 = vadd.f32 %v1437_v51, %v482_v50  ;;  %v609_v55 = vadd.f32 %v608_v49, %v545_v53 }
 0x119   :  { %v547_v56 = vadd.f32 %v546_v52, %v483_v54  ;;  %v642_v61 = vmax.f32 %v609_v55, 0.0 }
 0x11e   :  { %v610_v57 = vpop.f32.mrf.mxu2  ;;  %v485_v59 = vpop.f32.mrf.mxu0 }
 0x11f   :  { %v611_v58 = vadd.f32 %v610_v57, %v547_v56  ;;  %v549_v60 = vpop.f32.mrf.mxu1  ;;  %v486_v0 = vadd.f32 %v1437_v51, %v485_v59 }
 0x121   :  { %v643_v62 = vmax.f32 %v611_v58, 0.0  ;;  %v550_v4 = vadd.f32 %v549_v60, %v486_v0 }
 0x123   :  { %v657_v63 = vpack.c.bf16 %v643_v62, %v642_v61 }
 0x125   :  { %772 = vmatmul.bf16.gmra.mxu3 %v657_v63 }
 0x126   :  { %v613_v1 = vpop.f32.mrf.mxu2  ;;  %v487_v2 = vpop.f32.mrf.mxu0 }
 0x127   :  { %v551_v3 = vpop.f32.mrf.mxu1  ;;  %v488_v5 = vadd.f32 %v1437_v51, %v487_v2  ;;  %v614_v6 = vadd.f32 %v613_v1, %v550_v4 }
 0x129   :  { %v552_v7 = vadd.f32 %v551_v3, %v488_v5  ;;  %v644_v12 = vmax.f32 %v614_v6, 0.0 }
 0x12e   :  { %v615_v8 = vpop.f32.mrf.mxu2  ;;  %v490_v10 = vpop.f32.mrf.mxu0 }
 0x12f   :  { %v616_v9 = vadd.f32 %v615_v8, %v552_v7  ;;  %v554_v11 = vpop.f32.mrf.mxu1  ;;  %v491_v15 = vadd.f32 %v1437_v51, %v490_v10 }
 0x131   :  { %v645_v13 = vmax.f32 %v616_v9, 0.0  ;;  %v555_v21 = vadd.f32 %v554_v11, %v491_v15 }
 0x133   :  { %v658_v14 = vpack.c.bf16 %v645_v13, %v644_v12 }
 0x135   :  { %777 = vmatmul.bf16.gmra.mxu3 %v658_v14 }
 0x136   :  { %v618_v17 = vpop.f32.mrf.mxu2  ;;  %v492_v18 = vpop.f32.mrf.mxu0 }
 0x137   :  { %v556_v19 = vpop.f32.mrf.mxu1  ;;  %v493_v22 = vadd.f32 %v1437_v51, %v492_v18  ;;  %v619_v24 = vadd.f32 %v618_v17, %v555_v21 }
 0x138   :  { %v738_v20 = vpop.f32.mrf.mxu3 }
 0x139   :  { %v739_v23 = vadd.f32 %v1497_v16, %v738_v20  ;;  %v557_v25 = vadd.f32 %v556_v19, %v493_v22  ;;  %v646_v30 = vmax.f32 %v619_v24, 0.0 }
 0x13b   :  { %793 = vst [vmem:[%s1595_s5] sm:$0xff] %v739_v23 }
 0x13e   :  { %v620_v26 = vpop.f32.mrf.mxu2  ;;  %v495_v28 = vpop.f32.mrf.mxu0 }
 0x13f   :  { %v621_v27 = vadd.f32 %v620_v26, %v557_v25  ;;  %v559_v33 = vpop.f32.mrf.mxu1  ;;  %v496_v35 = vadd.f32 %v1437_v51, %v495_v28 }
 0x140   :  { %v740_v29 = vpop.f32.mrf.mxu3 }
 0x141   :  { %v647_v31 = vmax.f32 %v621_v27, 0.0  ;;  %v741_v32 = vadd.f32 %v1497_v16, %v740_v29  ;;  %v560_v39 = vadd.f32 %v559_v33, %v496_v35 }
 0x143   :  { %794 = vst [vmem:[%s1595_s5 + $0x8] sm:$0xff] %v741_v32  ;;  %v659_v34 = vpack.c.bf16 %v647_v31, %v646_v30 }
 0x145   :  { %782 = vmatmul.bf16.gmra.mxu3 %v659_v34 }
 0x146   :  { %v623_v36 = vpop.f32.mrf.mxu2  ;;  %v497_v37 = vpop.f32.mrf.mxu0 }
 0x147   :  { %v498_v40 = vadd.f32 %v1437_v51, %v497_v37  ;;  %v561_v42 = vpop.f32.mrf.mxu1  ;;  %v624_v43 = vadd.f32 %v623_v36, %v560_v39 }
 0x148   :  { %v743_v38 = vpop.f32.mrf.mxu3 }
 0x149   :  { %v744_v41 = vadd.f32 %v1497_v16, %v743_v38  ;;  %v562_v44 = vadd.f32 %v561_v42, %v498_v40  ;;  %v648_v48 = vmax.f32 %v624_v43, 0.0 }
 0x14b   :  { %795 = vst [vmem:[%s1595_s5 + $0x10] sm:$0xff] %v744_v41 }
 0x14e   :  { %v625_v45 = vpop.f32.mrf.mxu2 }
 0x14f   :  { %v626_v46 = vadd.f32 %v625_v45, %v562_v44 }
 0x150   :  { %v745_v47 = vpop.f32.mrf.mxu3 }
 0x151   :  { %v649_v49 = vmax.f32 %v626_v46, 0.0  ;;  %v746_v50 = vadd.f32 %v1497_v16, %v745_v47 }
 0x153   :  { %796 = vst [vmem:[%s1595_s5 + $0x18] sm:$0xff] %v746_v50  ;;  %v660_v51 = vpack.c.bf16 %v649_v49, %v648_v48 }
 0x155   :  { %787 = vmatmul.bf16.gmra.mxu3 %v660_v51 }
 0x158   :  { %v748_v52 = vpop.f32.mrf.mxu3 }
 0x159   :  { %v749_v53 = vadd.f32 %v1497_v16, %v748_v52 }
 0x15b   :  { %797 = vst [vmem:[%s1595_s5 + $0x20] sm:$0xff] %v749_v53 }
 0x160   :  { %v750_v54 = vpop.f32.mrf.mxu3 }
 0x161   :  { %v751_v55 = vadd.f32 %v1497_v16, %v750_v54 }
 0x163   :  { %798 = vst [vmem:[%s1595_s5 + $0x28] sm:$0xff] %v751_v55 }
 0x168   :  { %v753_v56 = vpop.f32.mrf.mxu3 }
 0x169   :  { %v754_v57 = vadd.f32 %v1497_v16, %v753_v56 }
 0x16b   :  { %799 = vst [vmem:[%s1595_s5 + $0x30] sm:$0xff] %v754_v57 }
 0x170   :  { %v755_v58 = vpop.f32.mrf.mxu3 }
 0x171   :  { %v756_v59 = vadd.f32 %v1497_v16, %v755_v58 }
 0x173   :  { %800 = vst [vmem:[%s1595_s5 + $0x38] sm:$0xff] %v756_v59 }
 0x178   :  { %v758_v60 = vpop.f32.mrf.mxu3 }
 0x179   :  { %v759_v61 = vadd.f32 %v1497_v16, %v758_v60 }
 0x17b   :  { %801 = vst [vmem:[%s1595_s5 + $0x40] sm:$0xff] %v759_v61 }
 0x180   :  { %v760_v62 = vpop.f32.mrf.mxu3 }
 0x181   :  { %v761_v63 = vadd.f32 %v1497_v16, %v760_v62 }
 0x183   :  { %802 = vst [vmem:[%s1595_s5 + $0x48] sm:$0xff] %v761_v63 }
 0x188   :  { %v763_v0 = vpop.f32.mrf.mxu3 }
 0x189   :  { %v764_v1 = vadd.f32 %v1497_v16, %v763_v0 }
 0x18b   :  { %803 = vst [vmem:[%s1595_s5 + $0x50] sm:$0xff] %v764_v1 }
 0x190   :  { %v765_v2 = vpop.f32.mrf.mxu3 }
 0x191   :  { %v766_v3 = vadd.f32 %v1497_v16, %v765_v2 }
 0x193   :  { %804 = vst [vmem:[%s1595_s5 + $0x58] sm:$0xff] %v766_v3 }
 0x198   :  { %v768_v4 = vpop.f32.mrf.mxu3 }
 0x199   :  { %v769_v5 = vadd.f32 %v1497_v16, %v768_v4 }
 0x19b   :  { %805 = vst [vmem:[%s1595_s5 + $0x60] sm:$0xff] %v769_v5 }
 0x1a0   :  { %v770_v6 = vpop.f32.mrf.mxu3 }
 0x1a1   :  { %v771_v7 = vadd.f32 %v1497_v16, %v770_v6 }
 0x1a3   :  { %806 = vst [vmem:[%s1595_s5 + $0x68] sm:$0xff] %v771_v7 }
 0x1a8   :  { %v773_v8 = vpop.f32.mrf.mxu3 }
 0x1a9   :  { %v774_v9 = vadd.f32 %v1497_v16, %v773_v8 }
 0x1ab   :  { %807 = vst [vmem:[%s1595_s5 + $0x70] sm:$0xff] %v774_v9 }
 0x1b0   :  { %v775_v10 = vpop.f32.mrf.mxu3 }
 0x1b1   :  { %v776_v11 = vadd.f32 %v1497_v16, %v775_v10 }
 0x1b3   :  { %808 = vst [vmem:[%s1595_s5 + $0x78] sm:$0xff] %v776_v11 }
 0x1b8   :  { %v778_v12 = vpop.f32.mrf.mxu3 }
 0x1b9   :  { %v779_v13 = vadd.f32 %v1497_v16, %v778_v12 }
 0x1bb   :  { %809 = vst [vmem:[%s1595_s5 + $0x80] sm:$0xff] %v779_v13 }
 0x1c0   :  { %v780_v14 = vpop.f32.mrf.mxu3 }
 0x1c1   :  { %v781_v15 = vadd.f32 %v1497_v16, %v780_v14 }
 0x1c3   :  { %810 = vst [vmem:[%s1595_s5 + $0x88] sm:$0xff] %v781_v15 }
 0x1c8   :  { %v783_v17 = vpop.f32.mrf.mxu3 }
 0x1c9   :  { %v784_v18 = vadd.f32 %v1497_v16, %v783_v17 }
 0x1cb   :  { %811 = vst [vmem:[%s1595_s5 + $0x90] sm:$0xff] %v784_v18 }
 0x1d0   :  { %v785_v19 = vpop.f32.mrf.mxu3 }
 0x1d1   :  { %v786_v20 = vadd.f32 %v1497_v16, %v785_v19 }
 0x1d3   :  { %812 = vst [vmem:[%s1595_s5 + $0x98] sm:$0xff] %v786_v20 }
 0x1d8   :  { %v788_v21 = vpop.f32.mrf.mxu3 }
 0x1d9   :  { %v789_v22 = vadd.f32 %v1497_v16, %v788_v21 }
 0x1db   :  { %813 = vst [vmem:[%s1595_s5 + $0xa0] sm:$0xff] %v789_v22 }
 0x1e0   :  { %v790_v23 = vpop.f32.mrf.mxu3 }
 0x1e1   :  { %v791_v24 = vadd.f32 %v1497_v16, %v790_v23 }
 0x1e3   :  { %814 = vst [vmem:[%s1595_s5 + $0xa8] sm:$0xff] %v791_v24 }

// kernel: faster_rcnn_forward.18
= control target key start
LH: loop header
LB: loop body
LE: loop exit
PB: predicated region body
PF: predicated region fallthrough
CT: control target
= control target key end

     0   :  { %s1247_s12 = smov 0   ;;  %s1249_s13 = smov 0   ;;  %s1423_s0 = inlined_call_operand.vmem [shape: bf16[800,128], index: 0, kind: input, shape index: {}]   ;;  %s1424_s1 = inlined_call_operand.vmem [shape: bf16[128,128], index: 1, kind: input, shape index: {}]   ;;  %s1425_s2 = inlined_call_operand.vmem [shape: f32[1,128], index: 2, kind: input, shape index: {}]   ;;  %s1426_s3 = inlined_call_operand.vmem [shape: bf16[800,128], index: 3, kind: output, shape index: {}]  }
   0x1   :  { %s1251_s14 = smov 0  }
   0x2 LB: > { %s25_s15 = sadd.s32 1, %s1221_s13  ;;  %p835_p0 = scmp.ge.s32.totalorder %s1225_s14, 1  ;;  %s1225_s14 = sphi %s1251_s14, %s13_s14   ;;  %s1221_s13 = sphi %s1249_s13, %s1428_s13   ;;  %s1217_s12 = sphi %s1247_s12, %s1427_s12  }
   0x3   : > { %p27_p1 = scmp.ge.s32.totalorder %s25_s15, 2  ;;  %p169_p2 = scmp.lt.s32.totalorder %s1225_s14, 3 }
   0x5   : > { %s1430_s15 = smov (%p27_p1, %s25_s15), 0  ;;  %p170_p3 = pnand %p835_p0, %p169_p2 }
   0x6   : > { %s203_s24 = smul.u32 (!%p170_p3), 50, %s1217_s12 }
   0x7   : > { %173 = sbr.rel (%p170_p3) target bundleno = 285 (0x11d), region = 32 }
   0x8   : > { %p204_p4 = scmp.lt.s32.totalorder (!%p170_p3), %s203_s24, 99 }
   0xc   : > { %v1004_v0 = vld [vmem:[%s1424_s1 + $0x38] sm:$0xff]  ;;  %v1003_v1 = vld [vmem:[%s1424_s1 + $0x30] sm:$0xff]  ;;  %v1002_v2 = vld [vmem:[%s1424_s1 + $0x28] sm:$0xff]  ;;  %s1432_s24 = smov (!%p204_p4, %s203_s24), 99 }
   0xd   : > { %1155 = vmatpush.bf16.msra.mxu2 %v1004_v0  ;;  %1156 = vmatpush.bf16.msra.mxu3 %v1004_v0  ;;  %v1001_v3 = vld [vmem:[%s1424_s1 + $0x20] sm:$0xff]  ;;  %v1000_v4 = vld [vmem:[%s1424_s1 + $0x18] sm:$0xff]  ;;  %v999_v5 = vld [vmem:[%s1424_s1 + $0x10] sm:$0xff]  ;;  %s836_s4 = sshll.u32 %s1432_s24, 2 }
   0xe   : > { %493 = vmatpush.bf16.msra.mxu0 %v1004_v0  ;;  %1154 = vmatpush.bf16.msra.mxu1 %v1004_v0  ;;  %v998_v6 = vld [vmem:[%s1424_s1 + $0x8] sm:$0xff]  ;;  %v997_v7 = vld [vmem:[%s1424_s1] sm:$0xff]  ;;  %s1300_s9 = scalar_lea.vmem %s1423_s0, %s836_s4  ;;  %s1341_s17 = scalar_lea.vmem %s1426_s3, %s836_s4 }
   0xf   : > { %v984_v8 = vld [vmem:[%s1300_s9 + $0x60] sm:$0xff]  ;;  %v991_v9 = vld [vmem:[%s1300_s9 + $0x98] sm:$0xff]  ;;  %v978_v11 = vld [vmem:[%s1300_s9 + $0x30] sm:$0xff] }
  0x10   : > { %v972_v10 = vld [vmem:[%s1300_s9] sm:$0xff]  ;;  %v985_v12 = vld [vmem:[%s1300_s9 + $0x68] sm:$0xff]  ;;  %v979_v15 = vld [vmem:[%s1300_s9 + $0x38] sm:$0xff] }
  0x11   : > { %1158 = vmatpush.bf16.msra.mxu2 %v1003_v1  ;;  %1159 = vmatpush.bf16.msra.mxu3 %v1003_v1  ;;  %v992_v13 = vld [vmem:[%s1300_s9 + $0xa0] sm:$0xff]  ;;  %v973_v14 = vld [vmem:[%s1300_s9 + $0x8] sm:$0xff]  ;;  %v986_v16 = vld [vmem:[%s1300_s9 + $0x70] sm:$0xff] }
  0x12   : > { %494 = vmatpush.bf16.msra.mxu0 %v1003_v1  ;;  %1157 = vmatpush.bf16.msra.mxu1 %v1003_v1  ;;  %v993_v17 = vld [vmem:[%s1300_s9 + $0xa8] sm:$0xff]  ;;  %v974_v18 = vld [vmem:[%s1300_s9 + $0x10] sm:$0xff]  ;;  %v980_v19 = vld [vmem:[%s1300_s9 + $0x40] sm:$0xff] }
  0x13   : > { %v987_v20 = vld [vmem:[%s1300_s9 + $0x78] sm:$0xff]  ;;  %v994_v21 = vld [vmem:[%s1300_s9 + $0xb0] sm:$0xff]  ;;  %v981_v23 = vld [vmem:[%s1300_s9 + $0x48] sm:$0xff] }
  0x14   : > { %v975_v22 = vld [vmem:[%s1300_s9 + $0x18] sm:$0xff]  ;;  %v988_v24 = vld [vmem:[%s1300_s9 + $0x80] sm:$0xff]  ;;  %v982_v27 = vld [vmem:[%s1300_s9 + $0x50] sm:$0xff] }
  0x15   : > { %1161 = vmatpush.bf16.msra.mxu2 %v1002_v2  ;;  %1162 = vmatpush.bf16.msra.mxu3 %v1002_v2  ;;  %v995_v25 = vld [vmem:[%s1300_s9 + $0xb8] sm:$0xff]  ;;  %v976_v26 = vld [vmem:[%s1300_s9 + $0x20] sm:$0xff]  ;;  %v989_v28 = vld [vmem:[%s1300_s9 + $0x88] sm:$0xff] }
  0x16   : > { %495 = vmatpush.bf16.msra.mxu0 %v1002_v2  ;;  %1160 = vmatpush.bf16.msra.mxu1 %v1002_v2  ;;  %v996_v29 = vld [vmem:[%s1300_s9 + $0xc0] sm:$0xff]  ;;  %v977_v30 = vld [vmem:[%s1300_s9 + $0x28] sm:$0xff]  ;;  %v983_v31 = vld [vmem:[%s1300_s9 + $0x58] sm:$0xff] }
  0x17   : > { %v990_v32 = vld [vmem:[%s1300_s9 + $0x90] sm:$0xff]  ;;  %v1330_v35 = vld [vmem:[%s1425_s2] ss:$0 sm:$0xff] }
  0x19   : > { %1164 = vmatpush.bf16.msra.mxu2 %v1001_v3  ;;  %1165 = vmatpush.bf16.msra.mxu3 %v1001_v3 }
  0x1a   : > { %496 = vmatpush.bf16.msra.mxu0 %v1001_v3  ;;  %1163 = vmatpush.bf16.msra.mxu1 %v1001_v3 }
  0x1d   : > { %1167 = vmatpush.bf16.msra.mxu2 %v1000_v4  ;;  %1168 = vmatpush.bf16.msra.mxu3 %v1000_v4 }
  0x1e   : > { %497 = vmatpush.bf16.msra.mxu0 %v1000_v4  ;;  %1166 = vmatpush.bf16.msra.mxu1 %v1000_v4 }
  0x21   : > { %1170 = vmatpush.bf16.msra.mxu2 %v999_v5  ;;  %1171 = vmatpush.bf16.msra.mxu3 %v999_v5 }
  0x22   : > { %498 = vmatpush.bf16.msra.mxu0 %v999_v5  ;;  %1169 = vmatpush.bf16.msra.mxu1 %v999_v5 }
  0x25   : > { %1173 = vmatpush.bf16.msra.mxu2 %v998_v6  ;;  %1174 = vmatpush.bf16.msra.mxu3 %v998_v6 }
  0x26   : > { %499 = vmatpush.bf16.msra.mxu0 %v998_v6  ;;  %1172 = vmatpush.bf16.msra.mxu1 %v998_v6 }
  0x29   : > { %1176 = vmatpush.bf16.msra.mxu2 %v997_v7  ;;  %1177 = vmatpush.bf16.msra.mxu3 %v997_v7 }
  0x2a   : > { %500 = vmatpush.bf16.msra.mxu0 %v997_v7  ;;  %1175 = vmatpush.bf16.msra.mxu1 %v997_v7 }
  0x2c   : > { %561 = vmatmul.bf16.vlgmr.msra.gmra.mxu2 %v984_v8  ;;  %596 = vmatmul.bf16.vlgmr.msra.gmra.mxu3 %v991_v9 }
  0x2d   : > { %501 = vmatmul.bf16.vlgmr.msra.gmra.mxu0 %v972_v10  ;;  %531 = vmatmul.bf16.vlgmr.msra.gmra.mxu1 %v978_v11 }
  0x3c   : > { %566 = vmatmul.bf16.gmra.mxu2 %v985_v12  ;;  %601 = vmatmul.bf16.gmra.mxu3 %v992_v13 }
  0x3d   : > { %506 = vmatmul.bf16.gmra.mxu0 %v973_v14  ;;  %536 = vmatmul.bf16.gmra.mxu1 %v979_v15 }
  0x4c   : > { %571 = vmatmul.bf16.gmra.mxu2 %v986_v16  ;;  %606 = vmatmul.bf16.gmra.mxu3 %v993_v17 }
  0x4d   : > { %511 = vmatmul.bf16.gmra.mxu0 %v974_v18  ;;  %541 = vmatmul.bf16.gmra.mxu1 %v980_v19 }
  0x5c   : > { %576 = vmatmul.bf16.gmra.mxu2 %v987_v20  ;;  %611 = vmatmul.bf16.gmra.mxu3 %v994_v21 }
  0x5d   : > { %516 = vmatmul.bf16.gmra.mxu0 %v975_v22  ;;  %546 = vmatmul.bf16.gmra.mxu1 %v981_v23 }
  0x6c   : > { %581 = vmatmul.bf16.gmra.mxu2 %v988_v24  ;;  %616 = vmatmul.bf16.gmra.mxu3 %v995_v25 }
  0x6d   : > { %521 = vmatmul.bf16.gmra.mxu0 %v976_v26  ;;  %551 = vmatmul.bf16.gmra.mxu1 %v982_v27 }
  0x7c   : > { %586 = vmatmul.bf16.gmra.mxu2 %v989_v28  ;;  %621 = vmatmul.bf16.gmra.mxu3 %v996_v29 }
  0x7d   : > { %526 = vmatmul.bf16.gmra.mxu0 %v977_v30  ;;  %556 = vmatmul.bf16.gmra.mxu1 %v983_v31 }
  0x8c   : > { %591 = vmatmul.bf16.gmra.mxu2 %v990_v32 }
  0xaa   : > { %v502_v33 = vpop.f32.mrf.mxu0  ;;  %v532_v34 = vpop.f32.mrf.mxu1 }
  0xab   : > { %v503_v38 = vadd.f32 %v1330_v35, %v502_v33  ;;  %v533_v39 = vadd.f32 %v1330_v35, %v532_v34 }
  0xaf   : > { %v562_v36 = vpop.f32.mrf.mxu2  ;;  %v597_v37 = vpop.f32.mrf.mxu3 }
  0xb0   : > { %v598_v46 = vadd.f32 %v1330_v35, %v597_v37  ;;  %v563_v49 = vadd.f32 %v1330_v35, %v562_v36 }
  0xb2   : > { %v504_v40 = vpop.f32.mrf.mxu0  ;;  %v534_v41 = vpop.f32.mrf.mxu1 }
  0xb3   : > { %v505_v42 = vadd.f32 %v1330_v35, %v504_v40  ;;  %v535_v43 = vadd.f32 %v1330_v35, %v534_v41 }
  0xb5   : > { %v1008_v44 = vpack.c.bf16 %v505_v42, %v503_v38  ;;  %v1038_v45 = vpack.c.bf16 %v535_v43, %v533_v39 }
  0xb7   : > { %v564_v47 = vpop.f32.mrf.mxu2  ;;  %1009 = vst [vmem:[%s1341_s17] sm:$0xff] %v1008_v44   ;;  %v599_v48 = vpop.f32.mrf.mxu3 }
  0xb8   : > { %v565_v50 = vadd.f32 %v1330_v35, %v564_v47  ;;  %1135 = vst [vmem:[%s1341_s17 + $0x30] sm:$0xff] %v1038_v45   ;;  %v600_v51 = vadd.f32 %v1330_v35, %v599_v48 }
  0xba   : > { %v1068_v52 = vpack.c.bf16 %v565_v50, %v563_v49  ;;  %v1103_v53 = vpack.c.bf16 %v600_v51, %v598_v46  ;;  %v507_v54 = vpop.f32.mrf.mxu0  ;;  %v537_v55 = vpop.f32.mrf.mxu1 }
  0xbb   : > { %v508_v58 = vadd.f32 %v1330_v35, %v507_v54  ;;  %v538_v59 = vadd.f32 %v1330_v35, %v537_v55 }
  0xbc   : > { %1141 = vst [vmem:[%s1341_s17 + $0x60] sm:$0xff] %v1068_v52  }
  0xbd   : > { %1148 = vst [vmem:[%s1341_s17 + $0x98] sm:$0xff] %v1103_v53  }
  0xbf   : > { %v567_v56 = vpop.f32.mrf.mxu2  ;;  %v602_v57 = vpop.f32.mrf.mxu3 }
  0xc0   : > { %v603_v2 = vadd.f32 %v1330_v35, %v602_v57  ;;  %v568_v5 = vadd.f32 %v1330_v35, %v567_v56 }
  0xc2   : > { %v509_v60 = vpop.f32.mrf.mxu0  ;;  %v539_v61 = vpop.f32.mrf.mxu1 }
  0xc3   : > { %v510_v62 = vadd.f32 %v1330_v35, %v509_v60  ;;  %v540_v63 = vadd.f32 %v1330_v35, %v539_v61 }
  0xc5   : > { %v1013_v0 = vpack.c.bf16 %v510_v62, %v508_v58  ;;  %v1043_v1 = vpack.c.bf16 %v540_v63, %v538_v59 }
  0xc7   : > { %v569_v3 = vpop.f32.mrf.mxu2  ;;  %1130 = vst [vmem:[%s1341_s17 + $0x8] sm:$0xff] %v1013_v0   ;;  %v604_v4 = vpop.f32.mrf.mxu3 }
  0xc8   : > { %v570_v6 = vadd.f32 %v1330_v35, %v569_v3  ;;  %1136 = vst [vmem:[%s1341_s17 + $0x38] sm:$0xff] %v1043_v1   ;;  %v605_v7 = vadd.f32 %v1330_v35, %v604_v4 }
  0xca   : > { %v1073_v8 = vpack.c.bf16 %v570_v6, %v568_v5  ;;  %v1108_v9 = vpack.c.bf16 %v605_v7, %v603_v2  ;;  %v512_v10 = vpop.f32.mrf.mxu0  ;;  %v542_v11 = vpop.f32.mrf.mxu1 }
  0xcb   : > { %v513_v14 = vadd.f32 %v1330_v35, %v512_v10  ;;  %v543_v15 = vadd.f32 %v1330_v35, %v542_v11 }
  0xcc   : > { %1142 = vst [vmem:[%s1341_s17 + $0x68] sm:$0xff] %v1073_v8  }
  0xcd   : > { %1149 = vst [vmem:[%s1341_s17 + $0xa0] sm:$0xff] %v1108_v9  }
  0xcf   : > { %v572_v12 = vpop.f32.mrf.mxu2  ;;  %v607_v13 = vpop.f32.mrf.mxu3 }
  0xd0   : > { %v608_v22 = vadd.f32 %v1330_v35, %v607_v13  ;;  %v573_v25 = vadd.f32 %v1330_v35, %v572_v12 }
  0xd2   : > { %v514_v16 = vpop.f32.mrf.mxu0  ;;  %v544_v17 = vpop.f32.mrf.mxu1 }
  0xd3   : > { %v515_v18 = vadd.f32 %v1330_v35, %v514_v16  ;;  %v545_v19 = vadd.f32 %v1330_v35, %v544_v17 }
  0xd5   : > { %v1018_v20 = vpack.c.bf16 %v515_v18, %v513_v14  ;;  %v1048_v21 = vpack.c.bf16 %v545_v19, %v543_v15 }
  0xd7   : > { %v574_v23 = vpop.f32.mrf.mxu2  ;;  %1131 = vst [vmem:[%s1341_s17 + $0x10] sm:$0xff] %v1018_v20   ;;  %v609_v24 = vpop.f32.mrf.mxu3 }
  0xd8   : > { %v575_v26 = vadd.f32 %v1330_v35, %v574_v23  ;;  %1137 = vst [vmem:[%s1341_s17 + $0x40] sm:$0xff] %v1048_v21   ;;  %v610_v27 = vadd.f32 %v1330_v35, %v609_v24 }
  0xda   : > { %v1078_v28 = vpack.c.bf16 %v575_v26, %v573_v25  ;;  %v1113_v29 = vpack.c.bf16 %v610_v27, %v608_v22  ;;  %v517_v30 = vpop.f32.mrf.mxu0  ;;  %v547_v31 = vpop.f32.mrf.mxu1 }
  0xdb   : > { %v518_v34 = vadd.f32 %v1330_v35, %v517_v30  ;;  %v548_v36 = vadd.f32 %v1330_v35, %v547_v31 }
  0xdc   : > { %1143 = vst [vmem:[%s1341_s17 + $0x70] sm:$0xff] %v1078_v28  }
  0xdd   : > { %1150 = vst [vmem:[%s1341_s17 + $0xa8] sm:$0xff] %v1113_v29  }
  0xdf   : > { %v577_v32 = vpop.f32.mrf.mxu2  ;;  %v612_v33 = vpop.f32.mrf.mxu3 }
  0xe0   : > { %v613_v43 = vadd.f32 %v1330_v35, %v612_v33  ;;  %v578_v46 = vadd.f32 %v1330_v35, %v577_v32 }
  0xe2   : > { %v519_v37 = vpop.f32.mrf.mxu0  ;;  %v549_v38 = vpop.f32.mrf.mxu1 }
  0xe3   : > { %v520_v39 = vadd.f32 %v1330_v35, %v519_v37  ;;  %v550_v40 = vadd.f32 %v1330_v35, %v549_v38 }
  0xe5   : > { %v1023_v41 = vpack.c.bf16 %v520_v39, %v518_v34  ;;  %v1053_v42 = vpack.c.bf16 %v550_v40, %v548_v36 }
  0xe7   : > { %v579_v44 = vpop.f32.mrf.mxu2  ;;  %1132 = vst [vmem:[%s1341_s17 + $0x18] sm:$0xff] %v1023_v41   ;;  %v614_v45 = vpop.f32.mrf.mxu3 }
  0xe8   : > { %v580_v47 = vadd.f32 %v1330_v35, %v579_v44  ;;  %1138 = vst [vmem:[%s1341_s17 + $0x48] sm:$0xff] %v1053_v42   ;;  %v615_v48 = vadd.f32 %v1330_v35, %v614_v45 }
  0xea   : > { %v1083_v49 = vpack.c.bf16 %v580_v47, %v578_v46  ;;  %v1118_v50 = vpack.c.bf16 %v615_v48, %v613_v43  ;;  %v522_v51 = vpop.f32.mrf.mxu0  ;;  %v552_v52 = vpop.f32.mrf.mxu1 }
  0xeb   : > { %v523_v55 = vadd.f32 %v1330_v35, %v522_v51  ;;  %v553_v56 = vadd.f32 %v1330_v35, %v552_v52 }
  0xec   : > { %1144 = vst [vmem:[%s1341_s17 + $0x78] sm:$0xff] %v1083_v49  }
  0xed   : > { %1151 = vst [vmem:[%s1341_s17 + $0xb0] sm:$0xff] %v1118_v50  }
  0xef   : > { %v582_v53 = vpop.f32.mrf.mxu2  ;;  %v617_v54 = vpop.f32.mrf.mxu3 }
  0xf0   : > { %v618_v63 = vadd.f32 %v1330_v35, %v617_v54  ;;  %v583_v2 = vadd.f32 %v1330_v35, %v582_v53 }
  0xf2   : > { %v524_v57 = vpop.f32.mrf.mxu0  ;;  %v554_v58 = vpop.f32.mrf.mxu1 }
  0xf3   : > { %v525_v59 = vadd.f32 %v1330_v35, %v524_v57  ;;  %v555_v60 = vadd.f32 %v1330_v35, %v554_v58 }
  0xf5   : > { %v1028_v61 = vpack.c.bf16 %v525_v59, %v523_v55  ;;  %v1058_v62 = vpack.c.bf16 %v555_v60, %v553_v56 }
  0xf7   : > { %v584_v0 = vpop.f32.mrf.mxu2  ;;  %1133 = vst [vmem:[%s1341_s17 + $0x20] sm:$0xff] %v1028_v61   ;;  %v619_v1 = vpop.f32.mrf.mxu3 }
  0xf8   : > { %v585_v3 = vadd.f32 %v1330_v35, %v584_v0  ;;  %1139 = vst [vmem:[%s1341_s17 + $0x50] sm:$0xff] %v1058_v62   ;;  %v620_v4 = vadd.f32 %v1330_v35, %v619_v1 }
  0xfa   : > { %v1088_v5 = vpack.c.bf16 %v585_v3, %v583_v2  ;;  %v1123_v6 = vpack.c.bf16 %v620_v4, %v618_v63  ;;  %v527_v7 = vpop.f32.mrf.mxu0  ;;  %v557_v8 = vpop.f32.mrf.mxu1 }
  0xfb   : > { %v528_v11 = vadd.f32 %v1330_v35, %v527_v7  ;;  %v558_v12 = vadd.f32 %v1330_v35, %v557_v8 }
  0xfc   : > { %1145 = vst [vmem:[%s1341_s17 + $0x80] sm:$0xff] %v1088_v5  }
  0xfd   : > { %1152 = vst [vmem:[%s1341_s17 + $0xb8] sm:$0xff] %v1123_v6  }
  0xff   : > { %v587_v9 = vpop.f32.mrf.mxu2  ;;  %v622_v10 = vpop.f32.mrf.mxu3 }
 0x100   : > { %v623_v19 = vadd.f32 %v1330_v35, %v622_v10  ;;  %v588_v22 = vadd.f32 %v1330_v35, %v587_v9 }
 0x102   : > { %v529_v13 = vpop.f32.mrf.mxu0  ;;  %v559_v14 = vpop.f32.mrf.mxu1 }
 0x103   : > { %v530_v15 = vadd.f32 %v1330_v35, %v529_v13  ;;  %v560_v16 = vadd.f32 %v1330_v35, %v559_v14 }
 0x105   : > { %v1033_v17 = vpack.c.bf16 %v530_v15, %v528_v11  ;;  %v1063_v18 = vpack.c.bf16 %v560_v16, %v558_v12 }
 0x107   : > { %v589_v20 = vpop.f32.mrf.mxu2  ;;  %1134 = vst [vmem:[%s1341_s17 + $0x28] sm:$0xff] %v1033_v17   ;;  %v624_v21 = vpop.f32.mrf.mxu3 }
 0x108   : > { %v590_v23 = vadd.f32 %v1330_v35, %v589_v20  ;;  %1140 = vst [vmem:[%s1341_s17 + $0x58] sm:$0xff] %v1063_v18   ;;  %v625_v24 = vadd.f32 %v1330_v35, %v624_v21 }
 0x10a   : > { %v1093_v25 = vpack.c.bf16 %v590_v23, %v588_v22  ;;  %v1128_v26 = vpack.c.bf16 %v625_v24, %v623_v19 }
 0x10c   : > { %1146 = vst [vmem:[%s1341_s17 + $0x88] sm:$0xff] %v1093_v25  }
 0x10d   : > { %1153 = vst [vmem:[%s1341_s17 + $0xc0] sm:$0xff] %v1128_v26  }
 0x10f   : > { %v592_v27 = vpop.f32.mrf.mxu2 }
 0x110   : > { %v593_v29 = vadd.f32 %v1330_v35, %v592_v27 }
 0x117   : > { %v594_v28 = vpop.f32.mrf.mxu2 }
 0x118   : > { %v595_v30 = vadd.f32 %v1330_v35, %v594_v28 }
 0x11a   : > { %v1098_v31 = vpack.c.bf16 %v595_v30, %v593_v29 }
 0x11c   : > { %1147 = vst [vmem:[%s1341_s17 + $0x90] sm:$0xff] %v1098_v31  }
 0x11d PF: > { %s13_s14 = sadd.s32 1, %s1225_s14   ;;  %s1427_s12 = smov %s1221_s13 }
 0x11e   : > { %p10_p5 = scmp.ge.s32.totalorder %s13_s14, 4   ;;  %s1428_s13 = smov %s1430_s15 }
 0x120   :  { %12 = sbr.rel (!%p10_p5) target bundleno = 2 (0x2), region = 68 }

// kernel: squeeze.81
= control target key start
LH: loop header
LB: loop body
LE: loop exit
PB: predicated region body
PF: predicated region fallthrough
CT: control target
= control target key end

     0   :  { %vm3_vm0 = vcmask 64512   ;;  %s58_s0 = inlined_call_operand.vmem [shape: f32[1,8,12], index: 0, kind: input, shape index: {}]   ;;  %s59_s1 = inlined_call_operand.vmem [shape: f32[8,3,4], index: 1, kind: output, shape index: {}]  }
   0x1   :  { %v2_v0 = vld [vmem:[%s58_s0] sm:$0xff]   ;;  %v30_v1 = vld [vmem:[%s58_s0 + $0x8] sm:$0xf]  }
   0x2   :  { %4 = vst.msk [vmem:[#allocation0] sm:$0xf] %vm3_vm0, %v2_v0  }
   0x3   :  { %6 = vst.msk [vmem:[#allocation0 + $0x4] sm:$0xf0] %vm3_vm0, %v2_v0  }
   0x4   :  { %11 = vst.msk [vmem:[#allocation0 + $0x10] sm:$0xf] %vm3_vm0, %v30_v1  }
   0x9   :  { %v14_v2 = vld [vmem:[#allocation0] sm:$0xf] }
   0xa   :  { %17 = vst [vmem:[%s59_s1] sm:$0xf] %v14_v2  ;;  %v19_v3 = vld [vmem:[#allocation0 + $0x8] sm:$0xf] }
   0xb   :  { %31 = vst [vmem:[%s59_s1 + $0x4] sm:$0xf] %v19_v3  ;;  %v25_v4 = vld [vmem:[#allocation0 + $0x10] sm:$0xf] }
   0xc   :  { %32 = vst [vmem:[%s59_s1 + $0x8] sm:$0xf] %v25_v4 }

// kernel: tile.13
= control target key start
LH: loop header
LB: loop body
LE: loop exit
PB: predicated region body
PF: predicated region fallthrough
CT: control target
= control target key end

     0   :  { %s22_s0 = inlined_call_operand.vmem [shape: s32[2], index: 0, kind: input, shape index: {}]   ;;  %s23_s1 = inlined_call_operand.vmem [shape: s32[8,2], index: 1, kind: output, shape index: {}]  }
   0x1   :  { %v4_v0 = vld [vmem:[%s22_s0] ss:$0 sm:$0xff] }
   0x2   :  { %5 = vst [vmem:[%s23_s1] sm:$0xff] %v4_v0 }

// kernel: tile.14
= control target key start
LH: loop header
LB: loop body
LE: loop exit
PB: predicated region body
PF: predicated region fallthrough
CT: control target
= control target key end

     0   :  { %s67_s10 = smov 14   ;;  %s68_s11 = smov 10   ;;  %vm3_vm0 = vcmask 15360   ;;  %vm9_vm1 = vcmask 130160   ;;  %vm15_vm2 = vcmask 113760   ;;  %vm21_vm3 = vcmask 97360   ;;  %s111_s0 = inlined_call_operand.vmem [shape: s32[8,2], index: 0, kind: input, shape index: {}]   ;;  %s112_s1 = inlined_call_operand.vmem [shape: s32[16], index: 1, kind: output, shape index: {}]  }
   0x1   :  { %v53_v0 = vld [vmem:[%s111_s0 + $0x7] sm:$0x1]   ;;  %v55_v1 = vld [vmem:[%s111_s0 + $0x5] sm:$0x1]   ;;  %v57_v2 = vld [vmem:[%s111_s0 + $0x3] sm:$0x1]  }
   0x2   :  { %7 = vrot.lane.b32.xlu0 %v53_v0, %s67_s10  ;;  %19 = vrot.lane.b32.xlu1 %v55_v1, %s68_s11  ;;  %s69_s14 = smov 6   ;;  %v54_v3 = vld [vmem:[%s111_s0 + $0x6] sm:$0x1]   ;;  %v56_v4 = vld [vmem:[%s111_s0 + $0x4] sm:$0x1]   ;;  %s70_s21 = smov 12  }
   0x3   :  { %31 = vrot.lane.b32.xlu2 %v57_v2, %s69_s14  ;;  %v58_v5 = vld [vmem:[%s111_s0 + $0x2] sm:$0x1]   ;;  %s71_s22 = smov 8   ;;  %s72_s23 = smov 4   ;;  %v59_v6 = vld [vmem:[%s111_s0 + $0x1] sm:$0x1]  }
   0x4   :  { %s73_s26 = smov 2   ;;  %v2_v7 = vld [vmem:[%s111_s0] sm:$0x1]   ;;  %vm27_vm4 = vcmask 80960   ;;  %vm33_vm5 = vcmask 64560   ;;  %vm39_vm6 = vcmask 48160  }
   0x5   :  { %4 = vst.msk [vmem:[#allocation0] sm:$0x1] %vm3_vm0, %v2_v7   ;;  %vm45_vm7 = vcmask 31760  }
   0xa   :  { %13 = vrot.lane.b32.xlu0 %v54_v3, %s70_s21  ;;  %25 = vrot.lane.b32.xlu1 %v56_v4, %s71_s22 }
   0xb   :  { %37 = vrot.lane.b32.xlu2 %v58_v5, %s72_s23 }
  0x12   :  { %43 = vrot.lane.b32.xlu0 %v59_v6, %s73_s26 }
  0x5d   :  { %v32_v8 = vpop.permute.xlu2 %31  }
  0x65   :  { %v38_v9 = vpop.permute.xlu2 %37  }
  0x74   :  { %v8_v10 = vpop.permute.xlu0 %7   ;;  %v20_v11 = vpop.permute.xlu1 %19  }
  0x75   :  { %10 = vst.msk [vmem:[#allocation0] sm:$0x1] %vm9_vm1, %v8_v10  }
  0x7c   :  { %v14_v12 = vpop.permute.xlu0 %13   ;;  %v26_v13 = vpop.permute.xlu1 %25  }
  0x7d   :  { %16 = vst.msk [vmem:[#allocation0] sm:$0x1] %vm15_vm2, %v14_v12  }
  0x7e   :  { %22 = vst.msk [vmem:[#allocation0] sm:$0x1] %vm21_vm3, %v20_v11  }
  0x7f   :  { %28 = vst.msk [vmem:[#allocation0] sm:$0x1] %vm27_vm4, %v26_v13  }
  0x80   :  { %34 = vst.msk [vmem:[#allocation0] sm:$0x1] %vm33_vm5, %v32_v8  }
  0x81   :  { %40 = vst.msk [vmem:[#allocation0] sm:$0x1] %vm39_vm6, %v38_v9  }
  0x84   :  { %v44_v14 = vpop.permute.xlu0 %43  }
  0x85   :  { %46 = vst.msk [vmem:[#allocation0] sm:$0x1] %vm45_vm7, %v44_v14  }
  0x8c   :  { %v49_v15 = vld [vmem:[#allocation0] sm:$0x1] }
  0x8d   :  { %52 = vst [vmem:[%s112_s1] sm:$0x1] %v49_v15 }

// kernel: squeeze.64
= control target key start
LH: loop header
LB: loop body
LE: loop exit
PB: predicated region body
PF: predicated region fallthrough
CT: control target
= control target key end

     0   :  { %vm3_vm0 = vcmask 64512   ;;  %s58_s0 = inlined_call_operand.vmem [shape: f32[8,12], index: 0, kind: input, shape index: {}]   ;;  %s59_s1 = inlined_call_operand.vmem [shape: f32[8,3,4], index: 1, kind: output, shape index: {}]  }
   0x1   :  { %v2_v0 = vld [vmem:[%s58_s0] sm:$0xff]   ;;  %v30_v1 = vld [vmem:[%s58_s0 + $0x8] sm:$0xf]  }
   0x2   :  { %4 = vst.msk [vmem:[#allocation0] sm:$0xf] %vm3_vm0, %v2_v0  }
   0x3   :  { %6 = vst.msk [vmem:[#allocation0 + $0x4] sm:$0xf0] %vm3_vm0, %v2_v0  }
   0x4   :  { %11 = vst.msk [vmem:[#allocation0 + $0x10] sm:$0xf] %vm3_vm0, %v30_v1  }
   0x9   :  { %v14_v2 = vld [vmem:[#allocation0] sm:$0xf] }
   0xa   :  { %17 = vst [vmem:[%s59_s1] sm:$0xf] %v14_v2  ;;  %v19_v3 = vld [vmem:[#allocation0 + $0x8] sm:$0xf] }
   0xb   :  { %31 = vst [vmem:[%s59_s1 + $0x4] sm:$0xf] %v19_v3  ;;  %v25_v4 = vld [vmem:[#allocation0 + $0x10] sm:$0xf] }
   0xc   :  { %32 = vst [vmem:[%s59_s1 + $0x8] sm:$0xf] %v25_v4 }

// kernel: faster_rcnn_forward.19
= control target key start
LH: loop header
LB: loop body
LE: loop exit
PB: predicated region body
PF: predicated region fallthrough
CT: control target
= control target key end

     0   :  { %s2461_s1 = inlined_call_operand.vmem [shape: bf16[1664,128], index: 1, kind: input, shape index: {}]   ;;  %s2462_s2 = inlined_call_operand.vmem [shape: f32[1,128], index: 2, kind: input, shape index: {}]   ;;  %s2463_s0 = inlined_call_operand.vmem [shape: bf16[16,1664], index: 0, kind: input, shape index: {}]   ;;  %s2464_s4 = inlined_call_operand.vmem [shape: f32[1,128], index: 4, kind: input, shape index: {}]   ;;  %s2465_s3 = inlined_call_operand.vmem [shape: bf16[128,128], index: 3, kind: input, shape index: {}]   ;;  %s2466_s5 = inlined_call_operand.vmem [shape: bf16[128,128], index: 5, kind: input, shape index: {}]   ;;  %s2467_s6 = inlined_call_operand.vmem [shape: f32[1,128], index: 6, kind: input, shape index: {}]   ;;  %s2468_s7 = inlined_call_operand.vmem [shape: f32[16,128], index: 7, kind: output, shape index: {}]  }
   0x1   :  { %v1852_v0 = vld [vmem:[%s2461_s1 + $0x38] sm:$0xff]  ;;  %v1851_v4 = vld [vmem:[%s2461_s1 + $0x30] sm:$0xff]  ;;  %v1850_v8 = vld [vmem:[%s2461_s1 + $0x28] sm:$0xff] }
   0x2   :  { %v1868_v1 = vld [vmem:[%s2461_s1 + $0xb8] sm:$0xff]  ;;  %942 = vmatpush.bf16.msra.mxu0 %v1852_v0  ;;  %v1867_v5 = vld [vmem:[%s2461_s1 + $0xb0] sm:$0xff]  ;;  %v1866_v9 = vld [vmem:[%s2461_s1 + $0xa8] sm:$0xff] }
   0x3   :  { %v1860_v2 = vld [vmem:[%s2461_s1 + $0x78] sm:$0xff]  ;;  %970 = vmatpush.bf16.msra.mxu2 %v1868_v1  ;;  %v1859_v6 = vld [vmem:[%s2461_s1 + $0x70] sm:$0xff]  ;;  %v1858_v10 = vld [vmem:[%s2461_s1 + $0x68] sm:$0xff] }
   0x4   :  { %v1876_v3 = vld [vmem:[%s2461_s1 + $0xf8] sm:$0xff]  ;;  %956 = vmatpush.bf16.msra.mxu1 %v1860_v2  ;;  %v1875_v7 = vld [vmem:[%s2461_s1 + $0xf0] sm:$0xff]  ;;  %v1874_v11 = vld [vmem:[%s2461_s1 + $0xe8] sm:$0xff] }
   0x5   :  { %984 = vmatpush.bf16.msra.mxu3 %v1876_v3  ;;  %v1849_v12 = vld [vmem:[%s2461_s1 + $0x20] sm:$0xff]  ;;  %v1848_v16 = vld [vmem:[%s2461_s1 + $0x18] sm:$0xff]  ;;  %v1847_v20 = vld [vmem:[%s2461_s1 + $0x10] sm:$0xff] }
   0x6   :  { %943 = vmatpush.bf16.msra.mxu0 %v1851_v4  ;;  %v1865_v13 = vld [vmem:[%s2461_s1 + $0xa0] sm:$0xff]  ;;  %v1864_v17 = vld [vmem:[%s2461_s1 + $0x98] sm:$0xff]  ;;  %v1863_v21 = vld [vmem:[%s2461_s1 + $0x90] sm:$0xff] }
   0x7   :  { %971 = vmatpush.bf16.msra.mxu2 %v1867_v5  ;;  %v1857_v14 = vld [vmem:[%s2461_s1 + $0x60] sm:$0xff]  ;;  %v1856_v18 = vld [vmem:[%s2461_s1 + $0x58] sm:$0xff]  ;;  %v1855_v22 = vld [vmem:[%s2461_s1 + $0x50] sm:$0xff] }
   0x8   :  { %957 = vmatpush.bf16.msra.mxu1 %v1859_v6  ;;  %v1873_v15 = vld [vmem:[%s2461_s1 + $0xe0] sm:$0xff]  ;;  %v1872_v19 = vld [vmem:[%s2461_s1 + $0xd8] sm:$0xff]  ;;  %v1871_v23 = vld [vmem:[%s2461_s1 + $0xd0] sm:$0xff] }
   0x9   :  { %985 = vmatpush.bf16.msra.mxu3 %v1875_v7  ;;  %v1846_v24 = vld [vmem:[%s2461_s1 + $0x8] sm:$0xff]  ;;  %v1845_v28 = vld [vmem:[%s2461_s1] sm:$0xff]  ;;  %v1884_v30 = vld [vmem:[%s2461_s1 + $0x138] sm:$0xff] }
   0xa   :  { %944 = vmatpush.bf16.msra.mxu0 %v1850_v8  ;;  %v1862_v25 = vld [vmem:[%s2461_s1 + $0x88] sm:$0xff]  ;;  %v1861_v29 = vld [vmem:[%s2461_s1 + $0x80] sm:$0xff]  ;;  %v1900_v31 = vld [vmem:[%s2461_s1 + $0x1b8] sm:$0xff] }
   0xb   :  { %972 = vmatpush.bf16.msra.mxu2 %v1866_v9  ;;  %v1854_v26 = vld [vmem:[%s2461_s1 + $0x48] sm:$0xff]  ;;  %v1853_v32 = vld [vmem:[%s2461_s1 + $0x40] sm:$0xff]  ;;  %v1838_v35 = vld [vmem:[%s2463_s0 + $0x30] sm:$0xf0] }
   0xc   :  { %958 = vmatpush.bf16.msra.mxu1 %v1858_v10  ;;  %v1870_v27 = vld [vmem:[%s2461_s1 + $0xc8] sm:$0xff]  ;;  %v1869_v33 = vld [vmem:[%s2461_s1 + $0xc0] sm:$0xff]  ;;  %v1839_v37 = vld [vmem:[%s2463_s0 + $0x38] sm:$0xf0] }
   0xd   :  { %986 = vmatpush.bf16.msra.mxu3 %v1874_v11  ;;  %v1302_v34 = vld [vmem:[%s2463_s0] sm:$0xf]  ;;  %v1310_v36 = vld [vmem:[%s2463_s0 + $0x8] sm:$0xf]  ;;  %v1892_v38 = vld [vmem:[%s2461_s1 + $0x178] sm:$0xff] }
   0xe   :  { %945 = vmatpush.bf16.msra.mxu0 %v1849_v12  ;;  %v1908_v39 = vld [vmem:[%s2461_s1 + $0x1f8] sm:$0xff]  ;;  %v1832_v40 = vld [vmem:[%s2463_s0 + $0x4] sm:$0xf]  ;;  %v1833_v42 = vld [vmem:[%s2463_s0 + $0xc] sm:$0xf]  ;;  %v1303_v44 = vor.u32 %v1838_v35, %v1302_v34  ;;  %v1311_v45 = vor.u32 %v1839_v37, %v1310_v36 }
   0xf   :  { %973 = vmatpush.bf16.msra.mxu2 %v1865_v13  ;;  %v1304_v41 = vld [vmem:[%s2463_s0 + $0x34] sm:$0xf0]  ;;  %v1312_v43 = vld [vmem:[%s2463_s0 + $0x3c] sm:$0xf0]  ;;  %v1883_v46 = vld [vmem:[%s2461_s1 + $0x130] sm:$0xff] }
  0x10   :  { %959 = vmatpush.bf16.msra.mxu1 %v1857_v14  ;;  %v1899_v47 = vld [vmem:[%s2461_s1 + $0x1b0] sm:$0xff]  ;;  %v1307_v48 = vor.u32 %v1832_v40, %v1304_v41  ;;  %v1315_v49 = vor.u32 %v1833_v42, %v1312_v43  ;;  %v1882_v52 = vld [vmem:[%s2461_s1 + $0x128] sm:$0xff]  ;;  %v1881_v56 = vld [vmem:[%s2461_s1 + $0x120] sm:$0xff] }
  0x11   :  { %987 = vmatpush.bf16.msra.mxu3 %v1873_v15  ;;  %v1891_v50 = vld [vmem:[%s2461_s1 + $0x170] sm:$0xff]  ;;  %v1898_v53 = vld [vmem:[%s2461_s1 + $0x1a8] sm:$0xff]  ;;  %v1897_v57 = vld [vmem:[%s2461_s1 + $0x1a0] sm:$0xff] }
  0x12   :  { %946 = vmatpush.bf16.msra.mxu0 %v1848_v16  ;;  %v1907_v51 = vld [vmem:[%s2461_s1 + $0x1f0] sm:$0xff]  ;;  %v1890_v54 = vld [vmem:[%s2461_s1 + $0x168] sm:$0xff]  ;;  %v1889_v58 = vld [vmem:[%s2461_s1 + $0x160] sm:$0xff] }
  0x13   :  { %974 = vmatpush.bf16.msra.mxu2 %v1864_v17  ;;  %v1906_v55 = vld [vmem:[%s2461_s1 + $0x1e8] sm:$0xff]  ;;  %v1905_v59 = vld [vmem:[%s2461_s1 + $0x1e0] sm:$0xff]  ;;  %v1880_v60 = vld [vmem:[%s2461_s1 + $0x118] sm:$0xff] }
  0x14   :  { %960 = vmatpush.bf16.msra.mxu1 %v1856_v18  ;;  %v1896_v61 = vld [vmem:[%s2461_s1 + $0x198] sm:$0xff]  ;;  %v1879_v0 = vld [vmem:[%s2461_s1 + $0x110] sm:$0xff]  ;;  %v1878_v4 = vld [vmem:[%s2461_s1 + $0x108] sm:$0xff] }
  0x15   :  { %988 = vmatpush.bf16.msra.mxu3 %v1872_v19  ;;  %v1888_v62 = vld [vmem:[%s2461_s1 + $0x158] sm:$0xff]  ;;  %v1895_v1 = vld [vmem:[%s2461_s1 + $0x190] sm:$0xff]  ;;  %v1894_v5 = vld [vmem:[%s2461_s1 + $0x188] sm:$0xff] }
  0x16   :  { %947 = vmatpush.bf16.msra.mxu0 %v1847_v20  ;;  %v1904_v63 = vld [vmem:[%s2461_s1 + $0x1d8] sm:$0xff]  ;;  %v1887_v2 = vld [vmem:[%s2461_s1 + $0x150] sm:$0xff]  ;;  %v1886_v6 = vld [vmem:[%s2461_s1 + $0x148] sm:$0xff] }
  0x17   :  { %975 = vmatpush.bf16.msra.mxu2 %v1863_v21  ;;  %v1903_v3 = vld [vmem:[%s2461_s1 + $0x1d0] sm:$0xff]  ;;  %v1902_v7 = vld [vmem:[%s2461_s1 + $0x1c8] sm:$0xff]  ;;  %v1877_v8 = vld [vmem:[%s2461_s1 + $0x100] sm:$0xff] }
  0x18   :  { %961 = vmatpush.bf16.msra.mxu1 %v1855_v22  ;;  %v1893_v9 = vld [vmem:[%s2461_s1 + $0x180] sm:$0xff]  ;;  %v1916_v10 = vld [vmem:[%s2461_s1 + $0x238] sm:$0xff]  ;;  %v1318_v12 = vld [vmem:[%s2463_s0 + $0x10] sm:$0xf] }
  0x19   :  { %989 = vmatpush.bf16.msra.mxu3 %v1871_v23  ;;  %v1932_v11 = vld [vmem:[%s2461_s1 + $0x2b8] sm:$0xff]  ;;  %v1840_v13 = vld [vmem:[%s2463_s0 + $0x40] sm:$0xf0]  ;;  %v1841_v15 = vld [vmem:[%s2463_s0 + $0x48] sm:$0xf0] }
  0x1a   :  { %948 = vmatpush.bf16.msra.mxu0 %v1846_v24  ;;  %v1326_v14 = vld [vmem:[%s2463_s0 + $0x18] sm:$0xf]  ;;  %v1885_v16 = vld [vmem:[%s2461_s1 + $0x140] sm:$0xff]  ;;  %v1834_v18 = vld [vmem:[%s2463_s0 + $0x14] sm:$0xf]  ;;  %v1319_v22 = vor.u32 %v1840_v13, %v1318_v12 }
  0x1b   :  { %976 = vmatpush.bf16.msra.mxu2 %v1862_v25  ;;  %v1901_v17 = vld [vmem:[%s2461_s1 + $0x1c0] sm:$0xff]  ;;  %v1320_v19 = vld [vmem:[%s2463_s0 + $0x44] sm:$0xf0]  ;;  %v1835_v20 = vld [vmem:[%s2463_s0 + $0x1c] sm:$0xf]  ;;  %v1327_v23 = vor.u32 %v1841_v15, %v1326_v14 }
  0x1c   :  { %962 = vmatpush.bf16.msra.mxu1 %v1854_v26  ;;  %v1328_v21 = vld [vmem:[%s2463_s0 + $0x4c] sm:$0xf0]  ;;  %v1924_v24 = vld [vmem:[%s2461_s1 + $0x278] sm:$0xff]  ;;  %v1323_v26 = vor.u32 %v1834_v18, %v1320_v19  ;;  %v1922_v34 = vld [vmem:[%s2461_s1 + $0x268] sm:$0xff] }
  0x1d   :  { %990 = vmatpush.bf16.msra.mxu3 %v1870_v27  ;;  %v1940_v25 = vld [vmem:[%s2461_s1 + $0x2f8] sm:$0xff]  ;;  %v1331_v27 = vor.u32 %v1835_v20, %v1328_v21  ;;  %v1938_v35 = vld [vmem:[%s2461_s1 + $0x2e8] sm:$0xff]  ;;  %v1913_v36 = vld [vmem:[%s2461_s1 + $0x220] sm:$0xff] }
  0x1e   :  { %949 = vmatpush.bf16.msra.mxu0 %v1845_v28  ;;  %v1915_v28 = vld [vmem:[%s2461_s1 + $0x230] sm:$0xff]  ;;  %v1929_v37 = vld [vmem:[%s2461_s1 + $0x2a0] sm:$0xff]  ;;  %v1912_v40 = vld [vmem:[%s2461_s1 + $0x218] sm:$0xff] }
  0x1f   :  { %977 = vmatpush.bf16.msra.mxu2 %v1861_v29  ;;  %v1931_v29 = vld [vmem:[%s2461_s1 + $0x2b0] sm:$0xff]  ;;  %v1928_v41 = vld [vmem:[%s2461_s1 + $0x298] sm:$0xff]  ;;  %v1844_v13 = vld [vmem:[%s2463_s0 + $0x60] sm:$0xf0] }
  0x20   :  { %963 = vmatpush.bf16.msra.mxu1 %v1853_v32  ;;  %v1914_v32 = vld [vmem:[%s2461_s1 + $0x228] sm:$0xff]  ;;  %v1920_v42 = vld [vmem:[%s2461_s1 + $0x258] sm:$0xff]  ;;  %v1350_v12 = vld [vmem:[%s2463_s0 + $0x30] sm:$0xf] }
  0x21   :  { %991 = vmatpush.bf16.msra.mxu3 %v1869_v33  ;;  %950 = vmatmul.bf16.vlgmr.msra.gmra.mxu0 %v1303_v44  ;;  %v1930_v33 = vld [vmem:[%s2461_s1 + $0x2a8] sm:$0xff]  ;;  %v1936_v43 = vld [vmem:[%s2461_s1 + $0x2d8] sm:$0xff]  ;;  %v1911_v44 = vld [vmem:[%s2461_s1 + $0x210] sm:$0xff]  ;;  %v1351_v14 = vor.u32 %v1844_v13, %v1350_v12 }
  0x22   :  { %998 = vmatpush.bf16.msrb.mxu0 %v1884_v30  ;;  %978 = vmatmul.bf16.vlgmr.msra.gmra.mxu2 %v1311_v45  ;;  %v1923_v30 = vld [vmem:[%s2461_s1 + $0x270] sm:$0xff] }
  0x23   :  { %1026 = vmatpush.bf16.msrb.mxu2 %v1900_v31  ;;  %964 = vmatmul.bf16.vlgmr.msra.gmra.mxu1 %v1307_v48  ;;  %v1939_v31 = vld [vmem:[%s2461_s1 + $0x2f0] sm:$0xff]  ;;  %v1910_v48 = vld [vmem:[%s2461_s1 + $0x208] sm:$0xff] }
  0x24   :  { %1012 = vmatpush.bf16.msrb.mxu1 %v1892_v38  ;;  %992 = vmatmul.bf16.vlgmr.msra.gmra.mxu3 %v1315_v49  ;;  %v1921_v38 = vld [vmem:[%s2461_s1 + $0x260] sm:$0xff]  ;;  %v1927_v45 = vld [vmem:[%s2461_s1 + $0x290] sm:$0xff]  ;;  %v1926_v49 = vld [vmem:[%s2461_s1 + $0x288] sm:$0xff] }
  0x25   :  { %1040 = vmatpush.bf16.msrb.mxu3 %v1908_v39  ;;  %v1937_v39 = vld [vmem:[%s2461_s1 + $0x2e0] sm:$0xff]  ;;  %v1955_v20 = vld [vmem:[%s2465_s3 + $0x30] sm:$0xff] }
  0x26   :  { %999 = vmatpush.bf16.msrb.mxu0 %v1883_v46  ;;  %v1919_v46 = vld [vmem:[%s2461_s1 + $0x250] sm:$0xff] }
  0x27   :  { %1027 = vmatpush.bf16.msrb.mxu2 %v1899_v47  ;;  %v1935_v47 = vld [vmem:[%s2461_s1 + $0x2d0] sm:$0xff] }
  0x28   :  { %1013 = vmatpush.bf16.msrb.mxu1 %v1891_v50  ;;  %v1918_v50 = vld [vmem:[%s2461_s1 + $0x248] sm:$0xff] }
  0x29   :  { %1041 = vmatpush.bf16.msrb.mxu3 %v1907_v51  ;;  %v1934_v51 = vld [vmem:[%s2461_s1 + $0x2c8] sm:$0xff] }
  0x2a   :  { %1000 = vmatpush.bf16.msrb.mxu0 %v1882_v52  ;;  %v1909_v52 = vld [vmem:[%s2461_s1 + $0x200] sm:$0xff] }
  0x2b   :  { %1028 = vmatpush.bf16.msrb.mxu2 %v1898_v53  ;;  %v1925_v53 = vld [vmem:[%s2461_s1 + $0x280] sm:$0xff] }
  0x2c   :  { %1014 = vmatpush.bf16.msrb.mxu1 %v1890_v54  ;;  %v1948_v54 = vld [vmem:[%s2461_s1 + $0x338] sm:$0xff] }
  0x2d   :  { %1042 = vmatpush.bf16.msrb.mxu3 %v1906_v55  ;;  %v1334_v55 = vld [vmem:[%s2463_s0 + $0x20] sm:$0xf] }
  0x2e   :  { %1001 = vmatpush.bf16.msrb.mxu0 %v1881_v56  ;;  %v1842_v56 = vld [vmem:[%s2463_s0 + $0x50] sm:$0xf0] }
  0x2f   :  { %1029 = vmatpush.bf16.msrb.mxu2 %v1897_v57  ;;  %v1342_v57 = vld [vmem:[%s2463_s0 + $0x28] sm:$0xf] }
  0x30   :  { %1015 = vmatpush.bf16.msrb.mxu1 %v1889_v58  ;;  %v1843_v58 = vld [vmem:[%s2463_s0 + $0x58] sm:$0xf0] }
  0x31   :  { %1043 = vmatpush.bf16.msrb.mxu3 %v1905_v59  ;;  %v1917_v59 = vld [vmem:[%s2461_s1 + $0x240] sm:$0xff] }
  0x32   :  { %1002 = vmatpush.bf16.msrb.mxu0 %v1880_v60  ;;  %v1933_v60 = vld [vmem:[%s2461_s1 + $0x2c0] sm:$0xff] }
  0x33   :  { %1030 = vmatpush.bf16.msrb.mxu2 %v1896_v61  ;;  %v1836_v61 = vld [vmem:[%s2463_s0 + $0x24] sm:$0xf] }
  0x34   :  { %1016 = vmatpush.bf16.msrb.mxu1 %v1888_v62  ;;  %v1336_v62 = vld [vmem:[%s2463_s0 + $0x54] sm:$0xf0] }
  0x35   :  { %1044 = vmatpush.bf16.msrb.mxu3 %v1904_v63  ;;  %v1837_v63 = vld [vmem:[%s2463_s0 + $0x2c] sm:$0xf] }
  0x36   :  { %1003 = vmatpush.bf16.msrb.mxu0 %v1879_v0  ;;  %v1344_v0 = vld [vmem:[%s2463_s0 + $0x5c] sm:$0xf0] }
  0x37   :  { %1031 = vmatpush.bf16.msrb.mxu2 %v1895_v1  ;;  %v1335_v1 = vor.u32 %v1842_v56, %v1334_v55 }
  0x38   :  { %1017 = vmatpush.bf16.msrb.mxu1 %v1887_v2  ;;  %v1343_v2 = vor.u32 %v1843_v58, %v1342_v57  ;;  %v1962_v57 = vld [vmem:[%s2466_s5 + $0x28] sm:$0xff] }
  0x39   :  { %1045 = vmatpush.bf16.msrb.mxu3 %v1903_v3  ;;  %v1339_v3 = vor.u32 %v1836_v61, %v1336_v62  ;;  %v1961_v62 = vld [vmem:[%s2466_s5 + $0x20] sm:$0xff] }
  0x3a   :  { %1004 = vmatpush.bf16.msrb.mxu0 %v1878_v4  ;;  %v1347_v4 = vor.u32 %v1837_v63, %v1344_v0 }
  0x3b   :  { %1032 = vmatpush.bf16.msrb.mxu2 %v1894_v5  ;;  %v1947_v5 = vld [vmem:[%s2461_s1 + $0x330] sm:$0xff] }
  0x3c   :  { %1018 = vmatpush.bf16.msrb.mxu1 %v1886_v6  ;;  %v1946_v6 = vld [vmem:[%s2461_s1 + $0x328] sm:$0xff] }
  0x3d   :  { %1046 = vmatpush.bf16.msrb.mxu3 %v1902_v7  ;;  %v1945_v7 = vld [vmem:[%s2461_s1 + $0x320] sm:$0xff] }
  0x3e   :  { %1005 = vmatpush.bf16.msrb.mxu0 %v1877_v8  ;;  %v1944_v8 = vld [vmem:[%s2461_s1 + $0x318] sm:$0xff] }
  0x3f   :  { %1033 = vmatpush.bf16.msrb.mxu2 %v1893_v9  ;;  %v1943_v9 = vld [vmem:[%s2461_s1 + $0x310] sm:$0xff] }
  0x40   :  { %1019 = vmatpush.bf16.msrb.mxu1 %v1885_v16  ;;  %v1956_v16 = vld [vmem:[%s2465_s3 + $0x38] sm:$0xff] }
  0x41   :  { %1047 = vmatpush.bf16.msrb.mxu3 %v1901_v17  ;;  %1006 = vmatmul.bf16.vlgmr.msrb.gmra.mxu0 %v1319_v22  ;;  %v1954_v22 = vld [vmem:[%s2465_s3 + $0x28] sm:$0xff] }
  0x42   :  { %1054 = vmatpush.bf16.msra.mxu0 %v1916_v10  ;;  %1034 = vmatmul.bf16.vlgmr.msrb.gmra.mxu2 %v1327_v23  ;;  %v1942_v10 = vld [vmem:[%s2461_s1 + $0x308] sm:$0xff] }
  0x43   :  { %1082 = vmatpush.bf16.msra.mxu2 %v1932_v11  ;;  %1020 = vmatmul.bf16.vlgmr.msrb.gmra.mxu1 %v1323_v26  ;;  %v1941_v11 = vld [vmem:[%s2461_s1 + $0x300] sm:$0xff] }
  0x44   :  { %1068 = vmatpush.bf16.msra.mxu1 %v1924_v24  ;;  %1048 = vmatmul.bf16.vlgmr.msrb.gmra.mxu3 %v1331_v27  ;;  %v1953_v24 = vld [vmem:[%s2465_s3 + $0x20] sm:$0xff] }
  0x45   :  { %1096 = vmatpush.bf16.msra.mxu3 %v1940_v25  ;;  %v1965_v25 = vld [vmem:[%s2462_s2] ss:$0 sm:$0xff] }
  0x46   :  { %1055 = vmatpush.bf16.msra.mxu0 %v1915_v28 }
  0x47   :  { %1083 = vmatpush.bf16.msra.mxu2 %v1931_v29 }
  0x48   :  { %1069 = vmatpush.bf16.msra.mxu1 %v1923_v30  ;;  %v1952_v30 = vld [vmem:[%s2465_s3 + $0x18] sm:$0xff] }
  0x49   :  { %1097 = vmatpush.bf16.msra.mxu3 %v1939_v31 }
  0x4a   :  { %1056 = vmatpush.bf16.msra.mxu0 %v1914_v32 }
  0x4b   :  { %1084 = vmatpush.bf16.msra.mxu2 %v1930_v33  ;;  %v1951_v33 = vld [vmem:[%s2465_s3 + $0x10] sm:$0xff] }
  0x4c   :  { %1070 = vmatpush.bf16.msra.mxu1 %v1922_v34 }
  0x4d   :  { %1098 = vmatpush.bf16.msra.mxu3 %v1938_v35 }
  0x4e   :  { %1057 = vmatpush.bf16.msra.mxu0 %v1913_v36 }
  0x4f   :  { %1085 = vmatpush.bf16.msra.mxu2 %v1929_v37 }
  0x50   :  { %1071 = vmatpush.bf16.msra.mxu1 %v1921_v38  ;;  %v1950_v38 = vld [vmem:[%s2465_s3 + $0x8] sm:$0xff] }
  0x51   :  { %1099 = vmatpush.bf16.msra.mxu3 %v1937_v39 }
  0x52   :  { %1058 = vmatpush.bf16.msra.mxu0 %v1912_v40 }
  0x53   :  { %1086 = vmatpush.bf16.msra.mxu2 %v1928_v41 }
  0x54   :  { %1072 = vmatpush.bf16.msra.mxu1 %v1920_v42  ;;  %v1949_v42 = vld [vmem:[%s2465_s3] sm:$0xff] }
  0x55   :  { %1100 = vmatpush.bf16.msra.mxu3 %v1936_v43 }
  0x56   :  { %1059 = vmatpush.bf16.msra.mxu0 %v1911_v44 }
  0x57   :  { %1087 = vmatpush.bf16.msra.mxu2 %v1927_v45 }
  0x58   :  { %1073 = vmatpush.bf16.msra.mxu1 %v1919_v46 }
  0x59   :  { %1101 = vmatpush.bf16.msra.mxu3 %v1935_v47 }
  0x5a   :  { %1060 = vmatpush.bf16.msra.mxu0 %v1910_v48 }
  0x5b   :  { %1088 = vmatpush.bf16.msra.mxu2 %v1926_v49  ;;  %v1964_v49 = vld [vmem:[%s2466_s5 + $0x38] sm:$0xff] }
  0x5c   :  { %1074 = vmatpush.bf16.msra.mxu1 %v1918_v50 }
  0x5d   :  { %1102 = vmatpush.bf16.msra.mxu3 %v1934_v51 }
  0x5e   :  { %1061 = vmatpush.bf16.msra.mxu0 %v1909_v52  ;;  %v1963_v52 = vld [vmem:[%s2466_s5 + $0x30] sm:$0xff] }
  0x5f   :  { %1089 = vmatpush.bf16.msra.mxu2 %v1925_v53 }
  0x60   :  { %1075 = vmatpush.bf16.msra.mxu1 %v1917_v59 }
  0x61   :  { %1103 = vmatpush.bf16.msra.mxu3 %v1933_v60  ;;  %1062 = vmatmul.bf16.vlgmr.msra.gmra.mxu0 %v1335_v1 }
  0x62   :  { %1110 = vmatpush.bf16.msrb.mxu0 %v1948_v54  ;;  %1090 = vmatmul.bf16.vlgmr.msra.gmra.mxu2 %v1343_v2 }
  0x63   :  { %1076 = vmatmul.bf16.vlgmr.msra.gmra.mxu1 %v1339_v3  ;;  %1280 = vmatpush.bf16.msrb.mxu2 %v1964_v49 }
  0x64   :  { %1104 = vmatmul.bf16.vlgmr.msra.gmra.mxu3 %v1347_v4  ;;  %1195 = vmatpush.bf16.msrb.mxu1 %v1956_v16 }
  0x66   :  { %1111 = vmatpush.bf16.msrb.mxu0 %v1947_v5 }
  0x67   :  { %1281 = vmatpush.bf16.msrb.mxu2 %v1963_v52 }
  0x68   :  { %1196 = vmatpush.bf16.msrb.mxu1 %v1955_v20  ;;  %v1959_v20 = vld [vmem:[%s2466_s5 + $0x10] sm:$0xff] }
  0x6a   :  { %1112 = vmatpush.bf16.msrb.mxu0 %v1946_v6 }
  0x6b   :  { %1282 = vmatpush.bf16.msrb.mxu2 %v1962_v57 }
  0x6c   :  { %1197 = vmatpush.bf16.msrb.mxu1 %v1954_v22  ;;  %v1957_v22 = vld [vmem:[%s2466_s5] sm:$0xff] }
  0x6e   :  { %1113 = vmatpush.bf16.msrb.mxu0 %v1945_v7 }
  0x6f   :  { %1283 = vmatpush.bf16.msrb.mxu2 %v1961_v62 }
  0x70   :  { %1198 = vmatpush.bf16.msrb.mxu1 %v1953_v24  ;;  %v1966_v24 = vld [vmem:[%s2464_s4] ss:$0 sm:$0xff] }
  0x72   :  { %1114 = vmatpush.bf16.msrb.mxu0 %v1944_v8 }
  0x74   :  { %1199 = vmatpush.bf16.msrb.mxu1 %v1952_v30 }
  0x76   :  { %1115 = vmatpush.bf16.msrb.mxu0 %v1943_v9 }
  0x78   :  { %1200 = vmatpush.bf16.msrb.mxu1 %v1951_v33 }
  0x7a   :  { %1116 = vmatpush.bf16.msrb.mxu0 %v1942_v10 }
  0x7c   :  { %1201 = vmatpush.bf16.msrb.mxu1 %v1950_v38 }
  0x7e   :  { %1117 = vmatpush.bf16.msrb.mxu0 %v1941_v11 }
  0x80   :  { %1202 = vmatpush.bf16.msrb.mxu1 %v1949_v42 }
  0x81   :  { %1118 = vmatmul.bf16.vlgmr.msrb.gmra.mxu0 %v1351_v14 }
  0x9e   :  { %v951_v15 = vpop.f32.mrf.mxu0 }
  0x9f   :  { %v952_v28 = vadd.f32 %v1965_v25, %v951_v15 }
  0xa0   :  { %v965_v17 = vpop.f32.mrf.mxu1 }
  0xa1   :  { %v966_v31 = vadd.f32 %v965_v17, %v952_v28 }
  0xa5   :  { %v979_v18 = vpop.f32.mrf.mxu2 }
  0xa6   :  { %v953_v19 = vpop.f32.mrf.mxu0  ;;  %v980_v36 = vadd.f32 %v979_v18, %v966_v31  ;;  %v1967_v31 = vld [vmem:[%s2467_s6] ss:$0 sm:$0xff] }
  0xa7   :  { %v993_v21 = vpop.f32.mrf.mxu3  ;;  %v954_v34 = vadd.f32 %v1965_v25, %v953_v19  ;;  %v1960_v19 = vld [vmem:[%s2466_s5 + $0x18] sm:$0xff] }
  0xa8   :  { %v967_v23 = vpop.f32.mrf.mxu1  ;;  %v994_v41 = vadd.f32 %v993_v21, %v980_v36  ;;  %1284 = vmatpush.bf16.msrb.mxu2 %v1960_v19  ;;  %v1958_v21 = vld [vmem:[%s2466_s5 + $0x8] sm:$0xff] }
  0xa9   :  { %v968_v39 = vadd.f32 %v967_v23, %v954_v34 }
  0xac   :  { %1285 = vmatpush.bf16.msrb.mxu2 %v1959_v20 }
  0xad   :  { %v981_v26 = vpop.f32.mrf.mxu2 }
  0xae   :  { %v982_v43 = vadd.f32 %v981_v26, %v968_v39 }
  0xaf   :  { %v995_v29 = vpop.f32.mrf.mxu3 }
  0xb0   :  { %v996_v48 = vadd.f32 %v995_v29, %v982_v43  ;;  %1286 = vmatpush.bf16.msrb.mxu2 %v1958_v21 }
  0xb4   :  { %1287 = vmatpush.bf16.msrb.mxu2 %v1957_v22 }
  0xbe   :  { %v1007_v27 = vpop.f32.mrf.mxu0 }
  0xbf   :  { %v1008_v45 = vadd.f32 %v1007_v27, %v994_v41 }
  0xc0   :  { %v1021_v32 = vpop.f32.mrf.mxu1 }
  0xc1   :  { %v1022_v50 = vadd.f32 %v1021_v32, %v1008_v45 }
  0xc5   :  { %v1035_v35 = vpop.f32.mrf.mxu2 }
  0xc6   :  { %v1009_v37 = vpop.f32.mrf.mxu0  ;;  %v1036_v55 = vadd.f32 %v1035_v35, %v1022_v50 }
  0xc7   :  { %v1049_v40 = vpop.f32.mrf.mxu3  ;;  %v1010_v51 = vadd.f32 %v1009_v37, %v996_v48 }
  0xc8   :  { %v1023_v44 = vpop.f32.mrf.mxu1  ;;  %v1050_v61 = vadd.f32 %v1049_v40, %v1036_v55 }
  0xc9   :  { %v1024_v56 = vadd.f32 %v1023_v44, %v1010_v51 }
  0xcd   :  { %v1037_v46 = vpop.f32.mrf.mxu2 }
  0xce   :  { %v1038_v59 = vadd.f32 %v1037_v46, %v1024_v56 }
  0xcf   :  { %v1051_v53 = vpop.f32.mrf.mxu3 }
  0xd0   :  { %v1052_v0 = vadd.f32 %v1051_v53, %v1038_v59 }
  0xde   :  { %v1063_v47 = vpop.f32.mrf.mxu0 }
  0xdf   :  { %v1064_v1 = vadd.f32 %v1063_v47, %v1050_v61 }
  0xe0   :  { %v1077_v54 = vpop.f32.mrf.mxu1 }
  0xe1   :  { %v1078_v4 = vadd.f32 %v1077_v54, %v1064_v1 }
  0xe5   :  { %v1091_v58 = vpop.f32.mrf.mxu2 }
  0xe6   :  { %v1065_v60 = vpop.f32.mrf.mxu0  ;;  %v1092_v7 = vadd.f32 %v1091_v58, %v1078_v4 }
  0xe7   :  { %v1105_v63 = vpop.f32.mrf.mxu3  ;;  %v1066_v2 = vadd.f32 %v1065_v60, %v1052_v0 }
  0xe8   :  { %v1079_v3 = vpop.f32.mrf.mxu1  ;;  %v1106_v11 = vadd.f32 %v1105_v63, %v1092_v7 }
  0xe9   :  { %v1080_v8 = vadd.f32 %v1079_v3, %v1066_v2 }
  0xed   :  { %v1093_v5 = vpop.f32.mrf.mxu2 }
  0xee   :  { %v1094_v9 = vadd.f32 %v1093_v5, %v1080_v8 }
  0xef   :  { %v1107_v10 = vpop.f32.mrf.mxu3 }
  0xf0   :  { %v1108_v12 = vadd.f32 %v1107_v10, %v1094_v9 }
  0xfe   :  { %v1119_v6 = vpop.f32.mrf.mxu0 }
  0xff   :  { %v1120_v13 = vadd.f32 %v1119_v6, %v1106_v11 }
 0x101   :  { %v1124_v16 = vmax.f32 %v1120_v13, 0.0 }
 0x106   :  { %v1121_v14 = vpop.f32.mrf.mxu0 }
 0x107   :  { %v1122_v15 = vadd.f32 %v1121_v14, %v1108_v12 }
 0x109   :  { %v1125_v17 = vmax.f32 %v1122_v15, 0.0 }
 0x10b   :  { %v1126_v18 = vpack.c.bf16 %v1125_v17, %v1124_v16 }
 0x10d   :  { %1203 = vmatmul.bf16.vlgmr.msrb.gmra.mxu1 %v1126_v18 }
 0x18a   :  { %v1204_v23 = vpop.f32.mrf.mxu1 }
 0x18b   :  { %v1205_v25 = vadd.f32 %v1966_v24, %v1204_v23 }
 0x18d   :  { %v1209_v28 = vmax.f32 %v1205_v25, 0.0 }
 0x192   :  { %v1206_v26 = vpop.f32.mrf.mxu1 }
 0x193   :  { %v1207_v27 = vadd.f32 %v1966_v24, %v1206_v26 }
 0x195   :  { %v1210_v29 = vmax.f32 %v1207_v27, 0.0 }
 0x197   :  { %v1211_v30 = vpack.c.bf16 %v1210_v29, %v1209_v28 }
 0x199   :  { %1288 = vmatmul.bf16.vlgmr.msrb.gmra.mxu2 %v1211_v30 }
 0x21c   :  { %v1289_v32 = vpop.f32.mrf.mxu2 }
 0x21d   :  { %v1290_v33 = vadd.f32 %v1967_v31, %v1289_v32 }
 0x21f   :  { %1294 = vst [vmem:[%s2468_s7] sm:$0xff] %v1290_v33 }
 0x224   :  { %v1291_v34 = vpop.f32.mrf.mxu2 }
 0x225   :  { %v1292_v35 = vadd.f32 %v1967_v31, %v1291_v34 }
 0x227   :  { %1295 = vst [vmem:[%s2468_s7 + $0x8] sm:$0xff] %v1292_v35 }

</bundles_post_ra>
